<compile_context>
chip_gen: v7x
topology: tpu7x:2x2x1
jax: 0.10.0
libtpu: 0.0.40
codegen_flags: <defaults>
</compile_context>

<pallas_src>
import jax
import jax.numpy as jnp
from jax.experimental import pallas as pl
from jax.experimental.pallas import tpu as pltpu


# ----------------------------------------------------------------------------
# Pallas kernel
# ----------------------------------------------------------------------------
def _vae_kernel(
    # inputs
    feat_ref, eps_ref,
    e_wih0_ref, e_whh0_ref, e_b0_ref,       # encoder layer 0 (input proj hoisted)
    e_w1_ref, e_b1_ref,                     # encoder layer 1, stacked [Wih;Whh]
    w_head_ref, b_head_ref,                 # fused mu|var head
    d_w0f_ref, d_b0_ref, d_b0f_ref,         # decoder L0: [Wout@Wih0 ; Whh0], plain/folded bias
    d_w1_ref, d_b1_ref,                     # decoder layer 1, stacked
    # outputs
    hmu_ref, hlogvar_ref, dec_ref,
):
    S = feat_ref.shape[0]
    H = e_whh0_ref.shape[0]
    f32, bf16 = jnp.float32, jnp.bfloat16

    # One EUP sigmoid over the whole [1,4H] gate vector.  The g-gate
    # pre-activations are pre-scaled by 2 at pack time (exact power-of-two
    # fold), so tanh(pre) == 2*sigmoid(2*pre) - 1 here.
    def gates_to_hc(gates, c):
        s = jax.nn.sigmoid(gates)                         # 1 EUP pass, 4H lanes
        i = s[:, 0:H]
        f = s[:, H:2 * H]
        g = 2.0 * s[:, 2 * H:3 * H] - 1.0                 # == tanh(pre-act)
        o = s[:, 3 * H:4 * H]
        c_new = f * c + i * g
        return o * jnp.tanh(c_new), c_new                 # 1 EUP pass, H lanes

    # LSTM cell with fused input/recurrent weights: gates = [x|h] @ W + b.
    # bf16 MXU operands, f32 accumulate, f32 elementwise/state math.
    # TODO(synk): the lane concat before each MXU push could be removed with a
    # persistent [1,2H] state layout; left as-is pending a bundle-path check.
    def fused_cell(x, h, c, w, b):
        xh = jnp.concatenate([x, h], axis=1).astype(bf16)
        gates = jnp.dot(xh, w, preferred_element_type=f32) + b
        return gates_to_hc(gates, c)

    # -------------------- encoder: 2-layer nn.LSTM ---------------------------
    e_wih0 = e_wih0_ref[...]
    e_whh0 = e_whh0_ref[...]
    e_w1, e_b1 = e_w1_ref[...], e_b1_ref[...]

    # layer-0 input projection hoisted out of the recurrence: one batched
    # [S,I]x[I,4H] matmul, off the serial chain.
    xproj = (jnp.dot(feat_ref[...].astype(bf16), e_wih0,
                     preferred_element_type=f32)
             + e_b0_ref[...])                             # [S, 4H] f32

    zero = jnp.zeros((1, H), f32)
    h0 = c0 = h1 = c1 = zero
    for t in range(S):                                    # S static -> unrolled
        gates0 = xproj[t:t + 1, :] + jnp.dot(h0.astype(bf16), e_whh0,
                                             preferred_element_type=f32)
        h0, c0 = gates_to_hc(gates0, c0)
        h1, c1 = fused_cell(h0, h1, c1, e_w1, e_b1)

    # -------------------- fused mu | var head + reparameterization -----------
    h_enc = jnp.concatenate([h0, h1], axis=0)             # [2, H]
    head = (jnp.dot(h_enc.astype(bf16), w_head_ref[...],
                    preferred_element_type=f32)
            + b_head_ref[...])                            # [2, 2H]
    h_mu = head[:, 0:H]
    sp = jax.nn.softplus(head[:, H:2 * H])
    hmu_ref[...] = h_mu
    hlogvar_ref[...] = jnp.log(sp)
    # std = exp(0.5*log(softplus(x))) == sqrt(softplus(x)); reuse sp, skip exp.
    z = h_mu + eps_ref[...] * jnp.sqrt(sp)                # [2, H]

    # -------------------- decoder: StackedLSTMCell, folded feedback ----------
    # decoder weights loaded only now (lower peak vreg pressure).
    d_w0f = d_w0f_ref[...]
    d_b0, d_b0f = d_b0_ref[...], d_b0f_ref[...]
    d_w1, d_b1 = d_w1_ref[...], d_b1_ref[...]

    dh0, dc0 = z[0:1, :], c0
    dh1, dc1 = z[1:2, :], c1
    prev_dh1 = zero              # t=0: feedback input x is exactly zero
    bias0 = d_b0                 # t=0: plain layer-0 bias (no bout@Wih0 term)
    for t in range(S):
        xh = jnp.concatenate([prev_dh1, dh0], axis=1).astype(bf16)
        gates0 = jnp.dot(xh, d_w0f, preferred_element_type=f32) + bias0
        dh0, dc0 = gates_to_hc(gates0, dc0)
        dh1, dc1 = fused_cell(dh0, dh1, dc1, d_w1, d_b1)
        dec_ref[S - 1 - t:S - t, :] = dh1                 # reversed, per-step store
        prev_dh1 = dh1
        bias0 = d_b0f


# ----------------------------------------------------------------------------
# One-time parameter packing (all fusions live here, not in the per-call path)
# ----------------------------------------------------------------------------
def pack_params(params):
    (e_wih0, e_whh0, e_b0, e_wih1, e_whh1, e_b1,
     wmu, bmu, wvar, bvar,
     d_wih0, d_whh0, d_b0, d_wih1, d_whh1, d_b1,
     wout, bout) = params
    H = e_whh0.shape[0]
    f32, bf16 = jnp.float32, jnp.bfloat16
    hi = jax.lax.Precision.HIGHEST

    def sg(w):  # fold the 2x of tanh(x)=2*sigmoid(2x)-1 into g-gate columns (exact)
        return w.at[..., 2 * H:3 * H].multiply(2.0)

    e_wih0_s, e_whh0_s, e_b0_s = sg(e_wih0), sg(e_whh0), sg(e_b0)
    e_w1_s = jnp.concatenate([sg(e_wih1), sg(e_whh1)], axis=0)      # [2H,4H]
    e_b1_s = sg(e_b1)
    d_wih0_s, d_whh0_s, d_b0_s = sg(d_wih0), sg(d_whh0), sg(d_b0)
    d_w1_s = jnp.concatenate([sg(d_wih1), sg(d_whh1)], axis=0)      # [2H,4H]
    d_b1_s = sg(d_b1)

    # Fold the decoder feedback Linear into layer-0's input weights.
    w_fold = jnp.dot(wout, d_wih0_s, precision=hi)                  # [H,4H]
    b_fold = d_b0_s + jnp.dot(bout, d_wih0_s, precision=hi)         # [1,4H]
    d_w0f = jnp.concatenate([w_fold, d_whh0_s], axis=0)             # [2H,4H]

    w_head = jnp.concatenate([wmu, wvar], axis=1)                   # [H,2H]
    b_head = jnp.concatenate([bmu, bvar], axis=1)                   # [1,2H]

    # MXU operands -> bf16, biases stay f32.
    return (e_wih0_s.astype(bf16), e_whh0_s.astype(bf16), e_b0_s.astype(f32),
            e_w1_s.astype(bf16), e_b1_s.astype(f32),
            w_head.astype(bf16), b_head.astype(f32),
            d_w0f.astype(bf16), d_b0_s.astype(f32), b_fold.astype(f32),
            d_w1_s.astype(bf16), d_b1_s.astype(f32))


# ----------------------------------------------------------------------------
# Thin per-call wrapper: just a batched pallas_call on pre-packed arrays
# ----------------------------------------------------------------------------
def vae_forward(features_bsi, eps, packed):
    """features_bsi: [B, S, I] (I == hidden_size), eps: [B, 2, H].
       Returns (h_mu [B,2,H], h_log_var [B,2,H], decoded [B,S,H] already reversed).
       For B==1 this matches the PyTorch module's (h_mu, h_log_variance,
       decoded_features.squeeze(1)) outputs."""
    (e_wih0, e_whh0, e_b0, e_w1, e_b1,
     w_head, b_head, d_w0f, d_b0, d_b0f, d_w1, d_b1) = packed
    B, S, I = features_bsi.shape
    H = e_whh0.shape[0]

    def batched(tail):   # per-sequence block, leading batch dim squeezed
        return pl.BlockSpec((None,) + tail, lambda b: (b, 0, 0))

    def shared(arr):     # VMEM-resident weight, constant index_map
        return pl.BlockSpec(arr.shape, lambda b: (0, 0))

    weight_args = (e_wih0, e_whh0, e_b0, e_w1, e_b1,
                   w_head, b_head, d_w0f, d_b0, d_b0f, d_w1, d_b1)

    out_shape = (jax.ShapeDtypeStruct((B, 2, H), jnp.float32),
                 jax.ShapeDtypeStruct((B, 2, H), jnp.float32),
                 jax.ShapeDtypeStruct((B, S, H), jnp.float32))

    return pl.pallas_call(
        _vae_kernel,
        grid=(B,),
        in_specs=[batched((S, I)), batched((2, H))]
                 + [shared(a) for a in weight_args],
        out_specs=(batched((2, H)), batched((2, H)), batched((S, H))),
        out_shape=out_shape,
        compiler_params=pltpu.CompilerParams(
            dimension_semantics=("parallel",)),
    )(features_bsi, eps, *weight_args)


# ----------------------------------------------------------------------------
# Deterministic parameter construction (shapes follow the PyTorch __init__,
# weights stored pre-transposed as [in, out])
# ----------------------------------------------------------------------------
def make_params(key, input_size, hidden_size):
    H, I = hidden_size, input_size
    scale = 1.0 / jnp.sqrt(jnp.float32(H))
    ks = jax.random.split(key, 22)

    def u(k, shape):
        return jax.random.uniform(k, shape, jnp.float32, -scale, scale)

    # encoder nn.LSTM (2 layers)
    e_wih0 = u(ks[0], (I, 4 * H))
    e_whh0 = u(ks[1], (H, 4 * H))
    e_b0 = u(ks[2], (1, 4 * H)) + u(ks[3], (1, 4 * H))   # bias_ih + bias_hh
    e_wih1 = u(ks[4], (H, 4 * H))
    e_whh1 = u(ks[5], (H, 4 * H))
    e_b1 = u(ks[6], (1, 4 * H)) + u(ks[7], (1, 4 * H))
    # linear_mu / linear_var
    wmu = u(ks[8], (H, H)); bmu = u(ks[9], (1, H))
    wvar = u(ks[10], (H, H)); bvar = u(ks[11], (1, H))
    # decoder StackedLSTMCell (layer0: I->H, layer1: H->H)
    d_wih0 = u(ks[12], (I, 4 * H))
    d_whh0 = u(ks[13], (H, 4 * H))
    d_b0 = u(ks[14], (1, 4 * H)) + u(ks[15], (1, 4 * H))
    d_wih1 = u(ks[16], (H, 4 * H))
    d_whh1 = u(ks[17], (H, 4 * H))
    d_b1 = u(ks[18], (1, 4 * H)) + u(ks[19], (1, 4 * H))
    # dLSTM.out: Linear(H, I)
    wout = u(ks[20], (H, I)); bout = u(ks[21], (1, I))

    return (e_wih0, e_whh0, e_b0, e_wih1, e_whh1, e_b1,
            wmu, bmu, wvar, bvar,
            d_wih0, d_whh0, d_b0, d_wih1, d_whh1, d_b1,
            wout, bout)


# ----------------------------------------------------------------------------
# Pure-JAX fp32 reference (Precision.HIGHEST so it is the true f32 semantics)
# ----------------------------------------------------------------------------
def ref_forward(feat_2d, eps_2d, params, hidden_size):
    (e_wih0, e_whh0, e_b0, e_wih1, e_whh1, e_b1,
     wmu, bmu, wvar, bvar,
     d_wih0, d_whh0, d_b0, d_wih1, d_whh1, d_b1,
     wout, bout) = params
    H = hidden_size
    S = feat_2d.shape[0]
    hi = jax.lax.Precision.HIGHEST

    def mm(a, b):
        return jnp.dot(a, b, precision=hi)

    def cell(x, h, c, wihT, whhT, b):
        g = mm(x, wihT) + mm(h, whhT) + b
        i = jax.nn.sigmoid(g[:, :H]); f = jax.nn.sigmoid(g[:, H:2 * H])
        gg = jnp.tanh(g[:, 2 * H:3 * H]); o = jax.nn.sigmoid(g[:, 3 * H:])
        c = f * c + i * gg
        return o * jnp.tanh(c), c

    z0 = jnp.zeros((1, H), jnp.float32)
    h0 = c0 = h1 = c1 = z0
    for t in range(S):
        h0, c0 = cell(feat_2d[t:t + 1], h0, c0, e_wih0, e_whh0, e_b0)
        h1, c1 = cell(h0, h1, c1, e_wih1, e_whh1, e_b1)
    h_enc = jnp.concatenate([h0, h1], axis=0)
    h_mu = mm(h_enc, wmu) + bmu
    h_log_var = jnp.log(jax.nn.softplus(mm(h_enc, wvar) + bvar))
    z = h_mu + eps_2d * jnp.exp(0.5 * h_log_var)

    x = z0
    dh0, dc0, dh1, dc1 = z[0:1], c0, z[1:2], c1
    outs = []
    for _ in range(S):
        dh0, dc0 = cell(x, dh0, dc0, d_wih0, d_whh0, d_b0)
        dh1, dc1 = cell(dh0, dh1, dc1, d_wih1, d_whh1, d_b1)
        outs.append(dh1)
        x = mm(dh1, wout) + bout
    outs.reverse()
    return h_mu, h_log_var, jnp.concatenate(outs, axis=0)   # [S, H]


# ----------------------------------------------------------------------------
if __name__ == "__main__":
    S = 8
    I = H = 32        # module feeds last_h back through `out`: I == H
    B = 2             # two independent sequences -> parallel grid axis

    key = jax.random.PRNGKey(0)
    k_feat, k_eps, k_par = jax.random.split(key, 3)

    feats = jax.random.normal(k_feat, (B, S, I), jnp.float32)
    eps = jax.random.normal(k_eps, (B, 2, H), jnp.float32)
    params = make_params(k_par, I, H)
    packed = pack_params(params)                 # one-time repack (off hot path)

    fwd = jax.jit(vae_forward)
    h_mu, h_log_var, decoded = fwd(feats, eps, packed)
    jax.block_until_ready((h_mu, h_log_var, decoded))

    assert h_mu.shape == (B, 2, H)
    assert h_log_var.shape == (B, 2, H)
    assert decoded.shape == (B, S, H)

    # Tolerances: the kernel uses bf16 MXU operands inside an 8+8-step fully
    # serial recurrence and is compared against a Precision.HIGHEST fp32
    # reference; expected worst-case drift is O(1e-2), bounds leave ~3-5x margin.
    for b in range(B):
        r_mu, r_lv, r_dec = ref_forward(feats[b], eps[b], params, H)
        assert jnp.allclose(h_mu[b], r_mu, rtol=5e-2, atol=5e-2)
        assert jnp.allclose(h_log_var[b], r_lv, rtol=5e-2, atol=5e-2)
        assert jnp.allclose(decoded[b], r_dec, rtol=5e-2, atol=1e-1)

    print("KERNEL_OK")
</pallas_src>

<mosaic_0001>
module attributes {stable_mosaic.version = 11 : i64} {
  func.func @_vae_kernel(%arg0: i32, %arg1: memref<1x8x32xf32, #tpu.memory_space<vmem>>, %arg2: memref<1x2x32xf32, #tpu.memory_space<vmem>>, %arg3: memref<32x128xbf16, #tpu.memory_space<vmem>>, %arg4: memref<32x128xbf16, #tpu.memory_space<vmem>>, %arg5: memref<1x128xf32, #tpu.memory_space<vmem>>, %arg6: memref<64x128xbf16, #tpu.memory_space<vmem>>, %arg7: memref<1x128xf32, #tpu.memory_space<vmem>>, %arg8: memref<32x64xbf16, #tpu.memory_space<vmem>>, %arg9: memref<1x64xf32, #tpu.memory_space<vmem>>, %arg10: memref<64x128xbf16, #tpu.memory_space<vmem>>, %arg11: memref<1x128xf32, #tpu.memory_space<vmem>>, %arg12: memref<1x128xf32, #tpu.memory_space<vmem>>, %arg13: memref<64x128xbf16, #tpu.memory_space<vmem>>, %arg14: memref<1x128xf32, #tpu.memory_space<vmem>>, %arg15: memref<1x2x32xf32, #tpu.memory_space<vmem>>, %arg16: memref<1x2x32xf32, #tpu.memory_space<vmem>>, %arg17: memref<1x8x32xf32, #tpu.memory_space<vmem>>) attributes {dimension_semantics = [#tpu.dimension_semantics<parallel>], iteration_bounds = array<i64: 2>, scalar_prefetch = 0 : i64, scratch_operands = 0 : i64, tpu.core_type = #tpu.core_type<tc>, window_params = [{transform_indices = @transform_0, window_bounds = array<i64: 1, 8, 32>}, {transform_indices = @transform_1, window_bounds = array<i64: 1, 2, 32>}, {pipeline_mode = #tpu.pipeline_mode<synchronous>, transform_indices = @transform_2, window_bounds = array<i64: 32, 128>}, {pipeline_mode = #tpu.pipeline_mode<synchronous>, transform_indices = @transform_3, window_bounds = array<i64: 32, 128>}, {pipeline_mode = #tpu.pipeline_mode<synchronous>, transform_indices = @transform_4, window_bounds = array<i64: 1, 128>}, {pipeline_mode = #tpu.pipeline_mode<synchronous>, transform_indices = @transform_5, window_bounds = array<i64: 64, 128>}, {pipeline_mode = #tpu.pipeline_mode<synchronous>, transform_indices = @transform_6, window_bounds = array<i64: 1, 128>}, {pipeline_mode = #tpu.pipeline_mode<synchronous>, transform_indices = @transform_7, window_bounds = array<i64: 32, 64>}, {pipeline_mode = #tpu.pipeline_mode<synchronous>, transform_indices = @transform_8, window_bounds = array<i64: 1, 64>}, {pipeline_mode = #tpu.pipeline_mode<synchronous>, transform_indices = @transform_9, window_bounds = array<i64: 64, 128>}, {pipeline_mode = #tpu.pipeline_mode<synchronous>, transform_indices = @transform_10, window_bounds = array<i64: 1, 128>}, {pipeline_mode = #tpu.pipeline_mode<synchronous>, transform_indices = @transform_11, window_bounds = array<i64: 1, 128>}, {pipeline_mode = #tpu.pipeline_mode<synchronous>, transform_indices = @transform_12, window_bounds = array<i64: 64, 128>}, {pipeline_mode = #tpu.pipeline_mode<synchronous>, transform_indices = @transform_13, window_bounds = array<i64: 1, 128>}, {transform_indices = @transform_14, window_bounds = array<i64: 1, 2, 32>}, {transform_indices = @transform_15, window_bounds = array<i64: 1, 2, 32>}, {transform_indices = @transform_16, window_bounds = array<i64: 1, 8, 32>}]} {
    %c0 = arith.constant 0 : index
    %c0_0 = arith.constant 0 : index
    %0 = vector.load %arg3[%c0, %c0_0] : memref<32x128xbf16, #tpu.memory_space<vmem>>, vector<32x128xbf16>
    %c0_1 = arith.constant 0 : index
    %c0_2 = arith.constant 0 : index
    %1 = vector.load %arg4[%c0_1, %c0_2] : memref<32x128xbf16, #tpu.memory_space<vmem>>, vector<32x128xbf16>
    %c0_3 = arith.constant 0 : index
    %c0_4 = arith.constant 0 : index
    %2 = vector.load %arg6[%c0_3, %c0_4] : memref<64x128xbf16, #tpu.memory_space<vmem>>, vector<64x128xbf16>
    %c0_5 = arith.constant 0 : index
    %c0_6 = arith.constant 0 : index
    %3 = vector.load %arg7[%c0_5, %c0_6] : memref<1x128xf32, #tpu.memory_space<vmem>>, vector<1x128xf32>
    %c0_7 = arith.constant 0 : index
    %c0_8 = arith.constant 0 : index
    %c0_9 = arith.constant 0 : index
    %4 = vector.load %arg1[%c0_7, %c0_8, %c0_9] : memref<1x8x32xf32, #tpu.memory_space<vmem>>, vector<1x8x32xf32>
    %5 = vector.shape_cast %4 : vector<1x8x32xf32> to vector<8x32xf32>
    %6 = arith.truncf %5 : vector<8x32xf32> to vector<8x32xbf16>
    %cst = arith.constant dense<0.000000e+00> : vector<8x128xf32>
    %7 = tpu.matmul %6, %0, %cst {dimension_numbers = #tpu.dot_dimension_numbers<[1], [0], [0], [1], [0, 0, 1, 1], [], []>} : vector<8x32xbf16>, vector<32x128xbf16>, vector<8x128xf32> -> vector<8x128xf32>
    %c0_10 = arith.constant 0 : index
    %c0_11 = arith.constant 0 : index
    %8 = vector.load %arg5[%c0_10, %c0_11] : memref<1x128xf32, #tpu.memory_space<vmem>>, vector<1x128xf32>
    %9 = vector.broadcast %8 : vector<1x128xf32> to vector<8x128xf32>
    %10 = arith.addf %7, %9 : vector<8x128xf32>
    %cst_12 = arith.constant 0.000000e+00 : f32
    %11 = vector.broadcast %cst_12 : f32 to vector<1x32xf32>
    %12 = vector.extract_strided_slice %10 {offsets = [0, 0], sizes = [1, 128], strides = [1, 1]} : vector<8x128xf32> to vector<1x128xf32>
    %13 = arith.truncf %11 : vector<1x32xf32> to vector<1x32xbf16>
    %cst_13 = arith.constant dense<0.000000e+00> : vector<1x128xf32>
    %14 = tpu.matmul %13, %1, %cst_13 {dimension_numbers = #tpu.dot_dimension_numbers<[1], [0], [0], [1], [0, 0, 1, 1], [], []>} : vector<1x32xbf16>, vector<32x128xbf16>, vector<1x128xf32> -> vector<1x128xf32>
    %15 = arith.addf %12, %14 : vector<1x128xf32>
    %16 = arith.negf %15 : vector<1x128xf32>
    %17 = math.exp %16 : vector<1x128xf32>
    %cst_14 = arith.constant 1.000000e+00 : f32
    %18 = vector.broadcast %cst_14 : f32 to vector<1x128xf32>
    %19 = arith.addf %18, %17 : vector<1x128xf32>
    %20 = arith.divf %18, %19 : vector<1x128xf32>
    %21 = vector.extract_strided_slice %20 {offsets = [0, 0], sizes = [1, 32], strides = [1, 1]} : vector<1x128xf32> to vector<1x32xf32>
    %22 = vector.extract_strided_slice %20 {offsets = [0, 32], sizes = [1, 32], strides = [1, 1]} : vector<1x128xf32> to vector<1x32xf32>
    %23 = vector.extract_strided_slice %20 {offsets = [0, 64], sizes = [1, 32], strides = [1, 1]} : vector<1x128xf32> to vector<1x32xf32>
    %cst_15 = arith.constant 2.000000e+00 : f32
    %24 = vector.broadcast %cst_15 : f32 to vector<1x32xf32>
    %25 = arith.mulf %24, %23 : vector<1x32xf32>
    %cst_16 = arith.constant 1.000000e+00 : f32
    %26 = vector.broadcast %cst_16 : f32 to vector<1x32xf32>
    %27 = arith.subf %25, %26 : vector<1x32xf32>
    %28 = vector.extract_strided_slice %20 {offsets = [0, 96], sizes = [1, 32], strides = [1, 1]} : vector<1x128xf32> to vector<1x32xf32>
    %29 = arith.mulf %22, %11 : vector<1x32xf32>
    %30 = arith.mulf %21, %27 : vector<1x32xf32>
    %31 = arith.addf %29, %30 : vector<1x32xf32>
    %32 = math.tanh %31 : vector<1x32xf32>
    %33 = arith.mulf %28, %32 : vector<1x32xf32>
    %34 = tpu.concatenate %33, %11 in 1 : vector<1x32xf32>, vector<1x32xf32> -> vector<1x64xf32>
    %35 = arith.truncf %34 : vector<1x64xf32> to vector<1x64xbf16>
    %cst_17 = arith.constant dense<0.000000e+00> : vector<1x128xf32>
    %36 = tpu.matmul %35, %2, %cst_17 {dimension_numbers = #tpu.dot_dimension_numbers<[1], [0], [0], [1], [0, 0, 1, 1], [], []>} : vector<1x64xbf16>, vector<64x128xbf16>, vector<1x128xf32> -> vector<1x128xf32>
    %37 = arith.addf %36, %3 : vector<1x128xf32>
    %38 = arith.negf %37 : vector<1x128xf32>
    %39 = math.exp %38 : vector<1x128xf32>
    %cst_18 = arith.constant 1.000000e+00 : f32
    %40 = vector.broadcast %cst_18 : f32 to vector<1x128xf32>
    %41 = arith.addf %40, %39 : vector<1x128xf32>
    %42 = arith.divf %40, %41 : vector<1x128xf32>
    %43 = vector.extract_strided_slice %42 {offsets = [0, 0], sizes = [1, 32], strides = [1, 1]} : vector<1x128xf32> to vector<1x32xf32>
    %44 = vector.extract_strided_slice %42 {offsets = [0, 32], sizes = [1, 32], strides = [1, 1]} : vector<1x128xf32> to vector<1x32xf32>
    %45 = vector.extract_strided_slice %42 {offsets = [0, 64], sizes = [1, 32], strides = [1, 1]} : vector<1x128xf32> to vector<1x32xf32>
    %cst_19 = arith.constant 2.000000e+00 : f32
    %46 = vector.broadcast %cst_19 : f32 to vector<1x32xf32>
    %47 = arith.mulf %46, %45 : vector<1x32xf32>
    %cst_20 = arith.constant 1.000000e+00 : f32
    %48 = vector.broadcast %cst_20 : f32 to vector<1x32xf32>
    %49 = arith.subf %47, %48 : vector<1x32xf32>
    %50 = vector.extract_strided_slice %42 {offsets = [0, 96], sizes = [1, 32], strides = [1, 1]} : vector<1x128xf32> to vector<1x32xf32>
    %51 = arith.mulf %44, %11 : vector<1x32xf32>
    %52 = arith.mulf %43, %49 : vector<1x32xf32>
    %53 = arith.addf %51, %52 : vector<1x32xf32>
    %54 = math.tanh %53 : vector<1x32xf32>
    %55 = arith.mulf %50, %54 : vector<1x32xf32>
    %56 = vector.extract_strided_slice %10 {offsets = [1, 0], sizes = [1, 128], strides = [1, 1]} : vector<8x128xf32> to vector<1x128xf32>
    %57 = arith.truncf %33 : vector<1x32xf32> to vector<1x32xbf16>
    %cst_21 = arith.constant dense<0.000000e+00> : vector<1x128xf32>
    %58 = tpu.matmul %57, %1, %cst_21 {dimension_numbers = #tpu.dot_dimension_numbers<[1], [0], [0], [1], [0, 0, 1, 1], [], []>} : vector<1x32xbf16>, vector<32x128xbf16>, vector<1x128xf32> -> vector<1x128xf32>
    %59 = arith.addf %56, %58 : vector<1x128xf32>
    %60 = arith.negf %59 : vector<1x128xf32>
    %61 = math.exp %60 : vector<1x128xf32>
    %cst_22 = arith.constant 1.000000e+00 : f32
    %62 = vector.broadcast %cst_22 : f32 to vector<1x128xf32>
    %63 = arith.addf %62, %61 : vector<1x128xf32>
    %64 = arith.divf %62, %63 : vector<1x128xf32>
    %65 = vector.extract_strided_slice %64 {offsets = [0, 0], sizes = [1, 32], strides = [1, 1]} : vector<1x128xf32> to vector<1x32xf32>
    %66 = vector.extract_strided_slice %64 {offsets = [0, 32], sizes = [1, 32], strides = [1, 1]} : vector<1x128xf32> to vector<1x32xf32>
    %67 = vector.extract_strided_slice %64 {offsets = [0, 64], sizes = [1, 32], strides = [1, 1]} : vector<1x128xf32> to vector<1x32xf32>
    %cst_23 = arith.constant 2.000000e+00 : f32
    %68 = vector.broadcast %cst_23 : f32 to vector<1x32xf32>
    %69 = arith.mulf %68, %67 : vector<1x32xf32>
    %cst_24 = arith.constant 1.000000e+00 : f32
    %70 = vector.broadcast %cst_24 : f32 to vector<1x32xf32>
    %71 = arith.subf %69, %70 : vector<1x32xf32>
    %72 = vector.extract_strided_slice %64 {offsets = [0, 96], sizes = [1, 32], strides = [1, 1]} : vector<1x128xf32> to vector<1x32xf32>
    %73 = arith.mulf %66, %31 : vector<1x32xf32>
    %74 = arith.mulf %65, %71 : vector<1x32xf32>
    %75 = arith.addf %73, %74 : vector<1x32xf32>
    %76 = math.tanh %75 : vector<1x32xf32>
    %77 = arith.mulf %72, %76 : vector<1x32xf32>
    %78 = tpu.concatenate %77, %55 in 1 : vector<1x32xf32>, vector<1x32xf32> -> vector<1x64xf32>
    %79 = arith.truncf %78 : vector<1x64xf32> to vector<1x64xbf16>
    %cst_25 = arith.constant dense<0.000000e+00> : vector<1x128xf32>
    %80 = tpu.matmul %79, %2, %cst_25 {dimension_numbers = #tpu.dot_dimension_numbers<[1], [0], [0], [1], [0, 0, 1, 1], [], []>} : vector<1x64xbf16>, vector<64x128xbf16>, vector<1x128xf32> -> vector<1x128xf32>
    %81 = arith.addf %80, %3 : vector<1x128xf32>
    %82 = arith.negf %81 : vector<1x128xf32>
    %83 = math.exp %82 : vector<1x128xf32>
    %cst_26 = arith.constant 1.000000e+00 : f32
    %84 = vector.broadcast %cst_26 : f32 to vector<1x128xf32>
    %85 = arith.addf %84, %83 : vector<1x128xf32>
    %86 = arith.divf %84, %85 : vector<1x128xf32>
    %87 = vector.extract_strided_slice %86 {offsets = [0, 0], sizes = [1, 32], strides = [1, 1]} : vector<1x128xf32> to vector<1x32xf32>
    %88 = vector.extract_strided_slice %86 {offsets = [0, 32], sizes = [1, 32], strides = [1, 1]} : vector<1x128xf32> to vector<1x32xf32>
    %89 = vector.extract_strided_slice %86 {offsets = [0, 64], sizes = [1, 32], strides = [1, 1]} : vector<1x128xf32> to vector<1x32xf32>
    %cst_27 = arith.constant 2.000000e+00 : f32
    %90 = vector.broadcast %cst_27 : f32 to vector<1x32xf32>
    %91 = arith.mulf %90, %89 : vector<1x32xf32>
    %cst_28 = arith.constant 1.000000e+00 : f32
    %92 = vector.broadcast %cst_28 : f32 to vector<1x32xf32>
    %93 = arith.subf %91, %92 : vector<1x32xf32>
    %94 = vector.extract_strided_slice %86 {offsets = [0, 96], sizes = [1, 32], strides = [1, 1]} : vector<1x128xf32> to vector<1x32xf32>
    %95 = arith.mulf %88, %53 : vector<1x32xf32>
    %96 = arith.mulf %87, %93 : vector<1x32xf32>
    %97 = arith.addf %95, %96 : vector<1x32xf32>
    %98 = math.tanh %97 : vector<1x32xf32>
    %99 = arith.mulf %94, %98 : vector<1x32xf32>
    %100 = vector.extract_strided_slice %10 {offsets = [2, 0], sizes = [1, 128], strides = [1, 1]} : vector<8x128xf32> to vector<1x128xf32>
    %101 = arith.truncf %77 : vector<1x32xf32> to vector<1x32xbf16>
    %cst_29 = arith.constant dense<0.000000e+00> : vector<1x128xf32>
    %102 = tpu.matmul %101, %1, %cst_29 {dimension_numbers = #tpu.dot_dimension_numbers<[1], [0], [0], [1], [0, 0, 1, 1], [], []>} : vector<1x32xbf16>, vector<32x128xbf16>, vector<1x128xf32> -> vector<1x128xf32>
    %103 = arith.addf %100, %102 : vector<1x128xf32>
    %104 = arith.negf %103 : vector<1x128xf32>
    %105 = math.exp %104 : vector<1x128xf32>
    %cst_30 = arith.constant 1.000000e+00 : f32
    %106 = vector.broadcast %cst_30 : f32 to vector<1x128xf32>
    %107 = arith.addf %106, %105 : vector<1x128xf32>
    %108 = arith.divf %106, %107 : vector<1x128xf32>
    %109 = vector.extract_strided_slice %108 {offsets = [0, 0], sizes = [1, 32], strides = [1, 1]} : vector<1x128xf32> to vector<1x32xf32>
    %110 = vector.extract_strided_slice %108 {offsets = [0, 32], sizes = [1, 32], strides = [1, 1]} : vector<1x128xf32> to vector<1x32xf32>
    %111 = vector.extract_strided_slice %108 {offsets = [0, 64], sizes = [1, 32], strides = [1, 1]} : vector<1x128xf32> to vector<1x32xf32>
    %cst_31 = arith.constant 2.000000e+00 : f32
    %112 = vector.broadcast %cst_31 : f32 to vector<1x32xf32>
    %113 = arith.mulf %112, %111 : vector<1x32xf32>
    %cst_32 = arith.constant 1.000000e+00 : f32
    %114 = vector.broadcast %cst_32 : f32 to vector<1x32xf32>
    %115 = arith.subf %113, %114 : vector<1x32xf32>
    %116 = vector.extract_strided_slice %108 {offsets = [0, 96], sizes = [1, 32], strides = [1, 1]} : vector<1x128xf32> to vector<1x32xf32>
    %117 = arith.mulf %110, %75 : vector<1x32xf32>
    %118 = arith.mulf %109, %115 : vector<1x32xf32>
    %119 = arith.addf %117, %118 : vector<1x32xf32>
    %120 = math.tanh %119 : vector<1x32xf32>
    %121 = arith.mulf %116, %120 : vector<1x32xf32>
    %122 = tpu.concatenate %121, %99 in 1 : vector<1x32xf32>, vector<1x32xf32> -> vector<1x64xf32>
    %123 = arith.truncf %122 : vector<1x64xf32> to vector<1x64xbf16>
    %cst_33 = arith.constant dense<0.000000e+00> : vector<1x128xf32>
    %124 = tpu.matmul %123, %2, %cst_33 {dimension_numbers = #tpu.dot_dimension_numbers<[1], [0], [0], [1], [0, 0, 1, 1], [], []>} : vector<1x64xbf16>, vector<64x128xbf16>, vector<1x128xf32> -> vector<1x128xf32>
    %125 = arith.addf %124, %3 : vector<1x128xf32>
    %126 = arith.negf %125 : vector<1x128xf32>
    %127 = math.exp %126 : vector<1x128xf32>
    %cst_34 = arith.constant 1.000000e+00 : f32
    %128 = vector.broadcast %cst_34 : f32 to vector<1x128xf32>
    %129 = arith.addf %128, %127 : vector<1x128xf32>
    %130 = arith.divf %128, %129 : vector<1x128xf32>
    %131 = vector.extract_strided_slice %130 {offsets = [0, 0], sizes = [1, 32], strides = [1, 1]} : vector<1x128xf32> to vector<1x32xf32>
    %132 = vector.extract_strided_slice %130 {offsets = [0, 32], sizes = [1, 32], strides = [1, 1]} : vector<1x128xf32> to vector<1x32xf32>
    %133 = vector.extract_strided_slice %130 {offsets = [0, 64], sizes = [1, 32], strides = [1, 1]} : vector<1x128xf32> to vector<1x32xf32>
    %cst_35 = arith.constant 2.000000e+00 : f32
    %134 = vector.broadcast %cst_35 : f32 to vector<1x32xf32>
    %135 = arith.mulf %134, %133 : vector<1x32xf32>
    %cst_36 = arith.constant 1.000000e+00 : f32
    %136 = vector.broadcast %cst_36 : f32 to vector<1x32xf32>
    %137 = arith.subf %135, %136 : vector<1x32xf32>
    %138 = vector.extract_strided_slice %130 {offsets = [0, 96], sizes = [1, 32], strides = [1, 1]} : vector<1x128xf32> to vector<1x32xf32>
    %139 = arith.mulf %132, %97 : vector<1x32xf32>
    %140 = arith.mulf %131, %137 : vector<1x32xf32>
    %141 = arith.addf %139, %140 : vector<1x32xf32>
    %142 = math.tanh %141 : vector<1x32xf32>
    %143 = arith.mulf %138, %142 : vector<1x32xf32>
    %144 = vector.extract_strided_slice %10 {offsets = [3, 0], sizes = [1, 128], strides = [1, 1]} : vector<8x128xf32> to vector<1x128xf32>
    %145 = arith.truncf %121 : vector<1x32xf32> to vector<1x32xbf16>
    %cst_37 = arith.constant dense<0.000000e+00> : vector<1x128xf32>
    %146 = tpu.matmul %145, %1, %cst_37 {dimension_numbers = #tpu.dot_dimension_numbers<[1], [0], [0], [1], [0, 0, 1, 1], [], []>} : vector<1x32xbf16>, vector<32x128xbf16>, vector<1x128xf32> -> vector<1x128xf32>
    %147 = arith.addf %144, %146 : vector<1x128xf32>
    %148 = arith.negf %147 : vector<1x128xf32>
    %149 = math.exp %148 : vector<1x128xf32>
    %cst_38 = arith.constant 1.000000e+00 : f32
    %150 = vector.broadcast %cst_38 : f32 to vector<1x128xf32>
    %151 = arith.addf %150, %149 : vector<1x128xf32>
    %152 = arith.divf %150, %151 : vector<1x128xf32>
    %153 = vector.extract_strided_slice %152 {offsets = [0, 0], sizes = [1, 32], strides = [1, 1]} : vector<1x128xf32> to vector<1x32xf32>
    %154 = vector.extract_strided_slice %152 {offsets = [0, 32], sizes = [1, 32], strides = [1, 1]} : vector<1x128xf32> to vector<1x32xf32>
    %155 = vector.extract_strided_slice %152 {offsets = [0, 64], sizes = [1, 32], strides = [1, 1]} : vector<1x128xf32> to vector<1x32xf32>
    %cst_39 = arith.constant 2.000000e+00 : f32
    %156 = vector.broadcast %cst_39 : f32 to vector<1x32xf32>
    %157 = arith.mulf %156, %155 : vector<1x32xf32>
    %cst_40 = arith.constant 1.000000e+00 : f32
    %158 = vector.broadcast %cst_40 : f32 to vector<1x32xf32>
    %159 = arith.subf %157, %158 : vector<1x32xf32>
    %160 = vector.extract_strided_slice %152 {offsets = [0, 96], sizes = [1, 32], strides = [1, 1]} : vector<1x128xf32> to vector<1x32xf32>
    %161 = arith.mulf %154, %119 : vector<1x32xf32>
    %162 = arith.mulf %153, %159 : vector<1x32xf32>
    %163 = arith.addf %161, %162 : vector<1x32xf32>
    %164 = math.tanh %163 : vector<1x32xf32>
    %165 = arith.mulf %160, %164 : vector<1x32xf32>
    %166 = tpu.concatenate %165, %143 in 1 : vector<1x32xf32>, vector<1x32xf32> -> vector<1x64xf32>
    %167 = arith.truncf %166 : vector<1x64xf32> to vector<1x64xbf16>
    %cst_41 = arith.constant dense<0.000000e+00> : vector<1x128xf32>
    %168 = tpu.matmul %167, %2, %cst_41 {dimension_numbers = #tpu.dot_dimension_numbers<[1], [0], [0], [1], [0, 0, 1, 1], [], []>} : vector<1x64xbf16>, vector<64x128xbf16>, vector<1x128xf32> -> vector<1x128xf32>
    %169 = arith.addf %168, %3 : vector<1x128xf32>
    %170 = arith.negf %169 : vector<1x128xf32>
    %171 = math.exp %170 : vector<1x128xf32>
    %cst_42 = arith.constant 1.000000e+00 : f32
    %172 = vector.broadcast %cst_42 : f32 to vector<1x128xf32>
    %173 = arith.addf %172, %171 : vector<1x128xf32>
    %174 = arith.divf %172, %173 : vector<1x128xf32>
    %175 = vector.extract_strided_slice %174 {offsets = [0, 0], sizes = [1, 32], strides = [1, 1]} : vector<1x128xf32> to vector<1x32xf32>
    %176 = vector.extract_strided_slice %174 {offsets = [0, 32], sizes = [1, 32], strides = [1, 1]} : vector<1x128xf32> to vector<1x32xf32>
    %177 = vector.extract_strided_slice %174 {offsets = [0, 64], sizes = [1, 32], strides = [1, 1]} : vector<1x128xf32> to vector<1x32xf32>
    %cst_43 = arith.constant 2.000000e+00 : f32
    %178 = vector.broadcast %cst_43 : f32 to vector<1x32xf32>
    %179 = arith.mulf %178, %177 : vector<1x32xf32>
    %cst_44 = arith.constant 1.000000e+00 : f32
    %180 = vector.broadcast %cst_44 : f32 to vector<1x32xf32>
    %181 = arith.subf %179, %180 : vector<1x32xf32>
    %182 = vector.extract_strided_slice %174 {offsets = [0, 96], sizes = [1, 32], strides = [1, 1]} : vector<1x128xf32> to vector<1x32xf32>
    %183 = arith.mulf %176, %141 : vector<1x32xf32>
    %184 = arith.mulf %175, %181 : vector<1x32xf32>
    %185 = arith.addf %183, %184 : vector<1x32xf32>
    %186 = math.tanh %185 : vector<1x32xf32>
    %187 = arith.mulf %182, %186 : vector<1x32xf32>
    %188 = vector.extract_strided_slice %10 {offsets = [4, 0], sizes = [1, 128], strides = [1, 1]} : vector<8x128xf32> to vector<1x128xf32>
    %189 = arith.truncf %165 : vector<1x32xf32> to vector<1x32xbf16>
    %cst_45 = arith.constant dense<0.000000e+00> : vector<1x128xf32>
    %190 = tpu.matmul %189, %1, %cst_45 {dimension_numbers = #tpu.dot_dimension_numbers<[1], [0], [0], [1], [0, 0, 1, 1], [], []>} : vector<1x32xbf16>, vector<32x128xbf16>, vector<1x128xf32> -> vector<1x128xf32>
    %191 = arith.addf %188, %190 : vector<1x128xf32>
    %192 = arith.negf %191 : vector<1x128xf32>
    %193 = math.exp %192 : vector<1x128xf32>
    %cst_46 = arith.constant 1.000000e+00 : f32
    %194 = vector.broadcast %cst_46 : f32 to vector<1x128xf32>
    %195 = arith.addf %194, %193 : vector<1x128xf32>
    %196 = arith.divf %194, %195 : vector<1x128xf32>
    %197 = vector.extract_strided_slice %196 {offsets = [0, 0], sizes = [1, 32], strides = [1, 1]} : vector<1x128xf32> to vector<1x32xf32>
    %198 = vector.extract_strided_slice %196 {offsets = [0, 32], sizes = [1, 32], strides = [1, 1]} : vector<1x128xf32> to vector<1x32xf32>
    %199 = vector.extract_strided_slice %196 {offsets = [0, 64], sizes = [1, 32], strides = [1, 1]} : vector<1x128xf32> to vector<1x32xf32>
    %cst_47 = arith.constant 2.000000e+00 : f32
    %200 = vector.broadcast %cst_47 : f32 to vector<1x32xf32>
    %201 = arith.mulf %200, %199 : vector<1x32xf32>
    %cst_48 = arith.constant 1.000000e+00 : f32
    %202 = vector.broadcast %cst_48 : f32 to vector<1x32xf32>
    %203 = arith.subf %201, %202 : vector<1x32xf32>
    %204 = vector.extract_strided_slice %196 {offsets = [0, 96], sizes = [1, 32], strides = [1, 1]} : vector<1x128xf32> to vector<1x32xf32>
    %205 = arith.mulf %198, %163 : vector<1x32xf32>
    %206 = arith.mulf %197, %203 : vector<1x32xf32>
    %207 = arith.addf %205, %206 : vector<1x32xf32>
    %208 = math.tanh %207 : vector<1x32xf32>
    %209 = arith.mulf %204, %208 : vector<1x32xf32>
    %210 = tpu.concatenate %209, %187 in 1 : vector<1x32xf32>, vector<1x32xf32> -> vector<1x64xf32>
    %211 = arith.truncf %210 : vector<1x64xf32> to vector<1x64xbf16>
    %cst_49 = arith.constant dense<0.000000e+00> : vector<1x128xf32>
    %212 = tpu.matmul %211, %2, %cst_49 {dimension_numbers = #tpu.dot_dimension_numbers<[1], [0], [0], [1], [0, 0, 1, 1], [], []>} : vector<1x64xbf16>, vector<64x128xbf16>, vector<1x128xf32> -> vector<1x128xf32>
    %213 = arith.addf %212, %3 : vector<1x128xf32>
    %214 = arith.negf %213 : vector<1x128xf32>
    %215 = math.exp %214 : vector<1x128xf32>
    %cst_50 = arith.constant 1.000000e+00 : f32
    %216 = vector.broadcast %cst_50 : f32 to vector<1x128xf32>
    %217 = arith.addf %216, %215 : vector<1x128xf32>
    %218 = arith.divf %216, %217 : vector<1x128xf32>
    %219 = vector.extract_strided_slice %218 {offsets = [0, 0], sizes = [1, 32], strides = [1, 1]} : vector<1x128xf32> to vector<1x32xf32>
    %220 = vector.extract_strided_slice %218 {offsets = [0, 32], sizes = [1, 32], strides = [1, 1]} : vector<1x128xf32> to vector<1x32xf32>
    %221 = vector.extract_strided_slice %218 {offsets = [0, 64], sizes = [1, 32], strides = [1, 1]} : vector<1x128xf32> to vector<1x32xf32>
    %cst_51 = arith.constant 2.000000e+00 : f32
    %222 = vector.broadcast %cst_51 : f32 to vector<1x32xf32>
    %223 = arith.mulf %222, %221 : vector<1x32xf32>
    %cst_52 = arith.constant 1.000000e+00 : f32
    %224 = vector.broadcast %cst_52 : f32 to vector<1x32xf32>
    %225 = arith.subf %223, %224 : vector<1x32xf32>
    %226 = vector.extract_strided_slice %218 {offsets = [0, 96], sizes = [1, 32], strides = [1, 1]} : vector<1x128xf32> to vector<1x32xf32>
    %227 = arith.mulf %220, %185 : vector<1x32xf32>
    %228 = arith.mulf %219, %225 : vector<1x32xf32>
    %229 = arith.addf %227, %228 : vector<1x32xf32>
    %230 = math.tanh %229 : vector<1x32xf32>
    %231 = arith.mulf %226, %230 : vector<1x32xf32>
    %232 = vector.extract_strided_slice %10 {offsets = [5, 0], sizes = [1, 128], strides = [1, 1]} : vector<8x128xf32> to vector<1x128xf32>
    %233 = arith.truncf %209 : vector<1x32xf32> to vector<1x32xbf16>
    %cst_53 = arith.constant dense<0.000000e+00> : vector<1x128xf32>
    %234 = tpu.matmul %233, %1, %cst_53 {dimension_numbers = #tpu.dot_dimension_numbers<[1], [0], [0], [1], [0, 0, 1, 1], [], []>} : vector<1x32xbf16>, vector<32x128xbf16>, vector<1x128xf32> -> vector<1x128xf32>
    %235 = arith.addf %232, %234 : vector<1x128xf32>
    %236 = arith.negf %235 : vector<1x128xf32>
    %237 = math.exp %236 : vector<1x128xf32>
    %cst_54 = arith.constant 1.000000e+00 : f32
    %238 = vector.broadcast %cst_54 : f32 to vector<1x128xf32>
    %239 = arith.addf %238, %237 : vector<1x128xf32>
    %240 = arith.divf %238, %239 : vector<1x128xf32>
    %241 = vector.extract_strided_slice %240 {offsets = [0, 0], sizes = [1, 32], strides = [1, 1]} : vector<1x128xf32> to vector<1x32xf32>
    %242 = vector.extract_strided_slice %240 {offsets = [0, 32], sizes = [1, 32], strides = [1, 1]} : vector<1x128xf32> to vector<1x32xf32>
    %243 = vector.extract_strided_slice %240 {offsets = [0, 64], sizes = [1, 32], strides = [1, 1]} : vector<1x128xf32> to vector<1x32xf32>
    %cst_55 = arith.constant 2.000000e+00 : f32
    %244 = vector.broadcast %cst_55 : f32 to vector<1x32xf32>
    %245 = arith.mulf %244, %243 : vector<1x32xf32>
    %cst_56 = arith.constant 1.000000e+00 : f32
    %246 = vector.broadcast %cst_56 : f32 to vector<1x32xf32>
    %247 = arith.subf %245, %246 : vector<1x32xf32>
    %248 = vector.extract_strided_slice %240 {offsets = [0, 96], sizes = [1, 32], strides = [1, 1]} : vector<1x128xf32> to vector<1x32xf32>
    %249 = arith.mulf %242, %207 : vector<1x32xf32>
    %250 = arith.mulf %241, %247 : vector<1x32xf32>
    %251 = arith.addf %249, %250 : vector<1x32xf32>
    %252 = math.tanh %251 : vector<1x32xf32>
    %253 = arith.mulf %248, %252 : vector<1x32xf32>
    %254 = tpu.concatenate %253, %231 in 1 : vector<1x32xf32>, vector<1x32xf32> -> vector<1x64xf32>
    %255 = arith.truncf %254 : vector<1x64xf32> to vector<1x64xbf16>
    %cst_57 = arith.constant dense<0.000000e+00> : vector<1x128xf32>
    %256 = tpu.matmul %255, %2, %cst_57 {dimension_numbers = #tpu.dot_dimension_numbers<[1], [0], [0], [1], [0, 0, 1, 1], [], []>} : vector<1x64xbf16>, vector<64x128xbf16>, vector<1x128xf32> -> vector<1x128xf32>
    %257 = arith.addf %256, %3 : vector<1x128xf32>
    %258 = arith.negf %257 : vector<1x128xf32>
    %259 = math.exp %258 : vector<1x128xf32>
    %cst_58 = arith.constant 1.000000e+00 : f32
    %260 = vector.broadcast %cst_58 : f32 to vector<1x128xf32>
    %261 = arith.addf %260, %259 : vector<1x128xf32>
    %262 = arith.divf %260, %261 : vector<1x128xf32>
    %263 = vector.extract_strided_slice %262 {offsets = [0, 0], sizes = [1, 32], strides = [1, 1]} : vector<1x128xf32> to vector<1x32xf32>
    %264 = vector.extract_strided_slice %262 {offsets = [0, 32], sizes = [1, 32], strides = [1, 1]} : vector<1x128xf32> to vector<1x32xf32>
    %265 = vector.extract_strided_slice %262 {offsets = [0, 64], sizes = [1, 32], strides = [1, 1]} : vector<1x128xf32> to vector<1x32xf32>
    %cst_59 = arith.constant 2.000000e+00 : f32
    %266 = vector.broadcast %cst_59 : f32 to vector<1x32xf32>
    %267 = arith.mulf %266, %265 : vector<1x32xf32>
    %cst_60 = arith.constant 1.000000e+00 : f32
    %268 = vector.broadcast %cst_60 : f32 to vector<1x32xf32>
    %269 = arith.subf %267, %268 : vector<1x32xf32>
    %270 = vector.extract_strided_slice %262 {offsets = [0, 96], sizes = [1, 32], strides = [1, 1]} : vector<1x128xf32> to vector<1x32xf32>
    %271 = arith.mulf %264, %229 : vector<1x32xf32>
    %272 = arith.mulf %263, %269 : vector<1x32xf32>
    %273 = arith.addf %271, %272 : vector<1x32xf32>
    %274 = math.tanh %273 : vector<1x32xf32>
    %275 = arith.mulf %270, %274 : vector<1x32xf32>
    %276 = vector.extract_strided_slice %10 {offsets = [6, 0], sizes = [1, 128], strides = [1, 1]} : vector<8x128xf32> to vector<1x128xf32>
    %277 = arith.truncf %253 : vector<1x32xf32> to vector<1x32xbf16>
    %cst_61 = arith.constant dense<0.000000e+00> : vector<1x128xf32>
    %278 = tpu.matmul %277, %1, %cst_61 {dimension_numbers = #tpu.dot_dimension_numbers<[1], [0], [0], [1], [0, 0, 1, 1], [], []>} : vector<1x32xbf16>, vector<32x128xbf16>, vector<1x128xf32> -> vector<1x128xf32>
    %279 = arith.addf %276, %278 : vector<1x128xf32>
    %280 = arith.negf %279 : vector<1x128xf32>
    %281 = math.exp %280 : vector<1x128xf32>
    %cst_62 = arith.constant 1.000000e+00 : f32
    %282 = vector.broadcast %cst_62 : f32 to vector<1x128xf32>
    %283 = arith.addf %282, %281 : vector<1x128xf32>
    %284 = arith.divf %282, %283 : vector<1x128xf32>
    %285 = vector.extract_strided_slice %284 {offsets = [0, 0], sizes = [1, 32], strides = [1, 1]} : vector<1x128xf32> to vector<1x32xf32>
    %286 = vector.extract_strided_slice %284 {offsets = [0, 32], sizes = [1, 32], strides = [1, 1]} : vector<1x128xf32> to vector<1x32xf32>
    %287 = vector.extract_strided_slice %284 {offsets = [0, 64], sizes = [1, 32], strides = [1, 1]} : vector<1x128xf32> to vector<1x32xf32>
    %cst_63 = arith.constant 2.000000e+00 : f32
    %288 = vector.broadcast %cst_63 : f32 to vector<1x32xf32>
    %289 = arith.mulf %288, %287 : vector<1x32xf32>
    %cst_64 = arith.constant 1.000000e+00 : f32
    %290 = vector.broadcast %cst_64 : f32 to vector<1x32xf32>
    %291 = arith.subf %289, %290 : vector<1x32xf32>
    %292 = vector.extract_strided_slice %284 {offsets = [0, 96], sizes = [1, 32], strides = [1, 1]} : vector<1x128xf32> to vector<1x32xf32>
    %293 = arith.mulf %286, %251 : vector<1x32xf32>
    %294 = arith.mulf %285, %291 : vector<1x32xf32>
    %295 = arith.addf %293, %294 : vector<1x32xf32>
    %296 = math.tanh %295 : vector<1x32xf32>
    %297 = arith.mulf %292, %296 : vector<1x32xf32>
    %298 = tpu.concatenate %297, %275 in 1 : vector<1x32xf32>, vector<1x32xf32> -> vector<1x64xf32>
    %299 = arith.truncf %298 : vector<1x64xf32> to vector<1x64xbf16>
    %cst_65 = arith.constant dense<0.000000e+00> : vector<1x128xf32>
    %300 = tpu.matmul %299, %2, %cst_65 {dimension_numbers = #tpu.dot_dimension_numbers<[1], [0], [0], [1], [0, 0, 1, 1], [], []>} : vector<1x64xbf16>, vector<64x128xbf16>, vector<1x128xf32> -> vector<1x128xf32>
    %301 = arith.addf %300, %3 : vector<1x128xf32>
    %302 = arith.negf %301 : vector<1x128xf32>
    %303 = math.exp %302 : vector<1x128xf32>
    %cst_66 = arith.constant 1.000000e+00 : f32
    %304 = vector.broadcast %cst_66 : f32 to vector<1x128xf32>
    %305 = arith.addf %304, %303 : vector<1x128xf32>
    %306 = arith.divf %304, %305 : vector<1x128xf32>
    %307 = vector.extract_strided_slice %306 {offsets = [0, 0], sizes = [1, 32], strides = [1, 1]} : vector<1x128xf32> to vector<1x32xf32>
    %308 = vector.extract_strided_slice %306 {offsets = [0, 32], sizes = [1, 32], strides = [1, 1]} : vector<1x128xf32> to vector<1x32xf32>
    %309 = vector.extract_strided_slice %306 {offsets = [0, 64], sizes = [1, 32], strides = [1, 1]} : vector<1x128xf32> to vector<1x32xf32>
    %cst_67 = arith.constant 2.000000e+00 : f32
    %310 = vector.broadcast %cst_67 : f32 to vector<1x32xf32>
    %311 = arith.mulf %310, %309 : vector<1x32xf32>
    %cst_68 = arith.constant 1.000000e+00 : f32
    %312 = vector.broadcast %cst_68 : f32 to vector<1x32xf32>
    %313 = arith.subf %311, %312 : vector<1x32xf32>
    %314 = vector.extract_strided_slice %306 {offsets = [0, 96], sizes = [1, 32], strides = [1, 1]} : vector<1x128xf32> to vector<1x32xf32>
    %315 = arith.mulf %308, %273 : vector<1x32xf32>
    %316 = arith.mulf %307, %313 : vector<1x32xf32>
    %317 = arith.addf %315, %316 : vector<1x32xf32>
    %318 = math.tanh %317 : vector<1x32xf32>
    %319 = arith.mulf %314, %318 : vector<1x32xf32>
    %320 = vector.extract_strided_slice %10 {offsets = [7, 0], sizes = [1, 128], strides = [1, 1]} : vector<8x128xf32> to vector<1x128xf32>
    %321 = arith.truncf %297 : vector<1x32xf32> to vector<1x32xbf16>
    %cst_69 = arith.constant dense<0.000000e+00> : vector<1x128xf32>
    %322 = tpu.matmul %321, %1, %cst_69 {dimension_numbers = #tpu.dot_dimension_numbers<[1], [0], [0], [1], [0, 0, 1, 1], [], []>} : vector<1x32xbf16>, vector<32x128xbf16>, vector<1x128xf32> -> vector<1x128xf32>
    %323 = arith.addf %320, %322 : vector<1x128xf32>
    %324 = arith.negf %323 : vector<1x128xf32>
    %325 = math.exp %324 : vector<1x128xf32>
    %cst_70 = arith.constant 1.000000e+00 : f32
    %326 = vector.broadcast %cst_70 : f32 to vector<1x128xf32>
    %327 = arith.addf %326, %325 : vector<1x128xf32>
    %328 = arith.divf %326, %327 : vector<1x128xf32>
    %329 = vector.extract_strided_slice %328 {offsets = [0, 0], sizes = [1, 32], strides = [1, 1]} : vector<1x128xf32> to vector<1x32xf32>
    %330 = vector.extract_strided_slice %328 {offsets = [0, 32], sizes = [1, 32], strides = [1, 1]} : vector<1x128xf32> to vector<1x32xf32>
    %331 = vector.extract_strided_slice %328 {offsets = [0, 64], sizes = [1, 32], strides = [1, 1]} : vector<1x128xf32> to vector<1x32xf32>
    %cst_71 = arith.constant 2.000000e+00 : f32
    %332 = vector.broadcast %cst_71 : f32 to vector<1x32xf32>
    %333 = arith.mulf %332, %331 : vector<1x32xf32>
    %cst_72 = arith.constant 1.000000e+00 : f32
    %334 = vector.broadcast %cst_72 : f32 to vector<1x32xf32>
    %335 = arith.subf %333, %334 : vector<1x32xf32>
    %336 = vector.extract_strided_slice %328 {offsets = [0, 96], sizes = [1, 32], strides = [1, 1]} : vector<1x128xf32> to vector<1x32xf32>
    %337 = arith.mulf %330, %295 : vector<1x32xf32>
    %338 = arith.mulf %329, %335 : vector<1x32xf32>
    %339 = arith.addf %337, %338 : vector<1x32xf32>
    %340 = math.tanh %339 : vector<1x32xf32>
    %341 = arith.mulf %336, %340 : vector<1x32xf32>
    %342 = tpu.concatenate %341, %319 in 1 : vector<1x32xf32>, vector<1x32xf32> -> vector<1x64xf32>
    %343 = arith.truncf %342 : vector<1x64xf32> to vector<1x64xbf16>
    %cst_73 = arith.constant dense<0.000000e+00> : vector<1x128xf32>
    %344 = tpu.matmul %343, %2, %cst_73 {dimension_numbers = #tpu.dot_dimension_numbers<[1], [0], [0], [1], [0, 0, 1, 1], [], []>} : vector<1x64xbf16>, vector<64x128xbf16>, vector<1x128xf32> -> vector<1x128xf32>
    %345 = arith.addf %344, %3 : vector<1x128xf32>
    %346 = arith.negf %345 : vector<1x128xf32>
    %347 = math.exp %346 : vector<1x128xf32>
    %cst_74 = arith.constant 1.000000e+00 : f32
    %348 = vector.broadcast %cst_74 : f32 to vector<1x128xf32>
    %349 = arith.addf %348, %347 : vector<1x128xf32>
    %350 = arith.divf %348, %349 : vector<1x128xf32>
    %351 = vector.extract_strided_slice %350 {offsets = [0, 0], sizes = [1, 32], strides = [1, 1]} : vector<1x128xf32> to vector<1x32xf32>
    %352 = vector.extract_strided_slice %350 {offsets = [0, 32], sizes = [1, 32], strides = [1, 1]} : vector<1x128xf32> to vector<1x32xf32>
    %353 = vector.extract_strided_slice %350 {offsets = [0, 64], sizes = [1, 32], strides = [1, 1]} : vector<1x128xf32> to vector<1x32xf32>
    %cst_75 = arith.constant 2.000000e+00 : f32
    %354 = vector.broadcast %cst_75 : f32 to vector<1x32xf32>
    %355 = arith.mulf %354, %353 : vector<1x32xf32>
    %cst_76 = arith.constant 1.000000e+00 : f32
    %356 = vector.broadcast %cst_76 : f32 to vector<1x32xf32>
    %357 = arith.subf %355, %356 : vector<1x32xf32>
    %358 = vector.extract_strided_slice %350 {offsets = [0, 96], sizes = [1, 32], strides = [1, 1]} : vector<1x128xf32> to vector<1x32xf32>
    %359 = arith.mulf %352, %317 : vector<1x32xf32>
    %360 = arith.mulf %351, %357 : vector<1x32xf32>
    %361 = arith.addf %359, %360 : vector<1x32xf32>
    %362 = math.tanh %361 : vector<1x32xf32>
    %363 = arith.mulf %358, %362 : vector<1x32xf32>
    %364 = tpu.concatenate %341, %363 in 0 : vector<1x32xf32>, vector<1x32xf32> -> vector<2x32xf32>
    %365 = arith.truncf %364 : vector<2x32xf32> to vector<2x32xbf16>
    %c0_77 = arith.constant 0 : index
    %c0_78 = arith.constant 0 : index
    %366 = vector.load %arg8[%c0_77, %c0_78] : memref<32x64xbf16, #tpu.memory_space<vmem>>, vector<32x64xbf16>
    %cst_79 = arith.constant dense<0.000000e+00> : vector<2x64xf32>
    %367 = tpu.matmul %365, %366, %cst_79 {dimension_numbers = #tpu.dot_dimension_numbers<[1], [0], [0], [1], [0, 0, 1, 1], [], []>} : vector<2x32xbf16>, vector<32x64xbf16>, vector<2x64xf32> -> vector<2x64xf32>
    %c0_80 = arith.constant 0 : index
    %c0_81 = arith.constant 0 : index
    %368 = vector.load %arg9[%c0_80, %c0_81] : memref<1x64xf32, #tpu.memory_space<vmem>>, vector<1x64xf32>
    %369 = vector.broadcast %368 : vector<1x64xf32> to vector<2x64xf32>
    %370 = arith.addf %367, %369 : vector<2x64xf32>
    %371 = vector.extract_strided_slice %370 {offsets = [0, 0], sizes = [2, 32], strides = [1, 1]} : vector<2x64xf32> to vector<2x32xf32>
    %372 = vector.extract_strided_slice %370 {offsets = [0, 32], sizes = [2, 32], strides = [1, 1]} : vector<2x64xf32> to vector<2x32xf32>
    %cst_82 = arith.constant 0.000000e+00 : f32
    %373 = vector.broadcast %cst_82 : f32 to vector<2x32xf32>
    %374 = arith.maximumf %372, %373 : vector<2x32xf32>
    %375 = vector.broadcast %cst_82 : f32 to vector<2x32xf32>
    %376 = arith.subf %372, %375 : vector<2x32xf32>
    %377 = arith.cmpf one, %376, %376 : vector<2x32xf32>
    %378 = vector.broadcast %cst_82 : f32 to vector<2x32xf32>
    %379 = arith.addf %372, %378 : vector<2x32xf32>
    %380 = math.absf %376 : vector<2x32xf32>
    %cst_83 = arith.constant 0.000000e+00 : f32
    %381 = vector.broadcast %cst_83 : f32 to vector<2x32xf32>
    %382 = arith.subf %381, %380 : vector<2x32xf32>
    %383 = math.exp %382 : vector<2x32xf32>
    %384 = math.log1p %383 : vector<2x32xf32>
    %385 = arith.addf %374, %384 : vector<2x32xf32>
    %386 = arith.select %377, %379, %385 : vector<2x32xi1>, vector<2x32xf32>
    %c0_84 = arith.constant 0 : index
    %c0_85 = arith.constant 0 : index
    %c0_86 = arith.constant 0 : index
    %387 = vector.load %arg15[%c0_84, %c0_85, %c0_86] : memref<1x2x32xf32, #tpu.memory_space<vmem>>, vector<1x2x32xf32>
    %388 = vector.shape_cast %387 : vector<1x2x32xf32> to vector<2x32xf32>
    %389 = vector.shape_cast %371 : vector<2x32xf32> to vector<1x2x32xf32>
    tpu.vector_store %arg15[%c0_84, %c0_85, %c0_86], %389 {strides = array<i32>} : memref<1x2x32xf32, #tpu.memory_space<vmem>>, vector<1x2x32xf32>,
    %390 = math.log %386 : vector<2x32xf32>
    %c0_87 = arith.constant 0 : index
    %c0_88 = arith.constant 0 : index
    %c0_89 = arith.constant 0 : index
    %391 = vector.load %arg16[%c0_87, %c0_88, %c0_89] : memref<1x2x32xf32, #tpu.memory_space<vmem>>, vector<1x2x32xf32>
    %392 = vector.shape_cast %391 : vector<1x2x32xf32> to vector<2x32xf32>
    %393 = vector.shape_cast %390 : vector<2x32xf32> to vector<1x2x32xf32>
    tpu.vector_store %arg16[%c0_87, %c0_88, %c0_89], %393 {strides = array<i32>} : memref<1x2x32xf32, #tpu.memory_space<vmem>>, vector<1x2x32xf32>,
    %c0_90 = arith.constant 0 : index
    %c0_91 = arith.constant 0 : index
    %c0_92 = arith.constant 0 : index
    %394 = vector.load %arg2[%c0_90, %c0_91, %c0_92] : memref<1x2x32xf32, #tpu.memory_space<vmem>>, vector<1x2x32xf32>
    %395 = vector.shape_cast %394 : vector<1x2x32xf32> to vector<2x32xf32>
    %396 = math.sqrt %386 : vector<2x32xf32>
    %397 = arith.mulf %395, %396 : vector<2x32xf32>
    %398 = arith.addf %371, %397 : vector<2x32xf32>
    %c0_93 = arith.constant 0 : index
    %c0_94 = arith.constant 0 : index
    %399 = vector.load %arg10[%c0_93, %c0_94] : memref<64x128xbf16, #tpu.memory_space<vmem>>, vector<64x128xbf16>
    %c0_95 = arith.constant 0 : index
    %c0_96 = arith.constant 0 : index
    %400 = vector.load %arg11[%c0_95, %c0_96] : memref<1x128xf32, #tpu.memory_space<vmem>>, vector<1x128xf32>
    %c0_97 = arith.constant 0 : index
    %c0_98 = arith.constant 0 : index
    %401 = vector.load %arg12[%c0_97, %c0_98] : memref<1x128xf32, #tpu.memory_space<vmem>>, vector<1x128xf32>
    %c0_99 = arith.constant 0 : index
    %c0_100 = arith.constant 0 : index
    %402 = vector.load %arg13[%c0_99, %c0_100] : memref<64x128xbf16, #tpu.memory_space<vmem>>, vector<64x128xbf16>
    %c0_101 = arith.constant 0 : index
    %c0_102 = arith.constant 0 : index
    %403 = vector.load %arg14[%c0_101, %c0_102] : memref<1x128xf32, #tpu.memory_space<vmem>>, vector<1x128xf32>
    %404 = vector.extract_strided_slice %398 {offsets = [0, 0], sizes = [1, 32], strides = [1, 1]} : vector<2x32xf32> to vector<1x32xf32>
    %405 = vector.extract_strided_slice %398 {offsets = [1, 0], sizes = [1, 32], strides = [1, 1]} : vector<2x32xf32> to vector<1x32xf32>
    %406 = tpu.concatenate %11, %404 in 1 : vector<1x32xf32>, vector<1x32xf32> -> vector<1x64xf32>
    %407 = arith.truncf %406 : vector<1x64xf32> to vector<1x64xbf16>
    %cst_103 = arith.constant dense<0.000000e+00> : vector<1x128xf32>
    %408 = tpu.matmul %407, %399, %cst_103 {dimension_numbers = #tpu.dot_dimension_numbers<[1], [0], [0], [1], [0, 0, 1, 1], [], []>} : vector<1x64xbf16>, vector<64x128xbf16>, vector<1x128xf32> -> vector<1x128xf32>
    %409 = arith.addf %408, %400 : vector<1x128xf32>
    %410 = arith.negf %409 : vector<1x128xf32>
    %411 = math.exp %410 : vector<1x128xf32>
    %cst_104 = arith.constant 1.000000e+00 : f32
    %412 = vector.broadcast %cst_104 : f32 to vector<1x128xf32>
    %413 = arith.addf %412, %411 : vector<1x128xf32>
    %414 = arith.divf %412, %413 : vector<1x128xf32>
    %415 = vector.extract_strided_slice %414 {offsets = [0, 0], sizes = [1, 32], strides = [1, 1]} : vector<1x128xf32> to vector<1x32xf32>
    %416 = vector.extract_strided_slice %414 {offsets = [0, 32], sizes = [1, 32], strides = [1, 1]} : vector<1x128xf32> to vector<1x32xf32>
    %417 = vector.extract_strided_slice %414 {offsets = [0, 64], sizes = [1, 32], strides = [1, 1]} : vector<1x128xf32> to vector<1x32xf32>
    %cst_105 = arith.constant 2.000000e+00 : f32
    %418 = vector.broadcast %cst_105 : f32 to vector<1x32xf32>
    %419 = arith.mulf %418, %417 : vector<1x32xf32>
    %cst_106 = arith.constant 1.000000e+00 : f32
    %420 = vector.broadcast %cst_106 : f32 to vector<1x32xf32>
    %421 = arith.subf %419, %420 : vector<1x32xf32>
    %422 = vector.extract_strided_slice %414 {offsets = [0, 96], sizes = [1, 32], strides = [1, 1]} : vector<1x128xf32> to vector<1x32xf32>
    %423 = arith.mulf %416, %339 : vector<1x32xf32>
    %424 = arith.mulf %415, %421 : vector<1x32xf32>
    %425 = arith.addf %423, %424 : vector<1x32xf32>
    %426 = math.tanh %425 : vector<1x32xf32>
    %427 = arith.mulf %422, %426 : vector<1x32xf32>
    %428 = tpu.concatenate %427, %405 in 1 : vector<1x32xf32>, vector<1x32xf32> -> vector<1x64xf32>
    %429 = arith.truncf %428 : vector<1x64xf32> to vector<1x64xbf16>
    %cst_107 = arith.constant dense<0.000000e+00> : vector<1x128xf32>
    %430 = tpu.matmul %429, %402, %cst_107 {dimension_numbers = #tpu.dot_dimension_numbers<[1], [0], [0], [1], [0, 0, 1, 1], [], []>} : vector<1x64xbf16>, vector<64x128xbf16>, vector<1x128xf32> -> vector<1x128xf32>
    %431 = arith.addf %430, %403 : vector<1x128xf32>
    %432 = arith.negf %431 : vector<1x128xf32>
    %433 = math.exp %432 : vector<1x128xf32>
    %cst_108 = arith.constant 1.000000e+00 : f32
    %434 = vector.broadcast %cst_108 : f32 to vector<1x128xf32>
    %435 = arith.addf %434, %433 : vector<1x128xf32>
    %436 = arith.divf %434, %435 : vector<1x128xf32>
    %437 = vector.extract_strided_slice %436 {offsets = [0, 0], sizes = [1, 32], strides = [1, 1]} : vector<1x128xf32> to vector<1x32xf32>
    %438 = vector.extract_strided_slice %436 {offsets = [0, 32], sizes = [1, 32], strides = [1, 1]} : vector<1x128xf32> to vector<1x32xf32>
    %439 = vector.extract_strided_slice %436 {offsets = [0, 64], sizes = [1, 32], strides = [1, 1]} : vector<1x128xf32> to vector<1x32xf32>
    %cst_109 = arith.constant 2.000000e+00 : f32
    %440 = vector.broadcast %cst_109 : f32 to vector<1x32xf32>
    %441 = arith.mulf %440, %439 : vector<1x32xf32>
    %cst_110 = arith.constant 1.000000e+00 : f32
    %442 = vector.broadcast %cst_110 : f32 to vector<1x32xf32>
    %443 = arith.subf %441, %442 : vector<1x32xf32>
    %444 = vector.extract_strided_slice %436 {offsets = [0, 96], sizes = [1, 32], strides = [1, 1]} : vector<1x128xf32> to vector<1x32xf32>
    %445 = arith.mulf %438, %361 : vector<1x32xf32>
    %446 = arith.mulf %437, %443 : vector<1x32xf32>
    %447 = arith.addf %445, %446 : vector<1x32xf32>
    %448 = math.tanh %447 : vector<1x32xf32>
    %449 = arith.mulf %444, %448 : vector<1x32xf32>
    %c0_111 = arith.constant 0 : index
    %c7 = arith.constant 7 : index
    %c0_112 = arith.constant 0 : index
    %450 = vector.load %arg17[%c0_111, %c7, %c0_112] : memref<1x8x32xf32, #tpu.memory_space<vmem>>, vector<1x1x32xf32>
    %451 = vector.shape_cast %450 : vector<1x1x32xf32> to vector<1x32xf32>
    %452 = vector.shape_cast %449 : vector<1x32xf32> to vector<1x1x32xf32>
    tpu.vector_store %arg17[%c0_111, %c7, %c0_112], %452 {strides = array<i32>} : memref<1x8x32xf32, #tpu.memory_space<vmem>>, vector<1x1x32xf32>,
    %453 = tpu.concatenate %449, %427 in 1 : vector<1x32xf32>, vector<1x32xf32> -> vector<1x64xf32>
    %454 = arith.truncf %453 : vector<1x64xf32> to vector<1x64xbf16>
    %cst_113 = arith.constant dense<0.000000e+00> : vector<1x128xf32>
    %455 = tpu.matmul %454, %399, %cst_113 {dimension_numbers = #tpu.dot_dimension_numbers<[1], [0], [0], [1], [0, 0, 1, 1], [], []>} : vector<1x64xbf16>, vector<64x128xbf16>, vector<1x128xf32> -> vector<1x128xf32>
    %456 = arith.addf %455, %401 : vector<1x128xf32>
    %457 = arith.negf %456 : vector<1x128xf32>
    %458 = math.exp %457 : vector<1x128xf32>
    %cst_114 = arith.constant 1.000000e+00 : f32
    %459 = vector.broadcast %cst_114 : f32 to vector<1x128xf32>
    %460 = arith.addf %459, %458 : vector<1x128xf32>
    %461 = arith.divf %459, %460 : vector<1x128xf32>
    %462 = vector.extract_strided_slice %461 {offsets = [0, 0], sizes = [1, 32], strides = [1, 1]} : vector<1x128xf32> to vector<1x32xf32>
    %463 = vector.extract_strided_slice %461 {offsets = [0, 32], sizes = [1, 32], strides = [1, 1]} : vector<1x128xf32> to vector<1x32xf32>
    %464 = vector.extract_strided_slice %461 {offsets = [0, 64], sizes = [1, 32], strides = [1, 1]} : vector<1x128xf32> to vector<1x32xf32>
    %cst_115 = arith.constant 2.000000e+00 : f32
    %465 = vector.broadcast %cst_115 : f32 to vector<1x32xf32>
    %466 = arith.mulf %465, %464 : vector<1x32xf32>
    %cst_116 = arith.constant 1.000000e+00 : f32
    %467 = vector.broadcast %cst_116 : f32 to vector<1x32xf32>
    %468 = arith.subf %466, %467 : vector<1x32xf32>
    %469 = vector.extract_strided_slice %461 {offsets = [0, 96], sizes = [1, 32], strides = [1, 1]} : vector<1x128xf32> to vector<1x32xf32>
    %470 = arith.mulf %463, %425 : vector<1x32xf32>
    %471 = arith.mulf %462, %468 : vector<1x32xf32>
    %472 = arith.addf %470, %471 : vector<1x32xf32>
    %473 = math.tanh %472 : vector<1x32xf32>
    %474 = arith.mulf %469, %473 : vector<1x32xf32>
    %475 = tpu.concatenate %474, %449 in 1 : vector<1x32xf32>, vector<1x32xf32> -> vector<1x64xf32>
    %476 = arith.truncf %475 : vector<1x64xf32> to vector<1x64xbf16>
    %cst_117 = arith.constant dense<0.000000e+00> : vector<1x128xf32>
    %477 = tpu.matmul %476, %402, %cst_117 {dimension_numbers = #tpu.dot_dimension_numbers<[1], [0], [0], [1], [0, 0, 1, 1], [], []>} : vector<1x64xbf16>, vector<64x128xbf16>, vector<1x128xf32> -> vector<1x128xf32>
    %478 = arith.addf %477, %403 : vector<1x128xf32>
    %479 = arith.negf %478 : vector<1x128xf32>
    %480 = math.exp %479 : vector<1x128xf32>
    %cst_118 = arith.constant 1.000000e+00 : f32
    %481 = vector.broadcast %cst_118 : f32 to vector<1x128xf32>
    %482 = arith.addf %481, %480 : vector<1x128xf32>
    %483 = arith.divf %481, %482 : vector<1x128xf32>
    %484 = vector.extract_strided_slice %483 {offsets = [0, 0], sizes = [1, 32], strides = [1, 1]} : vector<1x128xf32> to vector<1x32xf32>
    %485 = vector.extract_strided_slice %483 {offsets = [0, 32], sizes = [1, 32], strides = [1, 1]} : vector<1x128xf32> to vector<1x32xf32>
    %486 = vector.extract_strided_slice %483 {offsets = [0, 64], sizes = [1, 32], strides = [1, 1]} : vector<1x128xf32> to vector<1x32xf32>
    %cst_119 = arith.constant 2.000000e+00 : f32
    %487 = vector.broadcast %cst_119 : f32 to vector<1x32xf32>
    %488 = arith.mulf %487, %486 : vector<1x32xf32>
    %cst_120 = arith.constant 1.000000e+00 : f32
    %489 = vector.broadcast %cst_120 : f32 to vector<1x32xf32>
    %490 = arith.subf %488, %489 : vector<1x32xf32>
    %491 = vector.extract_strided_slice %483 {offsets = [0, 96], sizes = [1, 32], strides = [1, 1]} : vector<1x128xf32> to vector<1x32xf32>
    %492 = arith.mulf %485, %447 : vector<1x32xf32>
    %493 = arith.mulf %484, %490 : vector<1x32xf32>
    %494 = arith.addf %492, %493 : vector<1x32xf32>
    %495 = math.tanh %494 : vector<1x32xf32>
    %496 = arith.mulf %491, %495 : vector<1x32xf32>
    %c0_121 = arith.constant 0 : index
    %c6 = arith.constant 6 : index
    %c0_122 = arith.constant 0 : index
    %497 = vector.load %arg17[%c0_121, %c6, %c0_122] : memref<1x8x32xf32, #tpu.memory_space<vmem>>, vector<1x1x32xf32>
    %498 = vector.shape_cast %497 : vector<1x1x32xf32> to vector<1x32xf32>
    %499 = vector.shape_cast %496 : vector<1x32xf32> to vector<1x1x32xf32>
    tpu.vector_store %arg17[%c0_121, %c6, %c0_122], %499 {strides = array<i32>} : memref<1x8x32xf32, #tpu.memory_space<vmem>>, vector<1x1x32xf32>,
    %500 = tpu.concatenate %496, %474 in 1 : vector<1x32xf32>, vector<1x32xf32> -> vector<1x64xf32>
    %501 = arith.truncf %500 : vector<1x64xf32> to vector<1x64xbf16>
    %cst_123 = arith.constant dense<0.000000e+00> : vector<1x128xf32>
    %502 = tpu.matmul %501, %399, %cst_123 {dimension_numbers = #tpu.dot_dimension_numbers<[1], [0], [0], [1], [0, 0, 1, 1], [], []>} : vector<1x64xbf16>, vector<64x128xbf16>, vector<1x128xf32> -> vector<1x128xf32>
    %503 = arith.addf %502, %401 : vector<1x128xf32>
    %504 = arith.negf %503 : vector<1x128xf32>
    %505 = math.exp %504 : vector<1x128xf32>
    %cst_124 = arith.constant 1.000000e+00 : f32
    %506 = vector.broadcast %cst_124 : f32 to vector<1x128xf32>
    %507 = arith.addf %506, %505 : vector<1x128xf32>
    %508 = arith.divf %506, %507 : vector<1x128xf32>
    %509 = vector.extract_strided_slice %508 {offsets = [0, 0], sizes = [1, 32], strides = [1, 1]} : vector<1x128xf32> to vector<1x32xf32>
    %510 = vector.extract_strided_slice %508 {offsets = [0, 32], sizes = [1, 32], strides = [1, 1]} : vector<1x128xf32> to vector<1x32xf32>
    %511 = vector.extract_strided_slice %508 {offsets = [0, 64], sizes = [1, 32], strides = [1, 1]} : vector<1x128xf32> to vector<1x32xf32>
    %cst_125 = arith.constant 2.000000e+00 : f32
    %512 = vector.broadcast %cst_125 : f32 to vector<1x32xf32>
    %513 = arith.mulf %512, %511 : vector<1x32xf32>
    %cst_126 = arith.constant 1.000000e+00 : f32
    %514 = vector.broadcast %cst_126 : f32 to vector<1x32xf32>
    %515 = arith.subf %513, %514 : vector<1x32xf32>
    %516 = vector.extract_strided_slice %508 {offsets = [0, 96], sizes = [1, 32], strides = [1, 1]} : vector<1x128xf32> to vector<1x32xf32>
    %517 = arith.mulf %510, %472 : vector<1x32xf32>
    %518 = arith.mulf %509, %515 : vector<1x32xf32>
    %519 = arith.addf %517, %518 : vector<1x32xf32>
    %520 = math.tanh %519 : vector<1x32xf32>
    %521 = arith.mulf %516, %520 : vector<1x32xf32>
    %522 = tpu.concatenate %521, %496 in 1 : vector<1x32xf32>, vector<1x32xf32> -> vector<1x64xf32>
    %523 = arith.truncf %522 : vector<1x64xf32> to vector<1x64xbf16>
    %cst_127 = arith.constant dense<0.000000e+00> : vector<1x128xf32>
    %524 = tpu.matmul %523, %402, %cst_127 {dimension_numbers = #tpu.dot_dimension_numbers<[1], [0], [0], [1], [0, 0, 1, 1], [], []>} : vector<1x64xbf16>, vector<64x128xbf16>, vector<1x128xf32> -> vector<1x128xf32>
    %525 = arith.addf %524, %403 : vector<1x128xf32>
    %526 = arith.negf %525 : vector<1x128xf32>
    %527 = math.exp %526 : vector<1x128xf32>
    %cst_128 = arith.constant 1.000000e+00 : f32
    %528 = vector.broadcast %cst_128 : f32 to vector<1x128xf32>
    %529 = arith.addf %528, %527 : vector<1x128xf32>
    %530 = arith.divf %528, %529 : vector<1x128xf32>
    %531 = vector.extract_strided_slice %530 {offsets = [0, 0], sizes = [1, 32], strides = [1, 1]} : vector<1x128xf32> to vector<1x32xf32>
    %532 = vector.extract_strided_slice %530 {offsets = [0, 32], sizes = [1, 32], strides = [1, 1]} : vector<1x128xf32> to vector<1x32xf32>
    %533 = vector.extract_strided_slice %530 {offsets = [0, 64], sizes = [1, 32], strides = [1, 1]} : vector<1x128xf32> to vector<1x32xf32>
    %cst_129 = arith.constant 2.000000e+00 : f32
    %534 = vector.broadcast %cst_129 : f32 to vector<1x32xf32>
    %535 = arith.mulf %534, %533 : vector<1x32xf32>
    %cst_130 = arith.constant 1.000000e+00 : f32
    %536 = vector.broadcast %cst_130 : f32 to vector<1x32xf32>
    %537 = arith.subf %535, %536 : vector<1x32xf32>
    %538 = vector.extract_strided_slice %530 {offsets = [0, 96], sizes = [1, 32], strides = [1, 1]} : vector<1x128xf32> to vector<1x32xf32>
    %539 = arith.mulf %532, %494 : vector<1x32xf32>
    %540 = arith.mulf %531, %537 : vector<1x32xf32>
    %541 = arith.addf %539, %540 : vector<1x32xf32>
    %542 = math.tanh %541 : vector<1x32xf32>
    %543 = arith.mulf %538, %542 : vector<1x32xf32>
    %c0_131 = arith.constant 0 : index
    %c5 = arith.constant 5 : index
    %c0_132 = arith.constant 0 : index
    %544 = vector.load %arg17[%c0_131, %c5, %c0_132] : memref<1x8x32xf32, #tpu.memory_space<vmem>>, vector<1x1x32xf32>
    %545 = vector.shape_cast %544 : vector<1x1x32xf32> to vector<1x32xf32>
    %546 = vector.shape_cast %543 : vector<1x32xf32> to vector<1x1x32xf32>
    tpu.vector_store %arg17[%c0_131, %c5, %c0_132], %546 {strides = array<i32>} : memref<1x8x32xf32, #tpu.memory_space<vmem>>, vector<1x1x32xf32>,
    %547 = tpu.concatenate %543, %521 in 1 : vector<1x32xf32>, vector<1x32xf32> -> vector<1x64xf32>
    %548 = arith.truncf %547 : vector<1x64xf32> to vector<1x64xbf16>
    %cst_133 = arith.constant dense<0.000000e+00> : vector<1x128xf32>
    %549 = tpu.matmul %548, %399, %cst_133 {dimension_numbers = #tpu.dot_dimension_numbers<[1], [0], [0], [1], [0, 0, 1, 1], [], []>} : vector<1x64xbf16>, vector<64x128xbf16>, vector<1x128xf32> -> vector<1x128xf32>
    %550 = arith.addf %549, %401 : vector<1x128xf32>
    %551 = arith.negf %550 : vector<1x128xf32>
    %552 = math.exp %551 : vector<1x128xf32>
    %cst_134 = arith.constant 1.000000e+00 : f32
    %553 = vector.broadcast %cst_134 : f32 to vector<1x128xf32>
    %554 = arith.addf %553, %552 : vector<1x128xf32>
    %555 = arith.divf %553, %554 : vector<1x128xf32>
    %556 = vector.extract_strided_slice %555 {offsets = [0, 0], sizes = [1, 32], strides = [1, 1]} : vector<1x128xf32> to vector<1x32xf32>
    %557 = vector.extract_strided_slice %555 {offsets = [0, 32], sizes = [1, 32], strides = [1, 1]} : vector<1x128xf32> to vector<1x32xf32>
    %558 = vector.extract_strided_slice %555 {offsets = [0, 64], sizes = [1, 32], strides = [1, 1]} : vector<1x128xf32> to vector<1x32xf32>
    %cst_135 = arith.constant 2.000000e+00 : f32
    %559 = vector.broadcast %cst_135 : f32 to vector<1x32xf32>
    %560 = arith.mulf %559, %558 : vector<1x32xf32>
    %cst_136 = arith.constant 1.000000e+00 : f32
    %561 = vector.broadcast %cst_136 : f32 to vector<1x32xf32>
    %562 = arith.subf %560, %561 : vector<1x32xf32>
    %563 = vector.extract_strided_slice %555 {offsets = [0, 96], sizes = [1, 32], strides = [1, 1]} : vector<1x128xf32> to vector<1x32xf32>
    %564 = arith.mulf %557, %519 : vector<1x32xf32>
    %565 = arith.mulf %556, %562 : vector<1x32xf32>
    %566 = arith.addf %564, %565 : vector<1x32xf32>
    %567 = math.tanh %566 : vector<1x32xf32>
    %568 = arith.mulf %563, %567 : vector<1x32xf32>
    %569 = tpu.concatenate %568, %543 in 1 : vector<1x32xf32>, vector<1x32xf32> -> vector<1x64xf32>
    %570 = arith.truncf %569 : vector<1x64xf32> to vector<1x64xbf16>
    %cst_137 = arith.constant dense<0.000000e+00> : vector<1x128xf32>
    %571 = tpu.matmul %570, %402, %cst_137 {dimension_numbers = #tpu.dot_dimension_numbers<[1], [0], [0], [1], [0, 0, 1, 1], [], []>} : vector<1x64xbf16>, vector<64x128xbf16>, vector<1x128xf32> -> vector<1x128xf32>
    %572 = arith.addf %571, %403 : vector<1x128xf32>
    %573 = arith.negf %572 : vector<1x128xf32>
    %574 = math.exp %573 : vector<1x128xf32>
    %cst_138 = arith.constant 1.000000e+00 : f32
    %575 = vector.broadcast %cst_138 : f32 to vector<1x128xf32>
    %576 = arith.addf %575, %574 : vector<1x128xf32>
    %577 = arith.divf %575, %576 : vector<1x128xf32>
    %578 = vector.extract_strided_slice %577 {offsets = [0, 0], sizes = [1, 32], strides = [1, 1]} : vector<1x128xf32> to vector<1x32xf32>
    %579 = vector.extract_strided_slice %577 {offsets = [0, 32], sizes = [1, 32], strides = [1, 1]} : vector<1x128xf32> to vector<1x32xf32>
    %580 = vector.extract_strided_slice %577 {offsets = [0, 64], sizes = [1, 32], strides = [1, 1]} : vector<1x128xf32> to vector<1x32xf32>
    %cst_139 = arith.constant 2.000000e+00 : f32
    %581 = vector.broadcast %cst_139 : f32 to vector<1x32xf32>
    %582 = arith.mulf %581, %580 : vector<1x32xf32>
    %cst_140 = arith.constant 1.000000e+00 : f32
    %583 = vector.broadcast %cst_140 : f32 to vector<1x32xf32>
    %584 = arith.subf %582, %583 : vector<1x32xf32>
    %585 = vector.extract_strided_slice %577 {offsets = [0, 96], sizes = [1, 32], strides = [1, 1]} : vector<1x128xf32> to vector<1x32xf32>
    %586 = arith.mulf %579, %541 : vector<1x32xf32>
    %587 = arith.mulf %578, %584 : vector<1x32xf32>
    %588 = arith.addf %586, %587 : vector<1x32xf32>
    %589 = math.tanh %588 : vector<1x32xf32>
    %590 = arith.mulf %585, %589 : vector<1x32xf32>
    %c0_141 = arith.constant 0 : index
    %c4 = arith.constant 4 : index
    %c0_142 = arith.constant 0 : index
    %591 = vector.load %arg17[%c0_141, %c4, %c0_142] : memref<1x8x32xf32, #tpu.memory_space<vmem>>, vector<1x1x32xf32>
    %592 = vector.shape_cast %591 : vector<1x1x32xf32> to vector<1x32xf32>
    %593 = vector.shape_cast %590 : vector<1x32xf32> to vector<1x1x32xf32>
    tpu.vector_store %arg17[%c0_141, %c4, %c0_142], %593 {strides = array<i32>} : memref<1x8x32xf32, #tpu.memory_space<vmem>>, vector<1x1x32xf32>,
    %594 = tpu.concatenate %590, %568 in 1 : vector<1x32xf32>, vector<1x32xf32> -> vector<1x64xf32>
    %595 = arith.truncf %594 : vector<1x64xf32> to vector<1x64xbf16>
    %cst_143 = arith.constant dense<0.000000e+00> : vector<1x128xf32>
    %596 = tpu.matmul %595, %399, %cst_143 {dimension_numbers = #tpu.dot_dimension_numbers<[1], [0], [0], [1], [0, 0, 1, 1], [], []>} : vector<1x64xbf16>, vector<64x128xbf16>, vector<1x128xf32> -> vector<1x128xf32>
    %597 = arith.addf %596, %401 : vector<1x128xf32>
    %598 = arith.negf %597 : vector<1x128xf32>
    %599 = math.exp %598 : vector<1x128xf32>
    %cst_144 = arith.constant 1.000000e+00 : f32
    %600 = vector.broadcast %cst_144 : f32 to vector<1x128xf32>
    %601 = arith.addf %600, %599 : vector<1x128xf32>
    %602 = arith.divf %600, %601 : vector<1x128xf32>
    %603 = vector.extract_strided_slice %602 {offsets = [0, 0], sizes = [1, 32], strides = [1, 1]} : vector<1x128xf32> to vector<1x32xf32>
    %604 = vector.extract_strided_slice %602 {offsets = [0, 32], sizes = [1, 32], strides = [1, 1]} : vector<1x128xf32> to vector<1x32xf32>
    %605 = vector.extract_strided_slice %602 {offsets = [0, 64], sizes = [1, 32], strides = [1, 1]} : vector<1x128xf32> to vector<1x32xf32>
    %cst_145 = arith.constant 2.000000e+00 : f32
    %606 = vector.broadcast %cst_145 : f32 to vector<1x32xf32>
    %607 = arith.mulf %606, %605 : vector<1x32xf32>
    %cst_146 = arith.constant 1.000000e+00 : f32
    %608 = vector.broadcast %cst_146 : f32 to vector<1x32xf32>
    %609 = arith.subf %607, %608 : vector<1x32xf32>
    %610 = vector.extract_strided_slice %602 {offsets = [0, 96], sizes = [1, 32], strides = [1, 1]} : vector<1x128xf32> to vector<1x32xf32>
    %611 = arith.mulf %604, %566 : vector<1x32xf32>
    %612 = arith.mulf %603, %609 : vector<1x32xf32>
    %613 = arith.addf %611, %612 : vector<1x32xf32>
    %614 = math.tanh %613 : vector<1x32xf32>
    %615 = arith.mulf %610, %614 : vector<1x32xf32>
    %616 = tpu.concatenate %615, %590 in 1 : vector<1x32xf32>, vector<1x32xf32> -> vector<1x64xf32>
    %617 = arith.truncf %616 : vector<1x64xf32> to vector<1x64xbf16>
    %cst_147 = arith.constant dense<0.000000e+00> : vector<1x128xf32>
    %618 = tpu.matmul %617, %402, %cst_147 {dimension_numbers = #tpu.dot_dimension_numbers<[1], [0], [0], [1], [0, 0, 1, 1], [], []>} : vector<1x64xbf16>, vector<64x128xbf16>, vector<1x128xf32> -> vector<1x128xf32>
    %619 = arith.addf %618, %403 : vector<1x128xf32>
    %620 = arith.negf %619 : vector<1x128xf32>
    %621 = math.exp %620 : vector<1x128xf32>
    %cst_148 = arith.constant 1.000000e+00 : f32
    %622 = vector.broadcast %cst_148 : f32 to vector<1x128xf32>
    %623 = arith.addf %622, %621 : vector<1x128xf32>
    %624 = arith.divf %622, %623 : vector<1x128xf32>
    %625 = vector.extract_strided_slice %624 {offsets = [0, 0], sizes = [1, 32], strides = [1, 1]} : vector<1x128xf32> to vector<1x32xf32>
    %626 = vector.extract_strided_slice %624 {offsets = [0, 32], sizes = [1, 32], strides = [1, 1]} : vector<1x128xf32> to vector<1x32xf32>
    %627 = vector.extract_strided_slice %624 {offsets = [0, 64], sizes = [1, 32], strides = [1, 1]} : vector<1x128xf32> to vector<1x32xf32>
    %cst_149 = arith.constant 2.000000e+00 : f32
    %628 = vector.broadcast %cst_149 : f32 to vector<1x32xf32>
    %629 = arith.mulf %628, %627 : vector<1x32xf32>
    %cst_150 = arith.constant 1.000000e+00 : f32
    %630 = vector.broadcast %cst_150 : f32 to vector<1x32xf32>
    %631 = arith.subf %629, %630 : vector<1x32xf32>
    %632 = vector.extract_strided_slice %624 {offsets = [0, 96], sizes = [1, 32], strides = [1, 1]} : vector<1x128xf32> to vector<1x32xf32>
    %633 = arith.mulf %626, %588 : vector<1x32xf32>
    %634 = arith.mulf %625, %631 : vector<1x32xf32>
    %635 = arith.addf %633, %634 : vector<1x32xf32>
    %636 = math.tanh %635 : vector<1x32xf32>
    %637 = arith.mulf %632, %636 : vector<1x32xf32>
    %c0_151 = arith.constant 0 : index
    %c3 = arith.constant 3 : index
    %c0_152 = arith.constant 0 : index
    %638 = vector.load %arg17[%c0_151, %c3, %c0_152] : memref<1x8x32xf32, #tpu.memory_space<vmem>>, vector<1x1x32xf32>
    %639 = vector.shape_cast %638 : vector<1x1x32xf32> to vector<1x32xf32>
    %640 = vector.shape_cast %637 : vector<1x32xf32> to vector<1x1x32xf32>
    tpu.vector_store %arg17[%c0_151, %c3, %c0_152], %640 {strides = array<i32>} : memref<1x8x32xf32, #tpu.memory_space<vmem>>, vector<1x1x32xf32>,
    %641 = tpu.concatenate %637, %615 in 1 : vector<1x32xf32>, vector<1x32xf32> -> vector<1x64xf32>
    %642 = arith.truncf %641 : vector<1x64xf32> to vector<1x64xbf16>
    %cst_153 = arith.constant dense<0.000000e+00> : vector<1x128xf32>
    %643 = tpu.matmul %642, %399, %cst_153 {dimension_numbers = #tpu.dot_dimension_numbers<[1], [0], [0], [1], [0, 0, 1, 1], [], []>} : vector<1x64xbf16>, vector<64x128xbf16>, vector<1x128xf32> -> vector<1x128xf32>
    %644 = arith.addf %643, %401 : vector<1x128xf32>
    %645 = arith.negf %644 : vector<1x128xf32>
    %646 = math.exp %645 : vector<1x128xf32>
    %cst_154 = arith.constant 1.000000e+00 : f32
    %647 = vector.broadcast %cst_154 : f32 to vector<1x128xf32>
    %648 = arith.addf %647, %646 : vector<1x128xf32>
    %649 = arith.divf %647, %648 : vector<1x128xf32>
    %650 = vector.extract_strided_slice %649 {offsets = [0, 0], sizes = [1, 32], strides = [1, 1]} : vector<1x128xf32> to vector<1x32xf32>
    %651 = vector.extract_strided_slice %649 {offsets = [0, 32], sizes = [1, 32], strides = [1, 1]} : vector<1x128xf32> to vector<1x32xf32>
    %652 = vector.extract_strided_slice %649 {offsets = [0, 64], sizes = [1, 32], strides = [1, 1]} : vector<1x128xf32> to vector<1x32xf32>
    %cst_155 = arith.constant 2.000000e+00 : f32
    %653 = vector.broadcast %cst_155 : f32 to vector<1x32xf32>
    %654 = arith.mulf %653, %652 : vector<1x32xf32>
    %cst_156 = arith.constant 1.000000e+00 : f32
    %655 = vector.broadcast %cst_156 : f32 to vector<1x32xf32>
    %656 = arith.subf %654, %655 : vector<1x32xf32>
    %657 = vector.extract_strided_slice %649 {offsets = [0, 96], sizes = [1, 32], strides = [1, 1]} : vector<1x128xf32> to vector<1x32xf32>
    %658 = arith.mulf %651, %613 : vector<1x32xf32>
    %659 = arith.mulf %650, %656 : vector<1x32xf32>
    %660 = arith.addf %658, %659 : vector<1x32xf32>
    %661 = math.tanh %660 : vector<1x32xf32>
    %662 = arith.mulf %657, %661 : vector<1x32xf32>
    %663 = tpu.concatenate %662, %637 in 1 : vector<1x32xf32>, vector<1x32xf32> -> vector<1x64xf32>
    %664 = arith.truncf %663 : vector<1x64xf32> to vector<1x64xbf16>
    %cst_157 = arith.constant dense<0.000000e+00> : vector<1x128xf32>
    %665 = tpu.matmul %664, %402, %cst_157 {dimension_numbers = #tpu.dot_dimension_numbers<[1], [0], [0], [1], [0, 0, 1, 1], [], []>} : vector<1x64xbf16>, vector<64x128xbf16>, vector<1x128xf32> -> vector<1x128xf32>
    %666 = arith.addf %665, %403 : vector<1x128xf32>
    %667 = arith.negf %666 : vector<1x128xf32>
    %668 = math.exp %667 : vector<1x128xf32>
    %cst_158 = arith.constant 1.000000e+00 : f32
    %669 = vector.broadcast %cst_158 : f32 to vector<1x128xf32>
    %670 = arith.addf %669, %668 : vector<1x128xf32>
    %671 = arith.divf %669, %670 : vector<1x128xf32>
    %672 = vector.extract_strided_slice %671 {offsets = [0, 0], sizes = [1, 32], strides = [1, 1]} : vector<1x128xf32> to vector<1x32xf32>
    %673 = vector.extract_strided_slice %671 {offsets = [0, 32], sizes = [1, 32], strides = [1, 1]} : vector<1x128xf32> to vector<1x32xf32>
    %674 = vector.extract_strided_slice %671 {offsets = [0, 64], sizes = [1, 32], strides = [1, 1]} : vector<1x128xf32> to vector<1x32xf32>
    %cst_159 = arith.constant 2.000000e+00 : f32
    %675 = vector.broadcast %cst_159 : f32 to vector<1x32xf32>
    %676 = arith.mulf %675, %674 : vector<1x32xf32>
    %cst_160 = arith.constant 1.000000e+00 : f32
    %677 = vector.broadcast %cst_160 : f32 to vector<1x32xf32>
    %678 = arith.subf %676, %677 : vector<1x32xf32>
    %679 = vector.extract_strided_slice %671 {offsets = [0, 96], sizes = [1, 32], strides = [1, 1]} : vector<1x128xf32> to vector<1x32xf32>
    %680 = arith.mulf %673, %635 : vector<1x32xf32>
    %681 = arith.mulf %672, %678 : vector<1x32xf32>
    %682 = arith.addf %680, %681 : vector<1x32xf32>
    %683 = math.tanh %682 : vector<1x32xf32>
    %684 = arith.mulf %679, %683 : vector<1x32xf32>
    %c0_161 = arith.constant 0 : index
    %c2 = arith.constant 2 : index
    %c0_162 = arith.constant 0 : index
    %685 = vector.load %arg17[%c0_161, %c2, %c0_162] : memref<1x8x32xf32, #tpu.memory_space<vmem>>, vector<1x1x32xf32>
    %686 = vector.shape_cast %685 : vector<1x1x32xf32> to vector<1x32xf32>
    %687 = vector.shape_cast %684 : vector<1x32xf32> to vector<1x1x32xf32>
    tpu.vector_store %arg17[%c0_161, %c2, %c0_162], %687 {strides = array<i32>} : memref<1x8x32xf32, #tpu.memory_space<vmem>>, vector<1x1x32xf32>,
    %688 = tpu.concatenate %684, %662 in 1 : vector<1x32xf32>, vector<1x32xf32> -> vector<1x64xf32>
    %689 = arith.truncf %688 : vector<1x64xf32> to vector<1x64xbf16>
    %cst_163 = arith.constant dense<0.000000e+00> : vector<1x128xf32>
    %690 = tpu.matmul %689, %399, %cst_163 {dimension_numbers = #tpu.dot_dimension_numbers<[1], [0], [0], [1], [0, 0, 1, 1], [], []>} : vector<1x64xbf16>, vector<64x128xbf16>, vector<1x128xf32> -> vector<1x128xf32>
    %691 = arith.addf %690, %401 : vector<1x128xf32>
    %692 = arith.negf %691 : vector<1x128xf32>
    %693 = math.exp %692 : vector<1x128xf32>
    %cst_164 = arith.constant 1.000000e+00 : f32
    %694 = vector.broadcast %cst_164 : f32 to vector<1x128xf32>
    %695 = arith.addf %694, %693 : vector<1x128xf32>
    %696 = arith.divf %694, %695 : vector<1x128xf32>
    %697 = vector.extract_strided_slice %696 {offsets = [0, 0], sizes = [1, 32], strides = [1, 1]} : vector<1x128xf32> to vector<1x32xf32>
    %698 = vector.extract_strided_slice %696 {offsets = [0, 32], sizes = [1, 32], strides = [1, 1]} : vector<1x128xf32> to vector<1x32xf32>
    %699 = vector.extract_strided_slice %696 {offsets = [0, 64], sizes = [1, 32], strides = [1, 1]} : vector<1x128xf32> to vector<1x32xf32>
    %cst_165 = arith.constant 2.000000e+00 : f32
    %700 = vector.broadcast %cst_165 : f32 to vector<1x32xf32>
    %701 = arith.mulf %700, %699 : vector<1x32xf32>
    %cst_166 = arith.constant 1.000000e+00 : f32
    %702 = vector.broadcast %cst_166 : f32 to vector<1x32xf32>
    %703 = arith.subf %701, %702 : vector<1x32xf32>
    %704 = vector.extract_strided_slice %696 {offsets = [0, 96], sizes = [1, 32], strides = [1, 1]} : vector<1x128xf32> to vector<1x32xf32>
    %705 = arith.mulf %698, %660 : vector<1x32xf32>
    %706 = arith.mulf %697, %703 : vector<1x32xf32>
    %707 = arith.addf %705, %706 : vector<1x32xf32>
    %708 = math.tanh %707 : vector<1x32xf32>
    %709 = arith.mulf %704, %708 : vector<1x32xf32>
    %710 = tpu.concatenate %709, %684 in 1 : vector<1x32xf32>, vector<1x32xf32> -> vector<1x64xf32>
    %711 = arith.truncf %710 : vector<1x64xf32> to vector<1x64xbf16>
    %cst_167 = arith.constant dense<0.000000e+00> : vector<1x128xf32>
    %712 = tpu.matmul %711, %402, %cst_167 {dimension_numbers = #tpu.dot_dimension_numbers<[1], [0], [0], [1], [0, 0, 1, 1], [], []>} : vector<1x64xbf16>, vector<64x128xbf16>, vector<1x128xf32> -> vector<1x128xf32>
    %713 = arith.addf %712, %403 : vector<1x128xf32>
    %714 = arith.negf %713 : vector<1x128xf32>
    %715 = math.exp %714 : vector<1x128xf32>
    %cst_168 = arith.constant 1.000000e+00 : f32
    %716 = vector.broadcast %cst_168 : f32 to vector<1x128xf32>
    %717 = arith.addf %716, %715 : vector<1x128xf32>
    %718 = arith.divf %716, %717 : vector<1x128xf32>
    %719 = vector.extract_strided_slice %718 {offsets = [0, 0], sizes = [1, 32], strides = [1, 1]} : vector<1x128xf32> to vector<1x32xf32>
    %720 = vector.extract_strided_slice %718 {offsets = [0, 32], sizes = [1, 32], strides = [1, 1]} : vector<1x128xf32> to vector<1x32xf32>
    %721 = vector.extract_strided_slice %718 {offsets = [0, 64], sizes = [1, 32], strides = [1, 1]} : vector<1x128xf32> to vector<1x32xf32>
    %cst_169 = arith.constant 2.000000e+00 : f32
    %722 = vector.broadcast %cst_169 : f32 to vector<1x32xf32>
    %723 = arith.mulf %722, %721 : vector<1x32xf32>
    %cst_170 = arith.constant 1.000000e+00 : f32
    %724 = vector.broadcast %cst_170 : f32 to vector<1x32xf32>
    %725 = arith.subf %723, %724 : vector<1x32xf32>
    %726 = vector.extract_strided_slice %718 {offsets = [0, 96], sizes = [1, 32], strides = [1, 1]} : vector<1x128xf32> to vector<1x32xf32>
    %727 = arith.mulf %720, %682 : vector<1x32xf32>
    %728 = arith.mulf %719, %725 : vector<1x32xf32>
    %729 = arith.addf %727, %728 : vector<1x32xf32>
    %730 = math.tanh %729 : vector<1x32xf32>
    %731 = arith.mulf %726, %730 : vector<1x32xf32>
    %c0_171 = arith.constant 0 : index
    %c1 = arith.constant 1 : index
    %c0_172 = arith.constant 0 : index
    %732 = vector.load %arg17[%c0_171, %c1, %c0_172] : memref<1x8x32xf32, #tpu.memory_space<vmem>>, vector<1x1x32xf32>
    %733 = vector.shape_cast %732 : vector<1x1x32xf32> to vector<1x32xf32>
    %734 = vector.shape_cast %731 : vector<1x32xf32> to vector<1x1x32xf32>
    tpu.vector_store %arg17[%c0_171, %c1, %c0_172], %734 {strides = array<i32>} : memref<1x8x32xf32, #tpu.memory_space<vmem>>, vector<1x1x32xf32>,
    %735 = tpu.concatenate %731, %709 in 1 : vector<1x32xf32>, vector<1x32xf32> -> vector<1x64xf32>
    %736 = arith.truncf %735 : vector<1x64xf32> to vector<1x64xbf16>
    %cst_173 = arith.constant dense<0.000000e+00> : vector<1x128xf32>
    %737 = tpu.matmul %736, %399, %cst_173 {dimension_numbers = #tpu.dot_dimension_numbers<[1], [0], [0], [1], [0, 0, 1, 1], [], []>} : vector<1x64xbf16>, vector<64x128xbf16>, vector<1x128xf32> -> vector<1x128xf32>
    %738 = arith.addf %737, %401 : vector<1x128xf32>
    %739 = arith.negf %738 : vector<1x128xf32>
    %740 = math.exp %739 : vector<1x128xf32>
    %cst_174 = arith.constant 1.000000e+00 : f32
    %741 = vector.broadcast %cst_174 : f32 to vector<1x128xf32>
    %742 = arith.addf %741, %740 : vector<1x128xf32>
    %743 = arith.divf %741, %742 : vector<1x128xf32>
    %744 = vector.extract_strided_slice %743 {offsets = [0, 0], sizes = [1, 32], strides = [1, 1]} : vector<1x128xf32> to vector<1x32xf32>
    %745 = vector.extract_strided_slice %743 {offsets = [0, 32], sizes = [1, 32], strides = [1, 1]} : vector<1x128xf32> to vector<1x32xf32>
    %746 = vector.extract_strided_slice %743 {offsets = [0, 64], sizes = [1, 32], strides = [1, 1]} : vector<1x128xf32> to vector<1x32xf32>
    %cst_175 = arith.constant 2.000000e+00 : f32
    %747 = vector.broadcast %cst_175 : f32 to vector<1x32xf32>
    %748 = arith.mulf %747, %746 : vector<1x32xf32>
    %cst_176 = arith.constant 1.000000e+00 : f32
    %749 = vector.broadcast %cst_176 : f32 to vector<1x32xf32>
    %750 = arith.subf %748, %749 : vector<1x32xf32>
    %751 = vector.extract_strided_slice %743 {offsets = [0, 96], sizes = [1, 32], strides = [1, 1]} : vector<1x128xf32> to vector<1x32xf32>
    %752 = arith.mulf %745, %707 : vector<1x32xf32>
    %753 = arith.mulf %744, %750 : vector<1x32xf32>
    %754 = arith.addf %752, %753 : vector<1x32xf32>
    %755 = math.tanh %754 : vector<1x32xf32>
    %756 = arith.mulf %751, %755 : vector<1x32xf32>
    %757 = tpu.concatenate %756, %731 in 1 : vector<1x32xf32>, vector<1x32xf32> -> vector<1x64xf32>
    %758 = arith.truncf %757 : vector<1x64xf32> to vector<1x64xbf16>
    %cst_177 = arith.constant dense<0.000000e+00> : vector<1x128xf32>
    %759 = tpu.matmul %758, %402, %cst_177 {dimension_numbers = #tpu.dot_dimension_numbers<[1], [0], [0], [1], [0, 0, 1, 1], [], []>} : vector<1x64xbf16>, vector<64x128xbf16>, vector<1x128xf32> -> vector<1x128xf32>
    %760 = arith.addf %759, %403 : vector<1x128xf32>
    %761 = arith.negf %760 : vector<1x128xf32>
    %762 = math.exp %761 : vector<1x128xf32>
    %cst_178 = arith.constant 1.000000e+00 : f32
    %763 = vector.broadcast %cst_178 : f32 to vector<1x128xf32>
    %764 = arith.addf %763, %762 : vector<1x128xf32>
    %765 = arith.divf %763, %764 : vector<1x128xf32>
    %766 = vector.extract_strided_slice %765 {offsets = [0, 0], sizes = [1, 32], strides = [1, 1]} : vector<1x128xf32> to vector<1x32xf32>
    %767 = vector.extract_strided_slice %765 {offsets = [0, 32], sizes = [1, 32], strides = [1, 1]} : vector<1x128xf32> to vector<1x32xf32>
    %768 = vector.extract_strided_slice %765 {offsets = [0, 64], sizes = [1, 32], strides = [1, 1]} : vector<1x128xf32> to vector<1x32xf32>
    %cst_179 = arith.constant 2.000000e+00 : f32
    %769 = vector.broadcast %cst_179 : f32 to vector<1x32xf32>
    %770 = arith.mulf %769, %768 : vector<1x32xf32>
    %cst_180 = arith.constant 1.000000e+00 : f32
    %771 = vector.broadcast %cst_180 : f32 to vector<1x32xf32>
    %772 = arith.subf %770, %771 : vector<1x32xf32>
    %773 = vector.extract_strided_slice %765 {offsets = [0, 96], sizes = [1, 32], strides = [1, 1]} : vector<1x128xf32> to vector<1x32xf32>
    %774 = arith.mulf %767, %729 : vector<1x32xf32>
    %775 = arith.mulf %766, %772 : vector<1x32xf32>
    %776 = arith.addf %774, %775 : vector<1x32xf32>
    %777 = math.tanh %776 : vector<1x32xf32>
    %778 = arith.mulf %773, %777 : vector<1x32xf32>
    %c0_181 = arith.constant 0 : index
    %c0_182 = arith.constant 0 : index
    %c0_183 = arith.constant 0 : index
    %779 = vector.load %arg17[%c0_181, %c0_182, %c0_183] : memref<1x8x32xf32, #tpu.memory_space<vmem>>, vector<1x1x32xf32>
    %780 = vector.shape_cast %779 : vector<1x1x32xf32> to vector<1x32xf32>
    %781 = vector.shape_cast %778 : vector<1x32xf32> to vector<1x1x32xf32>
    tpu.vector_store %arg17[%c0_181, %c0_182, %c0_183], %781 {strides = array<i32>} : memref<1x8x32xf32, #tpu.memory_space<vmem>>, vector<1x1x32xf32>,
    return
  }
  func.func @transform_0(%arg0: i32) -> (i32, i32, i32) {
    %c0_i32 = arith.constant 0 : i32
    %c0_i32_0 = arith.constant 0 : i32
    %c0_i32_1 = arith.constant 0 : i32
    return %arg0, %c0_i32, %c0_i32_0 : i32, i32, i32
  }
  func.func @transform_1(%arg0: i32) -> (i32, i32, i32) {
    %c0_i32 = arith.constant 0 : i32
    %c0_i32_0 = arith.constant 0 : i32
    %c0_i32_1 = arith.constant 0 : i32
    return %arg0, %c0_i32, %c0_i32_0 : i32, i32, i32
  }
  func.func @transform_2(%arg0: i32) -> (i32, i32) {
    %c0_i32 = arith.constant 0 : i32
    %c0_i32_0 = arith.constant 0 : i32
    %c0_i32_1 = arith.constant 0 : i32
    return %c0_i32, %c0_i32_0 : i32, i32
  }
  func.func @transform_3(%arg0: i32) -> (i32, i32) {
    %c0_i32 = arith.constant 0 : i32
    %c0_i32_0 = arith.constant 0 : i32
    %c0_i32_1 = arith.constant 0 : i32
    return %c0_i32, %c0_i32_0 : i32, i32
  }
  func.func @transform_4(%arg0: i32) -> (i32, i32) {
    %c0_i32 = arith.constant 0 : i32
    %c0_i32_0 = arith.constant 0 : i32
    %c0_i32_1 = arith.constant 0 : i32
    return %c0_i32, %c0_i32_0 : i32, i32
  }
  func.func @transform_5(%arg0: i32) -> (i32, i32) {
    %c0_i32 = arith.constant 0 : i32
    %c0_i32_0 = arith.constant 0 : i32
    %c0_i32_1 = arith.constant 0 : i32
    return %c0_i32, %c0_i32_0 : i32, i32
  }
  func.func @transform_6(%arg0: i32) -> (i32, i32) {
    %c0_i32 = arith.constant 0 : i32
    %c0_i32_0 = arith.constant 0 : i32
    %c0_i32_1 = arith.constant 0 : i32
    return %c0_i32, %c0_i32_0 : i32, i32
  }
  func.func @transform_7(%arg0: i32) -> (i32, i32) {
    %c0_i32 = arith.constant 0 : i32
    %c0_i32_0 = arith.constant 0 : i32
    %c0_i32_1 = arith.constant 0 : i32
    return %c0_i32, %c0_i32_0 : i32, i32
  }
  func.func @transform_8(%arg0: i32) -> (i32, i32) {
    %c0_i32 = arith.constant 0 : i32
    %c0_i32_0 = arith.constant 0 : i32
    %c0_i32_1 = arith.constant 0 : i32
    return %c0_i32, %c0_i32_0 : i32, i32
  }
  func.func @transform_9(%arg0: i32) -> (i32, i32) {
    %c0_i32 = arith.constant 0 : i32
    %c0_i32_0 = arith.constant 0 : i32
    %c0_i32_1 = arith.constant 0 : i32
    return %c0_i32, %c0_i32_0 : i32, i32
  }
  func.func @transform_10(%arg0: i32) -> (i32, i32) {
    %c0_i32 = arith.constant 0 : i32
    %c0_i32_0 = arith.constant 0 : i32
    %c0_i32_1 = arith.constant 0 : i32
    return %c0_i32, %c0_i32_0 : i32, i32
  }
  func.func @transform_11(%arg0: i32) -> (i32, i32) {
    %c0_i32 = arith.constant 0 : i32
    %c0_i32_0 = arith.constant 0 : i32
    %c0_i32_1 = arith.constant 0 : i32
    return %c0_i32, %c0_i32_0 : i32, i32
  }
  func.func @transform_12(%arg0: i32) -> (i32, i32) {
    %c0_i32 = arith.constant 0 : i32
    %c0_i32_0 = arith.constant 0 : i32
    %c0_i32_1 = arith.constant 0 : i32
    return %c0_i32, %c0_i32_0 : i32, i32
  }
  func.func @transform_13(%arg0: i32) -> (i32, i32) {
    %c0_i32 = arith.constant 0 : i32
    %c0_i32_0 = arith.constant 0 : i32
    %c0_i32_1 = arith.constant 0 : i32
    return %c0_i32, %c0_i32_0 : i32, i32
  }
  func.func @transform_14(%arg0: i32) -> (i32, i32, i32) {
    %c0_i32 = arith.constant 0 : i32
    %c0_i32_0 = arith.constant 0 : i32
    %c0_i32_1 = arith.constant 0 : i32
    return %arg0, %c0_i32, %c0_i32_0 : i32, i32, i32
  }
  func.func @transform_15(%arg0: i32) -> (i32, i32, i32) {
    %c0_i32 = arith.constant 0 : i32
    %c0_i32_0 = arith.constant 0 : i32
    %c0_i32_1 = arith.constant 0 : i32
    return %arg0, %c0_i32, %c0_i32_0 : i32, i32, i32
  }
  func.func @transform_16(%arg0: i32) -> (i32, i32, i32) {
    %c0_i32 = arith.constant 0 : i32
    %c0_i32_0 = arith.constant 0 : i32
    %c0_i32_1 = arith.constant 0 : i32
    return %arg0, %c0_i32, %c0_i32_0 : i32, i32, i32
  }
}

</mosaic_0001>

<bundles_post_ra>
// kernel: vae_forward.1
= control target key start
LH: loop header
LB: loop body
LE: loop exit
PB: predicated region body
PF: predicated region fallthrough
CT: control target
= control target key end

     0   :  { %s6499_s0 = inlined_call_operand.hbm [shape: f32[2,8,32], index: 0, kind: input, shape index: {}]   ;;  %s6500_s1 = inlined_call_operand.hbm [shape: f32[2,2,32], index: 1, kind: input, shape index: {}]   ;;  %s6501_s2 = inlined_call_operand.hbm [shape: bf16[32,128], index: 2, kind: input, shape index: {}]   ;;  %s6502_s3 = inlined_call_operand.hbm [shape: bf16[32,128], index: 3, kind: input, shape index: {}]   ;;  %s6503_s4 = inlined_call_operand.vmem [shape: f32[1,128], index: 4, kind: input, shape index: {}]   ;;  %s6504_s5 = inlined_call_operand.hbm [shape: bf16[64,128], index: 5, kind: input, shape index: {}]   ;;  %s6505_s6 = inlined_call_operand.vmem [shape: f32[1,128], index: 6, kind: input, shape index: {}]   ;;  %s6506_s7 = inlined_call_operand.hbm [shape: bf16[32,64], index: 7, kind: input, shape index: {}]   ;;  %s6507_s8 = inlined_call_operand.hbm [shape: f32[1,64], index: 8, kind: input, shape index: {}]   ;;  %s6508_s9 = inlined_call_operand.vmem [shape: bf16[64,128], index: 9, kind: input, shape index: {}]   ;;  %s6509_s10 = inlined_call_operand.vmem [shape: f32[1,128], index: 10, kind: input, shape index: {}]   ;;  %s6510_s11 = inlined_call_operand.vmem [shape: f32[1,128], index: 11, kind: input, shape index: {}]   ;;  %s6511_s12 = inlined_call_operand.hbm [shape: bf16[64,128], index: 12, kind: input, shape index: {}]   ;;  %s6512_s13 = inlined_call_operand.vmem [shape: f32[1,128], index: 13, kind: input, shape index: {}]   ;;  %s6513_s14 = inlined_call_operand.hbm [shape: f32[2,2,32], index: 14, kind: output, shape index: {0}]   ;;  %s6514_s15 = inlined_call_operand.hbm [shape: f32[2,2,32], index: 15, kind: output, shape index: {1}]   ;;  %s6515_s16 = inlined_call_operand.hbm [shape: f32[2,8,32], index: 16, kind: output, shape index: {2}]  }
   0x1   :  { %6530 = sst [smem:[#allocation28_spill]] %s6499_s0 }
   0x2   :  { %6531 = sst [smem:[#allocation29_spill]] %s6500_s1 }
   0x3   :  { %6532 = sst [smem:[#allocation30_spill]] %s6501_s2 }
   0x4   :  { %6533 = sst [smem:[#allocation31_spill]] %s6502_s3 }
   0x5   :  { %6534 = sst [smem:[#allocation32_spill]] %s6503_s4 }
   0x6   :  { %6535 = sst [smem:[#allocation33_spill]] %s6504_s5 }
   0x7   :  { %6536 = sst [smem:[#allocation34_spill]] %s6505_s6 }
   0x8   :  { %6537 = sst [smem:[#allocation35_spill]] %s6506_s7 }
   0x9   :  { %6538 = sst [smem:[#allocation36_spill]] %s6507_s8 }
   0xa   :  { %6539 = sst [smem:[#allocation37_spill]] %s6508_s9 }
   0xb   :  { %6540 = sst [smem:[#allocation38_spill]] %s6509_s10 }
   0xc   :  { %6541 = sst [smem:[#allocation39_spill]] %s6510_s11 }
   0xd   :  { %6542 = sst [smem:[#allocation40_spill]] %s6512_s13 }
   0xe   :  { %6543 = sst [smem:[#allocation41_spill]] %s6513_s14 }
   0xf   :  { %6544 = sst [smem:[#allocation42_spill]] %s6514_s15 }
  0x10   :  { %6545 = sst [smem:[#allocation43_spill]] %s6515_s16 }
  0x11   :  { %22 = vsyncpa [#allocation3], 0 }
  0x12   :  { %24 = vsyncpa [#allocation3 + $0x1], 0 }
  0x13   :  { %25 = vsyncpa [#allocation6], 0 }
  0x14   :  { %27 = vsyncpa [#allocation6 + $0x1], 0 }
  0x15   :  { %28 = vsyncpa [#allocation9], 0 }
  0x16   :  { %29 = vsyncpa [#allocation12], 0 }
  0x17   :  { %30 = vsyncpa [#allocation15], 0 }
  0x18   :  { %31 = vsyncpa [#allocation4], 0 }
  0x19   :  { %33 = vsyncpa [#allocation4 + $0x1], 0 }
  0x1a   :  { %34 = vsyncpa [#allocation18], 0 }
  0x1b   :  { %36 = vsyncpa [#allocation18 + $0x1], 0  ;;  %s5283_s21 = smov 0   ;;  %s5285_s22 = smov 0  }
  0x1c   :  { %s5287_s23 = smov 0   ;;  %s5289_s24 = smov 0  }
  0x1d LB: > { %s5179_s25 = smov [#allocation7]   ;;  %s5304_s27 = sadd.s32 4294967295, %s5177_s24   ;;  %s5177_s24 = sphi %s5289_s24, %s6591_s24   ;;  %s5173_s23 = sphi %s5287_s23, %s6590_s23   ;;  %s5169_s22 = sphi %s5285_s22, %s6589_s22   ;;  %s5165_s21 = sphi %s5283_s21, %s6588_s21  }
  0x1e   : > { %s441_s26 = sshll.u32 %s5179_s25, 4  ;;  %p3771_p0 = scmp.ge.s32.totalorder %s5177_s24, 1  ;;  %s5309_s26 = int_to_ptr.vmem [resolvable:$true] %s441_s26 }
  0x1f   : > { %p6522_p1 = scmp.eq.s32.totalorder %s5304_s27, 0  ;;  %p429_p2 = scmp.lt.s32.totalorder %s5177_s24, 3 }
  0x20   : > { %s5180_s29 = smov [#allocation8]   ;;  %s5181_s17 = smov [#allocation11]  }
  0x21   : > { %p5311_p3 = pnand %p3771_p0, %p429_p2  ;;  %s454_s30 = sshll.u32 %s5180_s29, 4  ;;  %s5324_s30 = int_to_ptr.vmem [resolvable:$true] %s454_s30 }
  0x22   : > { %s486_s18 = sshll.u32 %s5181_s17, 4  ;;  %s6548_s2 = sld [smem:[#allocation30_spill]]  ;;  %s5326_s18 = int_to_ptr.vmem [resolvable:$true] %s486_s18 }
  0x23   : > { %s6546_s28 = scalar_select %p5311_p3, 1, 0 }
  0x24   : > { %p4472_p5 = pneg %p5311_p3 }
  0x26   : > { %p5320_p6 = pnand %p4472_p5, %p6522_p1 }
  0x28   : > { %s4803_s25 = scalar_lea.hbm %s6548_s2, 256  ;;  %p5336_p8 = pneg %p5320_p6 }
  0x29   : > { %p4804_p7 = scmp.ne.s32.totalorder %s6548_s2, %s4803_s25  ;;  %p4810_p11 = scmp.lt.u32.totalorder %s4803_s25, %s6548_s2 }
  0x2b   : > { %p4806_p9 = pnand %p5336_p8, %p4804_p7 }
  0x2d   : > { %p4807_p10 = pneg %p4806_p9 }
  0x2f   : > { %p4812_p12 = pnand %p4810_p11, %p4807_p10 }
  0x31   : > { %4815 = shalt.err (!%p4812_p12)
}
  0x32   : > { %s4816_s14 = scalar_lea.vmem %s5309_s26, 256  ;;  %p4824_p5 = scmp.lt.s32.totalorder %s5309_s26, %s5309_s26 }
  0x33   : > { %p4817_p13 = scmp.ne.s32.totalorder %s5309_s26, %s4816_s14  ;;  %p4825_p4 = scmp.lt.s32.totalorder %s4816_s14, %s4816_s14 }
  0x35   : > { %p4819_p0 = pnand %p4817_p13, %p5336_p8  ;;  %p4826_p7 = por %p4825_p4, %p4824_p5 }
  0x37   : > { %p4820_p2 = pneg %p4819_p0 }
  0x39   : > { %p4827_p9 = pnand %p4826_p7, %p4820_p2 }
  0x3b   : > { %4830 = shalt.err (!%p4827_p9)
}
  0x3c   : > { %s5182_s16 = smov 64   ;;  %s5183_s15 = smov 4  }
  0x3d   : > { %4475 = dma.hbm_to_vmem [thread:$0]  (!%p5320_p6), %s6548_s2, 256, %s5309_s26, [#allocation6], %s5182_s16, %s5182_s16, %s5183_s15  }
  0x3e   : > { %s6550_s3 = sld [smem:[#allocation31_spill]] }
  0x44   : > { %s4831_s14 = scalar_lea.hbm %s6550_s3, 256 }
  0x45   : > { %p4832_p4 = scmp.ne.s32.totalorder %s6550_s3, %s4831_s14  ;;  %p4838_p12 = scmp.lt.u32.totalorder %s4831_s14, %s6550_s3 }
  0x47   : > { %p4834_p10 = pnand %p4832_p4, %p5336_p8 }
  0x49   : > { %p4835_p11 = pneg %p4834_p10 }
  0x4b   : > { %p4840_p13 = pnand %p4838_p12, %p4835_p11 }
  0x4d   : > { %4843 = shalt.err (!%p4840_p13)
}
  0x4e   : > { %s4844_s26 = scalar_lea.vmem %s5324_s30, 256  ;;  %p4852_p7 = scmp.lt.s32.totalorder %s5324_s30, %s5324_s30 }
  0x4f   : > { %p4845_p0 = scmp.ne.s32.totalorder %s5324_s30, %s4844_s26  ;;  %p4853_p9 = scmp.lt.s32.totalorder %s4844_s26, %s4844_s26 }
  0x51   : > { %p4847_p2 = pnand %p4845_p0, %p5336_p8  ;;  %p4854_p4 = por %p4853_p9, %p4852_p7 }
  0x53   : > { %p4848_p5 = pneg %p4847_p2 }
  0x55   : > { %p4855_p10 = pnand %p4854_p4, %p4848_p5 }
  0x57   : > { %4858 = shalt.err (!%p4855_p10)
}
  0x58   : > { %4478 = dma.hbm_to_vmem [thread:$0]  (!%p5320_p6), %s6550_s3, 256, %s5324_s30, [#allocation9], %s5182_s16, %s5182_s16, %s5183_s15  }
  0x59   : > { %s6551_s7 = sld [smem:[#allocation35_spill]] }
  0x5f   : > { %s4859_s19 = scalar_lea.hbm %s6551_s7, 256 }
  0x60   : > { %p4860_p11 = scmp.ne.s32.totalorder %s6551_s7, %s4859_s19  ;;  %p4866_p0 = scmp.lt.u32.totalorder %s4859_s19, %s6551_s7 }
  0x62   : > { %p4862_p12 = pnand %p4860_p11, %p5336_p8 }
  0x64   : > { %p4863_p13 = pneg %p4862_p12 }
  0x66   : > { %p4868_p2 = pnand %p4866_p0, %p4863_p13 }
  0x68   : > { %4871 = shalt.err (!%p4868_p2)
}
  0x69   : > { %s4872_s30 = scalar_lea.vmem %s5326_s18, 256  ;;  %p4880_p4 = scmp.lt.s32.totalorder %s5326_s18, %s5326_s18 }
  0x6a   : > { %p4873_p5 = scmp.ne.s32.totalorder %s5326_s18, %s4872_s30  ;;  %p4881_p10 = scmp.lt.s32.totalorder %s4872_s30, %s4872_s30 }
  0x6c   : > { %p4875_p7 = pnand %p4873_p5, %p5336_p8  ;;  %p4882_p11 = por %p4881_p10, %p4880_p4 }
  0x6e   : > { %p4876_p9 = pneg %p4875_p7 }
  0x70   : > { %p4883_p12 = pnand %p4882_p11, %p4876_p9 }
  0x72   : > { %4886 = shalt.err (!%p4883_p12)
}
  0x73   : > { %4484 = dma.hbm_to_vmem [thread:$0]  (!%p5320_p6), %s6551_s7, 256, %s5326_s18, [#allocation12], %s5182_s16, %s5182_s16, %s5183_s15  }
  0x74   : > { %s5184_s10 = smov [#allocation10]   ;;  %s5185_s13 = smov [#allocation13]  }
  0x75   : > { %s470_s11 = sshll.u32 %s5184_s10, 4  ;;  %s500_s19 = sshll.u32 %s5185_s13, 4  ;;  %s471_s11 = int_to_ptr.vmem [resolvable:$true] %s470_s11  ;;  %s501_s19 = int_to_ptr.vmem [resolvable:$true] %s500_s19 }
  0x76   : > { %s6552_s5 = sld [smem:[#allocation33_spill]] }
  0x7c   : > { %s4887_s17 = scalar_lea.hbm %s6552_s5, 512 }
  0x7d   : > { %p4888_p13 = scmp.ne.s32.totalorder %s6552_s5, %s4887_s17  ;;  %p4894_p5 = scmp.lt.u32.totalorder %s4887_s17, %s6552_s5 }
  0x7f   : > { %p4890_p0 = pnand %p4888_p13, %p5336_p8 }
  0x81   : > { %p4891_p2 = pneg %p4890_p0 }
  0x83   : > { %p4896_p7 = pnand %p4894_p5, %p4891_p2 }
  0x85   : > { %4899 = shalt.err (!%p4896_p7)
}
  0x86   : > { %s4900_s18 = scalar_lea.vmem %s471_s11, 512  ;;  %p4908_p11 = scmp.lt.s32.totalorder %s471_s11, %s471_s11 }
  0x87   : > { %p4901_p9 = scmp.ne.s32.totalorder %s471_s11, %s4900_s18  ;;  %p4909_p12 = scmp.lt.s32.totalorder %s4900_s18, %s4900_s18 }
  0x89   : > { %p4903_p4 = pnand %p4901_p9, %p5336_p8  ;;  %p4910_p1 = por %p4909_p12, %p4908_p11 }
  0x8b   : > { %p4904_p10 = pneg %p4903_p4 }
  0x8d   : > { %p4911_p3 = pnand %p4910_p1, %p4904_p10 }
  0x8f   : > { %4914 = shalt.err (!%p4911_p3)
}
  0x90   : > { %4481 = dma.hbm_to_vmem [thread:$0]  (!%p5320_p6), %s6552_s5, 512, %s471_s11, [#allocation9], %s5182_s16, %s5182_s16, %s5183_s15  }
  0x91   : > { %s6553_s8 = sld [smem:[#allocation36_spill]] }
  0x97   : > { %s4915_s20 = scalar_lea.hbm %s6553_s8, 16 }
  0x98   : > { %p4916_p1 = scmp.ne.s32.totalorder %s6553_s8, %s4915_s20  ;;  %p4922_p0 = scmp.lt.u32.totalorder %s4915_s20, %s6553_s8 }
  0x9a   : > { %p4918_p3 = pnand %p4916_p1, %p5336_p8 }
  0x9c   : > { %p4919_p13 = pneg %p4918_p3 }
  0x9e   : > { %p4924_p2 = pnand %p4922_p0, %p4919_p13 }
  0xa0   : > { %4927 = shalt.err (!%p4924_p2)
}
  0xa1   : > { %s4928_s26 = scalar_lea.vmem %s501_s19, 16  ;;  %s4935_s11 = scalar_lea.vmem %s501_s19, 32 }
  0xa2   : > { %p4929_p5 = scmp.ne.s32.totalorder %s501_s19, %s4928_s26  ;;  %p4936_p4 = scmp.lt.s32.totalorder %s501_s19, %s501_s19 }
  0xa3   : > { %p4937_p10 = scmp.lt.s32.totalorder %s4935_s11, %s4928_s26 }
  0xa4   : > { %p4931_p7 = pnand %p4929_p5, %p5336_p8 }
  0xa5   : > { %p4938_p11 = por %p4937_p10, %p4936_p4 }
  0xa6   : > { %p4932_p9 = pneg %p4931_p7 }
  0xa8   : > { %p4939_p12 = pnand %p4938_p11, %p4932_p9 }
  0xaa   : > { %4942 = shalt.err (!%p4939_p12)
}
  0xab   : > { %4487 = dma.hbm_to_vmem [thread:$0]  (!%p5320_p6), %s6553_s8, 16, %s501_s19, [#allocation12]  }
  0xac   : > { %s5186_s9 = smov [#allocation14]   ;;  %s4943_s25 = scalar_lea.hbm %s6511_s12, 512 }
  0xad   : > { %s519_s10 = sshll.u32 %s5186_s9, 4  ;;  %p4944_p1 = scmp.ne.s32.totalorder %s6511_s12, %s4943_s25  ;;  %s520_s10 = int_to_ptr.vmem [resolvable:$true] %s519_s10 }
  0xae   : > { %p4950_p0 = scmp.lt.u32.totalorder %s4943_s25, %s6511_s12 }
  0xaf   : > { %p4946_p3 = pnand %p4944_p1, %p5336_p8 }
  0xb1   : > { %p4947_p13 = pneg %p4946_p3 }
  0xb3   : > { %p4952_p2 = pnand %p4950_p0, %p4947_p13 }
  0xb5   : > { %4955 = shalt.err (!%p4952_p2)
}
  0xb6   : > { %s4956_s19 = scalar_lea.vmem %s520_s10, 512  ;;  %p4964_p4 = scmp.lt.s32.totalorder %s520_s10, %s520_s10 }
  0xb7   : > { %p4957_p5 = scmp.ne.s32.totalorder %s520_s10, %s4956_s19  ;;  %p4965_p10 = scmp.lt.s32.totalorder %s4956_s19, %s4956_s19 }
  0xb9   : > { %p4959_p7 = pnand %p4957_p5, %p5336_p8  ;;  %p4966_p11 = por %p4965_p10, %p4964_p4 }
  0xbb   : > { %p4960_p9 = pneg %p4959_p7 }
  0xbd   : > { %p4967_p12 = pnand %p4966_p11, %p4960_p9 }
  0xbf   : > { %4970 = shalt.err (!%p4967_p12)
}
  0xc0   : > { %4490 = dma.hbm_to_vmem [thread:$0]  (!%p5320_p6), %s6511_s12, 512, %s520_s10, [#allocation15], %s5182_s16, %s5182_s16, %s5183_s15  }
  0xc1   : > { %s6524_s0 = sadd.s32 4294967294, %s5177_s24   ;;  %s5474_s29 = sadd.s32 1, %s5177_s24  }
  0xc2   : > { %s46_s2 = ssub.s32 %s5177_s24, %s5474_s29  ;;  %s49_s9 = sadd.s32 1, %s5173_s23 }
  0xc3   : > { %p47_p8 = scmp.eq.s32.totalorder %s46_s2, 0  ;;  %p56_p1 = scmp.ne.s32.totalorder %s5173_s23, %s5169_s22 }
  0xc4   : > { %p57_p3 = scmp.eq.s32.totalorder %s5177_s24, 0  ;;  %p62_p13 = scmp.ne.s32.totalorder %s5169_s22, %s5165_s21 }
  0xc5   : > { %s5485_s13 = scalar_select %p47_p8, %s5173_s23, %s49_s9  }
  0xc6   : > { %p5487_p0 = por %p57_p3, %p56_p1  ;;  %p6555_p2 = scmp.eq.s32.totalorder %s5304_s27, 0 }
  0xc7   : > { %p364_p5 = scmp.eq.s32.totalorder %s5304_s27, 1  ;;  %p370_p7 = scmp.eq.s32.totalorder %s6524_s0, 1 }
  0xc8   : > { %p5493_p6 = por %p6555_p2, %p62_p13  ;;  %p4514_p9 = scmp.lt.s32.totalorder %s5177_s24, 2 }
  0xc9   : > { %s5502_s15 = sand.u32 1, %s5173_s23   ;;  %p5504_p4 = por %p364_p5, %p56_p1 }
  0xca   : > { %s6556_s16 = scalar_select %p5493_p6, 1, 0 }
  0xcb   : > { %s6557_s10 = scalar_select %p5504_p4, 1, 0 }
  0xcc   : > { %p5508_p10 = por %p370_p7, %p62_p13  ;;  %s3779_s17 = sshll.u32 %s5502_s15, 3 }
  0xcd   : > { %s3780_s14 = sshll.u32 %s5177_s24, 7  ;;  %s6559_s19 = sld [smem:[#allocation28_spill]] }
  0xce   : > { %s6558_s25 = scalar_select %p5508_p10, 1, 0 }
  0xcf   : > { %s540_s18 = scalar_lea.vmem [#allocation2], %s3779_s17  ;;  %p5523_p11 = pnand %p4514_p9, %p5487_p0 }
  0xd0   : > { %s547_s2 = sshll.u32 %s540_s18, 4  ;;  %s3781_s3 = sshll.u32 %s5502_s15, 1  ;;  %s5519_s2 = int_to_ptr.vmem [resolvable:$true] %s547_s2 }
  0xd1   : > { %s537_s30 = scalar_lea.sflag [#allocation3], %s5502_s15  ;;  %p4973_p8 = pneg %p5523_p11 }
  0xd3   : > { %s5517_s11 = scalar_lea.hbm %s6559_s19, %s3780_s14  ;;  %s4976_s20 = scalar_lea.hbm %s6559_s19, 256 }
  0xd4   : > { %s4971_s14 = scalar_lea.hbm %s5517_s11, 128  ;;  %p4977_p13 = scmp.lt.u32.totalorder %s5517_s11, %s6559_s19 }
  0xd5   : > { %p4972_p12 = scmp.ne.s32.totalorder %s5517_s11, %s4971_s14  ;;  %p4978_p0 = scmp.lt.u32.totalorder %s4976_s20, %s4971_s14 }
  0xd6   : > { %p4980_p5 = scmp.lt.u32.totalorder %s4971_s14, %s5517_s11 }
  0xd7   : > { %p4974_p1 = pnand %p4973_p8, %p4972_p12  ;;  %p4979_p2 = por %p4978_p0, %p4977_p13 }
  0xd9   : > { %p4975_p3 = pneg %p4974_p1  ;;  %p4981_p7 = por %p4980_p5, %p4979_p2 }
  0xdb   : > { %p4982_p9 = pnand %p4981_p7, %p4975_p3 }
  0xdd   : > { %4985 = shalt.err (!%p4982_p9)
}
  0xde   : > { %s4986_s0 = scalar_lea.vmem %s5519_s2, 128  ;;  %s5187_s17 = smov [#allocation2]  }
  0xdf   : > { %p4987_p12 = scmp.ne.s32.totalorder %s5519_s2, %s4986_s0  ;;  %s4991_s26 = sshll.u32 %s5187_s17, 4  ;;  %s4992_s26 = int_to_ptr.vmem [resolvable:$false] %s4991_s26 }
  0xe0   : > { %s4993_s5 = scalar_lea.vmem %s4992_s26, 256  ;;  %p4994_p4 = scmp.lt.s32.totalorder %s5519_s2, %s4992_s26 }
  0xe1   : > { %p4989_p1 = pnand %p4987_p12, %p4973_p8  ;;  %p4995_p13 = scmp.lt.s32.totalorder %s4993_s5, %s4986_s0 }
  0xe3   : > { %p4990_p10 = pneg %p4989_p1  ;;  %p4996_p0 = por %p4995_p13, %p4994_p4 }
  0xe5   : > { %p4997_p2 = pnand %p4996_p0, %p4990_p10 }
  0xe7   : > { %5000 = shalt.err (!%p4997_p2)
}
  0xe8   : > { %4494 = dma.hbm_to_vmem [thread:$0]  (!%p5523_p11), %s5517_s11, 128, %s5519_s2, %s537_s30  }
  0xe9   : > { %s3782_s14 = sshll.u32 %s5177_s24, 5  ;;  %s6561_s1 = sld [smem:[#allocation29_spill]] }
  0xea   : > { %s558_s0 = scalar_lea.vmem [#allocation5], %s3781_s3  ;;  %s6562_s5 = sand.u32 1, %s5177_s24  }
  0xeb   : > { %s565_s26 = sshll.u32 %s558_s0, 4  ;;  %s555_s7 = scalar_lea.sflag [#allocation6], %s6562_s5  ;;  %s566_s26 = int_to_ptr.vmem [resolvable:$true] %s565_s26 }
  0xef   : > { %s5559_s17 = scalar_lea.hbm %s6561_s1, %s3782_s14  ;;  %s5006_s30 = scalar_lea.hbm %s6561_s1, 64 }
  0xf0   : > { %s5001_s8 = scalar_lea.hbm %s5559_s17, 32  ;;  %p5007_p5 = scmp.lt.u32.totalorder %s5559_s17, %s6561_s1 }
  0xf1   : > { %p5002_p4 = scmp.ne.s32.totalorder %s5559_s17, %s5001_s8  ;;  %p5008_p7 = scmp.lt.u32.totalorder %s5006_s30, %s5001_s8 }
  0xf2   : > { %p5010_p12 = scmp.lt.u32.totalorder %s5001_s8, %s5559_s17 }
  0xf3   : > { %p5004_p10 = pnand %p5002_p4, %p4973_p8  ;;  %p5009_p9 = por %p5008_p7, %p5007_p5 }
  0xf5   : > { %p5005_p3 = pneg %p5004_p10  ;;  %p5011_p1 = por %p5010_p12, %p5009_p9 }
  0xf7   : > { %p5012_p13 = pnand %p5011_p1, %p5005_p3 }
  0xf9   : > { %5015 = shalt.err (!%p5012_p13)
}
  0xfa   : > { %s5016_s3 = scalar_lea.vmem %s566_s26, 32  ;;  %s5188_s20 = smov [#allocation5]  }
  0xfb   : > { %p5017_p0 = scmp.ne.s32.totalorder %s566_s26, %s5016_s3  ;;  %s5021_s18 = sshll.u32 %s5188_s20, 4  ;;  %s5022_s18 = int_to_ptr.vmem [resolvable:$false] %s5021_s18 }
  0xfc   : > { %s5023_s0 = scalar_lea.vmem %s5022_s18, 64  ;;  %p5024_p10 = scmp.lt.s32.totalorder %s566_s26, %s5022_s18 }
  0xfd   : > { %p5019_p2 = pnand %p5017_p0, %p4973_p8  ;;  %p5025_p6 = scmp.lt.s32.totalorder %s5023_s0, %s5016_s3 }
  0xff   : > { %p5020_p4 = pneg %p5019_p2  ;;  %p5026_p5 = por %p5025_p6, %p5024_p10 }
 0x101   : > { %p5027_p7 = pnand %p5026_p5, %p5020_p4 }
 0x103   : > { %5030 = shalt.err (!%p5027_p7)
}
 0x104   : > { %4497 = dma.hbm_to_vmem [thread:$0]  (!%p5523_p11), %s5559_s17, 32, %s566_s26, %s555_s7  }
 0x105   : > { %p6563_p3 = scmp.ne.s32.totalorder %s6546_s28, 0 }
 0x106   : > { %s5587_s8 = sand.u32 (!%p6563_p3), 1, %s5169_s22   ;;  %p6564_p6 = scmp.ne.s32.totalorder (!%p6563_p3), %s6556_s16, 0 }
 0x107   : > { %574 = sbr.rel (%p6563_p3) target bundleno = 18953 (0x4a09), region = 76  ;;  %s3784_s5 = sshll.u32 (!%p6563_p3), %s5587_s8, 3 }
 0x108   : > { %s577_s11 = scalar_lea.sflag (!%p6563_p3), [#allocation3], %s5587_s8  ;;  %s5593_s2 = scalar_lea.vmem (!%p6563_p3), [#allocation2], %s3784_s5 }
 0x10e   : > { %5132 = dma.done.wait (%p6564_p6), %s577_s11, 128  }
 0x10f   : > { %5134 = vsyncadd (%p6564_p6), %s577_s11, 4294967168  ;;  %s585_s7 = sand.u32 1, %s5304_s27   ;;  %s5601_s28 = sshll.u32 %s5587_s8, 1 }
 0x110   : > { %s586_s9 = scalar_lea.sflag [#allocation6], %s585_s7  ;;  %s589_s17 = scalar_lea.vmem [#allocation5], %s5601_s28 }
 0x111   : > { %5136 = dma.done.wait (%p6564_p6), %s586_s9, 32  }
 0x112   : > { %5138 = vsyncadd (%p6564_p6), %s586_s9, 4294967264  ;;  %p6565_p11 = scmp.eq.s32.totalorder %s5304_s27, 0 }
 0x114   : > { %5140 = dma.done.wait (%p6565_p11), [#allocation6], 256   ;;  %p6566_p8 = pmov %p6565_p11 }
 0x116   : > { %5142 = vsyncadd (%p6566_p8), [#allocation6], 4294967040  ;;  %p6567_p9 = pmov %p6566_p8 }
 0x117   : > { %p6568_p12 = pmov %p6566_p8 }
 0x118   : > { %5144 = dma.done.wait (%p6567_p9), [#allocation9], 768  }
 0x119   : > { %5146 = vsyncadd (%p6568_p12), [#allocation9], 4294966528  ;;  %p6569_p1 = pmov %p6566_p8 }
 0x11b   : > { %5148 = dma.done.wait (%p6569_p1), [#allocation12], 272   ;;  %p6570_p13 = pmov %p6569_p1 }
 0x11c   : > { %p6571_p0 = pmov %p6569_p1 }
 0x11d   : > { %5150 = vsyncadd (%p6570_p13), [#allocation12], 4294967024 }
 0x11e   : > { %5152 = dma.done.wait (%p6571_p0), [#allocation15], 512   ;;  %p6572_p2 = pmov %p6571_p0 }
 0x11f   : > { %v5189_v0 = vmov 0.0   ;;  %vm5190_vm0 = vmmov 0   ;;  %v4573_v1 = vld [vmem:[#allocation7] sm:$0xff]   ;;  %v5632_v2 = vld [vmem:[#allocation8] sm:$0xff]   ;;  %v4575_v3 = vld [vmem:[#allocation7 + $0x8] sm:$0xff]   ;;  %vm716_vm1 = vcmask 261120  }
 0x120   : > { %5154 = vsyncadd (%p6572_p2), [#allocation15], 4294966784  ;;  %4070 = vmatprep.subr.bf16.mxu0 %v5189_v0  ;;  %4078 = vmatprep.subr.bf16.mxu1 %v5189_v0  ;;  %v5636_v4 = vld [vmem:[#allocation8 + $0x8] sm:$0xff]   ;;  %v5191_v7 = vmov 0   ;;  %s6573_s4 = sld [smem:[#allocation32_spill]]  ;;  %s5192_s30 = smov 64  }
 0x121   : > { %4074 = vmatprep.mubr.msk.bf16.mxu0 %vm5190_vm0, %v5189_v0  ;;  %4082 = vmatprep.mubr.msk.bf16.mxu1 %vm5190_vm0, %v5189_v0  ;;  %v695_v5 = vld [vmem:[%s5593_s2] sm:$0xff]  ;;  %s6527_s15 = smov 32   ;;  %v5663_v30 = vld [vmem:[#allocation10] sm:$0xff]   ;;  %vm871_vm2 = vcmask 523264   ;;  %s6574_s6 = sld [smem:[#allocation34_spill]]  ;;  %vm2083_vm3 = vcmask 1040384  }
 0x122   : > { %4071 = vmatpush3.bf16.msra.mxu0 %v4573_v1  ;;  %4079 = vmatpush3.bf16.msra.mxu1 %v5632_v2  ;;  %v696_v6 = vpack.c.bf16 %v695_v5, %v695_v5  ;;  %v5666_v31 = vld [vmem:[#allocation10 + $0x8] sm:$0xff]   ;;  %v5670_v32 = vld [vmem:[#allocation10 + $0x10] sm:$0xff]   ;;  %v5676_v34 = vld [vmem:[#allocation10 + $0x18] sm:$0xff]   ;;  %vm2173_vm4 = vcmask 254976   ;;  %s6528_s0 = scalar_lea.vmem [#allocation16], %s5601_s28  ;;  %s6575_s9 = sld [smem:[#allocation37_spill]] }
 0x123   : > { %4072 = vmatprep.subr.bf16.mxu0 %v5189_v0  ;;  %4080 = vmatprep.subr.bf16.mxu1 %v5189_v0  ;;  %s5194_s20 = smov 96   ;;  %s6576_s16 = sld [smem:[#allocation38_spill]]  ;;  %vm2422_vm9 = vcmask 253952  }
 0x124   : > { %s6577_s3 = sld [smem:[#allocation40_spill]]  ;;  %s6073_s18 = scalar_lea.vmem [#allocation19], %s3784_s5 }
 0x125   : > { %s669_s14 = scalar_lea.vmem [#allocation17], %s5601_s28  ;;  %s3915_s5 = sshll.u32 %s5304_s27, 5 }
 0x126   : > { %4073 = vmatpush3.bf16.msra.mxu0 %v4575_v3  ;;  %4081 = vmatpush3.bf16.msra.mxu1 %v5636_v4  ;;  %v3795_v8 = vld [vmem:[%s6573_s4] ss:$0 sm:$0xff]  ;;  %s3546_s11 = sshll.u32 %s669_s14, 4  ;;  %s6397_s26 = scalar_lea.sflag [#allocation18], %s585_s7  ;;  %s3547_s11 = int_to_ptr.vmem [resolvable:$true] %s3546_s11 }
 0x127   : > { %4086 = vmatprep.subr.bf16.mxu0 %v5189_v0  ;;  %4098 = vmatprep.subr.bf16.mxu1 %v5189_v0  ;;  %v5704_v42 = vld [vmem:[%s6574_s6] sm:$0x1]  ;;  %p6580_p10 = scmp.ne.s32.totalorder %s6557_s10, 0 }
 0x129   : > { %4075 = vmatmul.mubr.msk.bf16.vlgmr.msra.gmra.mrb[0].mxu0 %vm716_vm1, %v696_v6  ;;  %4083 = vmatmul.mubr.bf16.vlgmr.msra.gmra.mrb[0].mxu1 %v5191_v7 }
 0x12a   : > { %4094 = vmatprep.mubr.msk.bf16.mxu0 %vm5190_vm0, %v5189_v0  ;;  %4099 = vmatpush3.bf16.msra.mxu1 %v5632_v2 }
 0x12b   : > { %4102 = vmatprep.mubr.msk.bf16.mxu1 %vm5190_vm0, %v5189_v0  ;;  %4100 = vmatprep.subr.bf16.mxu1 %v5189_v0 }
 0x12c   : > { %4087 = vmatpush3.bf16.msra.mxu0 %v5663_v30 }
 0x12d   : > { %4088 = vmatprep.subr.bf16.mxu0 %v5189_v0 }
 0x12e   : > { %4101 = vmatpush3.bf16.msra.mxu1 %v5636_v4 }
 0x12f   : > { %4106 = vmatprep.subr.bf16.mxu1 %v5189_v0 }
 0x130   : > { %4089 = vmatpush3.bf16.msra.mxu0 %v5666_v31 }
 0x131   : > { %4090 = vmatprep.subr.bf16.mxu0 %v5189_v0 }
 0x134   : > { %4091 = vmatpush3.bf16.msra.mxu0 %v5670_v32 }
 0x135   : > { %4092 = vmatprep.subr.bf16.mxu0 %v5189_v0 }
 0x138   : > { %4093 = vmatpush3.bf16.msra.mxu0 %v5676_v34 }
 0x139   : > { %4118 = vmatprep.subr.bf16.mxu0 %v5189_v0 }
 0x1fc   : > { %v754_v9 = vpop.f32.mrb[0].mxu0  ;;  %v809_v11 = vpop.f32.mrb[0].mxu1 }
 0x1fd   : > { %v5655_v10 = vadd.f32 %v3795_v8, %v754_v9  ;;  %v4076_v12 = vpop.f32.mrb[1].mxu0  ;;  %v4084_v13 = vpop.f32.mrb[1].mxu1 }
 0x1fe   : > { %v757_v14 = vpop.f32.mrb[2].mxu0  ;;  %v812_v16 = vpop.f32.mrb[2].mxu1 }
 0x1ff   : > { %v815_v15 = vadd.f32 %v809_v11, %v5655_v10  ;;  %v4077_v17 = vpop.f32.mrb[3].mxu0  ;;  %v4085_v18 = vpop.f32.mrb[3].mxu1 }
 0x201   : > { %v3801_v19 = vmul.f32 -1.442695, %v815_v15 }
 0x203   : > { %4591 = vpow2.f32 %v3801_v19 }
 0x20d   : > { %v4592_v20 = vpop.eup %4591 }
 0x20e   : > { %v819_v21 = vadd.f32 1.0, %v4592_v20 }
 0x210   : > { %4593 = vrcp.f32 %v819_v21 }
 0x21a   : > { %v4594_v22 = vpop.eup %4593 }
 0x21b   : > { %v822_v23 = vmul.f32 2.0, %v4594_v22  ;;  %v824_v27 = vmul.f32 0.0, %v4594_v22 }
 0x21d   : > { %v3802_v24 = vadd.f32 -1.0, %v822_v23 }
 0x21f   : > { %826 = vrot.lane.b32.xlu0 %v3802_v24, %s5192_s30 }
 0x291   : > { %v827_v25 = vpop.permute.xlu0 %826 }
 0x292   : > { %v829_v26 = vmul.f32 %v4594_v22, %v827_v25 }
 0x294   : > { %831 = vrot.lane.b32.xlu0 %v829_v26, %s6527_s15 }
 0x306   : > { %v832_v28 = vpop.permute.xlu0 %831 }
 0x307   : > { %v5660_v29 = vadd.f32 %v832_v28, %v824_v27 }
 0x309   : > { %4595 = vtanh.f32 %v5660_v29  ;;  %v1000_v9 = vrot.slane %v5660_v29, 7 }
 0x313   : > { %v4596_v33 = vpop.eup %4595 }
 0x314   : > { %837 = vrot.lane.b32.xlu1 %v4596_v33, %s5192_s30 }
 0x386   : > { %v838_v35 = vpop.permute.xlu1 %837 }
 0x387   : > { %v840_v36 = vmul.f32 %v4594_v22, %v838_v35 }
 0x389   : > { %v940_v37 = vpack.c.bf16 %v840_v36, %v840_v36  ;;  %842 = vrot.lane.b32.xlu1 %v840_v36, %s6527_s15 }
 0x38b   : > { %942 = vrot.lane.b32.xlu0 %v940_v37, %s6527_s15 }
 0x3fb   : > { %v843_v38 = vpop.permute.xlu1 %842 }
 0x3fc   : > { %v845_v39 = vsel %vm716_vm1, %v843_v38, 0.0 }
 0x3fd   : > { %v846_v40 = vpack.c.bf16 %v845_v39, %v845_v39  ;;  %v943_v41 = vpop.permute.xlu0 %942 }
 0x3fe   : > { %4103 = vmatmul.mubr.msk.bf16.vlgmr.msra.gmra.mrb[4].mxu1 %vm716_vm1, %v943_v41 }
 0x3ff   : > { %4095 = vmatmul.mubr.msk.bf16.vlgmr.msra.gmra.mrb[4].mxu0 %vm871_vm2, %v846_v40  ;;  %4107 = vmatpush3.bf16.msra.mxu1 %v5663_v30 }
 0x400   : > { %4108 = vmatprep.subr.bf16.mxu1 %v5189_v0  ;;  %4119 = vmatpush3.bf16.msra.mxu0 %v5632_v2 }
 0x401   : > { %4120 = vmatprep.subr.bf16.mxu0 %v5189_v0  ;;  %4122 = vmatprep.mubr.msk.bf16.mxu0 %vm5190_vm0, %v5189_v0 }
 0x402   : > { %4114 = vmatprep.mubr.msk.bf16.mxu1 %vm5190_vm0, %v5189_v0 }
 0x403   : > { %4109 = vmatpush3.bf16.msra.mxu1 %v5666_v31 }
 0x404   : > { %4110 = vmatprep.subr.bf16.mxu1 %v5189_v0  ;;  %4121 = vmatpush3.bf16.msra.mxu0 %v5636_v4 }
 0x405   : > { %4126 = vmatprep.subr.bf16.mxu0 %v5189_v0 }
 0x407   : > { %4111 = vmatpush3.bf16.msra.mxu1 %v5670_v32 }
 0x408   : > { %4112 = vmatprep.subr.bf16.mxu1 %v5189_v0 }
 0x40b   : > { %4113 = vmatpush3.bf16.msra.mxu1 %v5676_v34 }
 0x40c   : > { %4138 = vmatprep.subr.bf16.mxu1 %v5189_v0 }
 0x4d1   : > { %v981_v43 = vpop.f32.mrb[4].mxu1 }
 0x4d2   : > { %v988_v44 = vrot.slane %v981_v43, 7  ;;  %v909_v45 = vpop.f32.mrb[4].mxu0  ;;  %v4104_v46 = vpop.f32.mrb[5].mxu1 }
 0x4d3   : > { %v910_v47 = vadd.f32 %v909_v45, %v5704_v42  ;;  %v4096_v48 = vpop.f32.mrb[5].mxu0  ;;  %v984_v49 = vpop.f32.mrb[6].mxu1 }
 0x4d4   : > { %v990_v50 = vadd.f32 %v988_v44, %v5655_v10  ;;  %v912_v51 = vpop.f32.mrb[6].mxu0  ;;  %v4105_v52 = vpop.f32.mrb[7].mxu1 }
 0x4d5   : > { %v3808_v53 = vmul.f32 -1.442695, %v910_v47  ;;  %v4097_v54 = vpop.f32.mrb[7].mxu0 }
 0x4d6   : > { %v3811_v55 = vmul.f32 -1.442695, %v990_v50 }
 0x4d7   : > { %4597 = vpow2.f32 %v3808_v53 }
 0x4d8   : > { %4599 = vpow2.f32 %v3811_v55 }
 0x4e1   : > { %v4598_v56 = vpop.eup %4597 }
 0x4e2   : > { %v4600_v57 = vpop.eup %4599  ;;  %v918_v58 = vadd.f32 1.0, %v4598_v56 }
 0x4e3   : > { %v994_v59 = vadd.f32 1.0, %v4600_v57 }
 0x4e4   : > { %4601 = vrcp.f32 %v918_v58 }
 0x4e5   : > { %4603 = vrcp.f32 %v994_v59 }
 0x4ee   : > { %v4602_v60 = vpop.eup %4601 }
 0x4ef   : > { %v4604_v61 = vpop.eup %4603  ;;  %v921_v62 = vmul.f32 2.0, %v4602_v60  ;;  %v923_v11 = vmul.f32 0.0, %v4602_v60 }
 0x4f0   : > { %v997_v63 = vmul.f32 2.0, %v4604_v61  ;;  %v1002_v13 = vmul.f32 %v4604_v61, %v1000_v9 }
 0x4f1   : > { %v3809_v1 = vadd.f32 -1.0, %v921_v62 }
 0x4f2   : > { %v3812_v3 = vadd.f32 -1.0, %v997_v63 }
 0x4f3   : > { %925 = vrot.lane.b32.xlu1 %v3809_v1, %s5192_s30 }
 0x4f4   : > { %1004 = vrot.lane.b32.xlu0 %v3812_v3, %s5192_s30 }
 0x565   : > { %v926_v5 = vpop.permute.xlu1 %925 }
 0x566   : > { %v928_v6 = vmul.f32 %v4602_v60, %v926_v5  ;;  %v1005_v7 = vpop.permute.xlu0 %1004 }
 0x567   : > { %v1007_v8 = vmul.f32 %v4604_v61, %v1005_v7 }
 0x568   : > { %930 = vrot.lane.b32.xlu1 %v928_v6, %s6527_s15 }
 0x569   : > { %1009 = vrot.lane.b32.xlu0 %v1007_v8, %s6527_s15 }
 0x5da   : > { %v931_v12 = vpop.permute.xlu1 %930 }
 0x5db   : > { %v5713_v14 = vadd.f32 %v931_v12, %v923_v11  ;;  %v1010_v15 = vpop.permute.xlu0 %1009 }
 0x5dc   : > { %v5715_v16 = vadd.f32 %v1010_v15, %v1002_v13 }
 0x5dd   : > { %4605 = vtanh.f32 %v5713_v14 }
 0x5de   : > { %4607 = vtanh.f32 %v5715_v16  ;;  %v1163_v1 = vrot.slane %v5715_v16, 7 }
 0x5e7   : > { %v4606_v17 = vpop.eup %4605 }
 0x5e8   : > { %v4608_v18 = vpop.eup %4607  ;;  %936 = vrot.lane.b32.xlu1 %v4606_v17, %s5192_s30 }
 0x5e9   : > { %1015 = vrot.lane.b32.xlu0 %v4608_v18, %s5192_s30 }
 0x65a   : > { %v937_v19 = vpop.permute.xlu1 %936 }
 0x65b   : > { %v939_v20 = vmul.f32 %v4602_v60, %v937_v19  ;;  %v1016_v21 = vpop.permute.xlu0 %1015 }
 0x65c   : > { %v1018_v22 = vmul.f32 %v4604_v61, %v1016_v21 }
 0x65d   : > { %v1024_v23 = vrot.slane %v939_v20, 7 }
 0x65e   : > { %v1101_v24 = vpack.c.bf16 %v1018_v22, %v1018_v22  ;;  %1020 = vrot.lane.b32.xlu1 %v1018_v22, %s6527_s15 }
 0x65f   : > { %1025 = vrot.lane.b32.xlu0 %v1024_v23, %s5192_s30 }
 0x660   : > { %v1103_v25 = vshrl.u32 %v1101_v24, 16 }
 0x662   : > { %1105 = vrot.lane.b32.xlu1 %v1103_v25, %s6527_s15 }
 0x6d0   : > { %v1021_v26 = vpop.permute.xlu1 %1020 }
 0x6d1   : > { %v1026_v27 = vpop.permute.xlu0 %1025 }
 0x6d2   : > { %v1028_v28 = vsel %vm716_vm1, %v1021_v26, %v1026_v27 }
 0x6d3   : > { %v1029_v29 = vpack.c.bf16 %v1028_v28, %v1028_v28 }
 0x6d4   : > { %v1106_v33 = vpop.permute.xlu1 %1105 }
 0x6d5   : > { %v1031_v35 = vshrl.u32 %v1029_v29, 16  ;;  %4123 = vmatmul.mubr.msk.bf16.vlgmr.msra.gmra.mrb[8].mxu0 %vm716_vm1, %v1106_v33 }
 0x6d6   : > { %4127 = vmatpush3.bf16.msra.mxu0 %v5663_v30  ;;  %4134 = vmatprep.mubr.msk.bf16.mxu0 %vm5190_vm0, %v5189_v0 }
 0x6d7   : > { %4115 = vmatmul.mubr.msk.bf16.vlgmr.msra.gmra.mrb[8].mxu1 %vm871_vm2, %v1031_v35  ;;  %4128 = vmatprep.subr.bf16.mxu0 %v5189_v0 }
 0x6d8   : > { %4139 = vmatpush3.bf16.msra.mxu1 %v5632_v2  ;;  %4142 = vmatprep.mubr.msk.bf16.mxu1 %vm5190_vm0, %v5189_v0 }
 0x6d9   : > { %4140 = vmatprep.subr.bf16.mxu1 %v5189_v0 }
 0x6da   : > { %4129 = vmatpush3.bf16.msra.mxu0 %v5666_v31 }
 0x6db   : > { %4130 = vmatprep.subr.bf16.mxu0 %v5189_v0 }
 0x6dc   : > { %4141 = vmatpush3.bf16.msra.mxu1 %v5636_v4 }
 0x6dd   : > { %4146 = vmatprep.subr.bf16.mxu1 %v5189_v0 }
 0x6de   : > { %4131 = vmatpush3.bf16.msra.mxu0 %v5670_v32 }
 0x6df   : > { %4132 = vmatprep.subr.bf16.mxu0 %v5189_v0 }
 0x6e2   : > { %4133 = vmatpush3.bf16.msra.mxu0 %v5676_v34 }
 0x6e3   : > { %4158 = vmatprep.subr.bf16.mxu0 %v5189_v0 }
 0x7a8   : > { %v1144_v36 = vpop.f32.mrb[8].mxu0 }
 0x7a9   : > { %v1151_v37 = vrot.slane %v1144_v36, 6  ;;  %v4124_v38 = vpop.f32.mrb[9].mxu0 }
 0x7aa   : > { %v1070_v39 = vpop.f32.mrb[8].mxu1  ;;  %v1147_v40 = vpop.f32.mrb[10].mxu0 }
 0x7ab   : > { %v1153_v41 = vadd.f32 %v1151_v37, %v5655_v10  ;;  %v1071_v43 = vadd.f32 %v1070_v39, %v5704_v42  ;;  %v4116_v44 = vpop.f32.mrb[9].mxu1  ;;  %v4125_v45 = vpop.f32.mrb[11].mxu0 }
 0x7ac   : > { %v1073_v46 = vpop.f32.mrb[10].mxu1 }
 0x7ad   : > { %v3817_v47 = vmul.f32 -1.442695, %v1153_v41  ;;  %v3814_v48 = vmul.f32 -1.442695, %v1071_v43  ;;  %v4117_v49 = vpop.f32.mrb[11].mxu1 }
 0x7af   : > { %4609 = vpow2.f32 %v3817_v47 }
 0x7b0   : > { %4611 = vpow2.f32 %v3814_v48 }
 0x7b9   : > { %v4610_v50 = vpop.eup %4609 }
 0x7ba   : > { %v4612_v51 = vpop.eup %4611  ;;  %v1157_v52 = vadd.f32 1.0, %v4610_v50 }
 0x7bb   : > { %v1079_v53 = vadd.f32 1.0, %v4612_v51 }
 0x7bc   : > { %4613 = vrcp.f32 %v1157_v52 }
 0x7bd   : > { %4615 = vrcp.f32 %v1079_v53 }
 0x7c6   : > { %v4614_v54 = vpop.eup %4613 }
 0x7c7   : > { %v4616_v55 = vpop.eup %4615  ;;  %v1160_v56 = vmul.f32 2.0, %v4614_v54  ;;  %v1165_v3 = vmul.f32 %v4614_v54, %v1163_v1 }
 0x7c8   : > { %v1082_v57 = vmul.f32 2.0, %v4616_v55  ;;  %v1084_v5 = vmul.f32 %v4616_v55, %v5713_v14 }
 0x7c9   : > { %v3818_v58 = vadd.f32 -1.0, %v1160_v56 }
 0x7ca   : > { %v3815_v59 = vadd.f32 -1.0, %v1082_v57 }
 0x7cb   : > { %1167 = vrot.lane.b32.xlu1 %v3818_v58, %s5192_s30 }
 0x7cc   : > { %1086 = vrot.lane.b32.xlu0 %v3815_v59, %s5192_s30 }
 0x83d   : > { %v1168_v60 = vpop.permute.xlu1 %1167 }
 0x83e   : > { %v1087_v61 = vpop.permute.xlu0 %1086  ;;  %v1170_v62 = vmul.f32 %v4614_v54, %v1168_v60 }
 0x83f   : > { %v1089_v63 = vmul.f32 %v4616_v55, %v1087_v61 }
 0x840   : > { %1172 = vrot.lane.b32.xlu1 %v1170_v62, %s6527_s15 }
 0x841   : > { %1091 = vrot.lane.b32.xlu0 %v1089_v63, %s6527_s15 }
 0x8b2   : > { %v1173_v6 = vpop.permute.xlu1 %1172 }
 0x8b3   : > { %v1092_v7 = vpop.permute.xlu0 %1091  ;;  %v5751_v8 = vadd.f32 %v1173_v6, %v1165_v3 }
 0x8b4   : > { %v5753_v9 = vadd.f32 %v1092_v7, %v1084_v5 }
 0x8b5   : > { %4617 = vtanh.f32 %v5751_v8  ;;  %v1324_v58 = vrot.slane %v5751_v8, 7 }
 0x8b6   : > { %4619 = vtanh.f32 %v5753_v9 }
 0x8bf   : > { %v4618_v11 = vpop.eup %4617 }
 0x8c0   : > { %v4620_v12 = vpop.eup %4619  ;;  %1178 = vrot.lane.b32.xlu1 %v4618_v11, %s5192_s30 }
 0x8c1   : > { %1097 = vrot.lane.b32.xlu0 %v4620_v12, %s5192_s30 }
 0x932   : > { %v1179_v13 = vpop.permute.xlu1 %1178 }
 0x933   : > { %v1098_v15 = vpop.permute.xlu0 %1097  ;;  %v1181_v16 = vmul.f32 %v4614_v54, %v1179_v13 }
 0x934   : > { %v1100_v14 = vmul.f32 %v4616_v55, %v1098_v15 }
 0x935   : > { %v1263_v17 = vpack.c.bf16 %v1181_v16, %v1181_v16  ;;  %1183 = vrot.lane.b32.xlu0 %v1181_v16, %s6527_s15 }
 0x936   : > { %v1187_v18 = vrot.slane %v1100_v14, 6 }
 0x937   : > { %v1265_v19 = vrot.slane %v1263_v17, 1 }
 0x938   : > { %1188 = vrot.lane.b32.xlu1 %v1187_v18, %s5192_s30 }
 0x939   : > { %1266 = vrot.lane.b32.xlu0 %v1265_v19, %s6527_s15 }
 0x9a7   : > { %v1184_v20 = vpop.permute.xlu0 %1183 }
 0x9aa   : > { %v1189_v21 = vpop.permute.xlu1 %1188 }
 0x9ab   : > { %v1191_v22 = vsel %vm716_vm1, %v1184_v20, %v1189_v21  ;;  %v1267_v23 = vpop.permute.xlu0 %1266 }
 0x9ac   : > { %v1192_v24 = vpack.c.bf16 %v1191_v22, %v1191_v22  ;;  %4143 = vmatmul.mubr.msk.bf16.vlgmr.msra.gmra.mrb[12].mxu1 %vm716_vm1, %v1267_v23 }
 0x9ad   : > { %4147 = vmatpush3.bf16.msra.mxu1 %v5663_v30  ;;  %4154 = vmatprep.mubr.msk.bf16.mxu1 %vm5190_vm0, %v5189_v0 }
 0x9ae   : > { %v1194_v25 = vrot.slane %v1192_v24, 1  ;;  %4148 = vmatprep.subr.bf16.mxu1 %v5189_v0 }
 0x9b0   : > { %4135 = vmatmul.mubr.msk.bf16.vlgmr.msra.gmra.mrb[12].mxu0 %vm871_vm2, %v1194_v25 }
 0x9b1   : > { %4149 = vmatpush3.bf16.msra.mxu1 %v5666_v31  ;;  %4159 = vmatpush3.bf16.msra.mxu0 %v5632_v2 }
 0x9b2   : > { %4150 = vmatprep.subr.bf16.mxu1 %v5189_v0  ;;  %4160 = vmatprep.subr.bf16.mxu0 %v5189_v0 }
 0x9b3   : > { %4162 = vmatprep.mubr.msk.bf16.mxu0 %vm5190_vm0, %v5189_v0 }
 0x9b5   : > { %4151 = vmatpush3.bf16.msra.mxu1 %v5670_v32  ;;  %4161 = vmatpush3.bf16.msra.mxu0 %v5636_v4 }
 0x9b6   : > { %4152 = vmatprep.subr.bf16.mxu1 %v5189_v0  ;;  %4166 = vmatprep.subr.bf16.mxu0 %v5189_v0 }
 0x9b9   : > { %4153 = vmatpush3.bf16.msra.mxu1 %v5676_v34 }
 0x9ba   : > { %4178 = vmatprep.subr.bf16.mxu1 %v5189_v0 }
 0xa7f   : > { %v1305_v26 = vpop.f32.mrb[12].mxu1 }
 0xa80   : > { %v1312_v27 = vrot.slane %v1305_v26, 5  ;;  %v4144_v28 = vpop.f32.mrb[13].mxu1 }
 0xa81   : > { %v1308_v29 = vpop.f32.mrb[14].mxu1 }
 0xa82   : > { %v1314_v33 = vadd.f32 %v1312_v27, %v5655_v10  ;;  %v4145_v35 = vpop.f32.mrb[15].mxu1 }
 0xa83   : > { %v1232_v36 = vpop.f32.mrb[12].mxu0 }
 0xa84   : > { %v3823_v37 = vmul.f32 -1.442695, %v1314_v33  ;;  %v1233_v38 = vadd.f32 %v1232_v36, %v5704_v42  ;;  %v4136_v39 = vpop.f32.mrb[13].mxu0 }
 0xa85   : > { %v1235_v40 = vpop.f32.mrb[14].mxu0 }
 0xa86   : > { %4621 = vpow2.f32 %v3823_v37  ;;  %v3820_v41 = vmul.f32 -1.442695, %v1233_v38  ;;  %v4137_v43 = vpop.f32.mrb[15].mxu0 }
 0xa88   : > { %4623 = vpow2.f32 %v3820_v41 }
 0xa90   : > { %v4622_v44 = vpop.eup %4621 }
 0xa91   : > { %v1318_v45 = vadd.f32 1.0, %v4622_v44 }
 0xa92   : > { %v4624_v46 = vpop.eup %4623 }
 0xa93   : > { %4625 = vrcp.f32 %v1318_v45  ;;  %v1241_v47 = vadd.f32 1.0, %v4624_v46 }
 0xa95   : > { %4627 = vrcp.f32 %v1241_v47 }
 0xa9d   : > { %v4626_v48 = vpop.eup %4625 }
 0xa9e   : > { %v1321_v49 = vmul.f32 2.0, %v4626_v48  ;;  %v1326_v59 = vmul.f32 %v4626_v48, %v1324_v58 }
 0xa9f   : > { %v4628_v50 = vpop.eup %4627 }
 0xaa0   : > { %v3824_v51 = vadd.f32 -1.0, %v1321_v49  ;;  %v1244_v52 = vmul.f32 2.0, %v4628_v50  ;;  %v1246_v62 = vmul.f32 %v4628_v50, %v5753_v9 }
 0xaa2   : > { %1328 = vrot.lane.b32.xlu0 %v3824_v51, %s5192_s30  ;;  %v3821_v53 = vadd.f32 -1.0, %v1244_v52 }
 0xaa4   : > { %1248 = vrot.lane.b32.xlu1 %v3821_v53, %s5192_s30 }
 0xb14   : > { %v1329_v54 = vpop.permute.xlu0 %1328 }
 0xb15   : > { %v1331_v55 = vmul.f32 %v4626_v48, %v1329_v54 }
 0xb16   : > { %v1249_v56 = vpop.permute.xlu1 %1248 }
 0xb17   : > { %v1251_v57 = vmul.f32 %v4628_v50, %v1249_v56  ;;  %1333 = vrot.lane.b32.xlu0 %v1331_v55, %s6527_s15 }
 0xb19   : > { %1253 = vrot.lane.b32.xlu1 %v1251_v57, %s6527_s15 }
 0xb89   : > { %v1334_v60 = vpop.permute.xlu0 %1333 }
 0xb8a   : > { %v5788_v61 = vadd.f32 %v1334_v60, %v1326_v59 }
 0xb8b   : > { %v1254_v63 = vpop.permute.xlu1 %1253 }
 0xb8c   : > { %4629 = vtanh.f32 %v5788_v61  ;;  %v5792_v1 = vadd.f32 %v1254_v63, %v1246_v62  ;;  %v1489_v54 = vrot.slane %v5788_v61, 7 }
 0xb8e   : > { %4631 = vtanh.f32 %v5792_v1 }
 0xb96   : > { %v4630_v3 = vpop.eup %4629 }
 0xb97   : > { %1339 = vrot.lane.b32.xlu0 %v4630_v3, %s5192_s30 }
 0xb98   : > { %v4632_v5 = vpop.eup %4631 }
 0xb99   : > { %1259 = vrot.lane.b32.xlu1 %v4632_v5, %s5192_s30 }
 0xc09   : > { %v1340_v6 = vpop.permute.xlu0 %1339 }
 0xc0a   : > { %v1342_v7 = vmul.f32 %v4626_v48, %v1340_v6 }
 0xc0b   : > { %v1260_v8 = vpop.permute.xlu1 %1259 }
 0xc0c   : > { %v1426_v11 = vpack.c.bf16 %v1342_v7, %v1342_v7  ;;  %v1262_v12 = vmul.f32 %v4628_v50, %v1260_v8  ;;  %1344 = vrot.lane.b32.xlu1 %v1342_v7, %s6527_s15 }
 0xc0e   : > { %v1428_v9 = vshrl.u32 %v1426_v11, 16  ;;  %v1348_v13 = vrot.slane %v1262_v12, 5 }
 0xc10   : > { %1349 = vrot.lane.b32.xlu0 %v1348_v13, %s5192_s30  ;;  %v1430_v15 = vrot.slane %v1428_v9, 1 }
 0xc12   : > { %1431 = vrot.lane.b32.xlu1 %v1430_v15, %s6527_s15 }
 0xc7e   : > { %v1345_v16 = vpop.permute.xlu1 %1344 }
 0xc82   : > { %v1350_v14 = vpop.permute.xlu0 %1349 }
 0xc83   : > { %v1352_v17 = vsel %vm716_vm1, %v1345_v16, %v1350_v14 }
 0xc84   : > { %v1353_v18 = vpack.c.bf16 %v1352_v17, %v1352_v17  ;;  %v1432_v19 = vpop.permute.xlu1 %1431 }
 0xc85   : > { %4163 = vmatmul.mubr.msk.bf16.vlgmr.msra.gmra.mrb[16].mxu0 %vm716_vm1, %v1432_v19 }
 0xc86   : > { %v1355_v20 = vshrl.u32 %v1353_v18, 16  ;;  %4167 = vmatpush3.bf16.msra.mxu0 %v5663_v30  ;;  %4174 = vmatprep.mubr.msk.bf16.mxu0 %vm5190_vm0, %v5189_v0 }
 0xc87   : > { %4168 = vmatprep.subr.bf16.mxu0 %v5189_v0 }
 0xc88   : > { %v1357_v21 = vrot.slane %v1355_v20, 1 }
 0xc8a   : > { %4155 = vmatmul.mubr.msk.bf16.vlgmr.msra.gmra.mrb[16].mxu1 %vm871_vm2, %v1357_v21  ;;  %4169 = vmatpush3.bf16.msra.mxu0 %v5666_v31 }
 0xc8b   : > { %4179 = vmatpush3.bf16.msra.mxu1 %v5632_v2  ;;  %4170 = vmatprep.subr.bf16.mxu0 %v5189_v0 }
 0xc8c   : > { %4180 = vmatprep.subr.bf16.mxu1 %v5189_v0  ;;  %4182 = vmatprep.mubr.msk.bf16.mxu1 %vm5190_vm0, %v5189_v0 }
 0xc8e   : > { %4171 = vmatpush3.bf16.msra.mxu0 %v5670_v32 }
 0xc8f   : > { %4181 = vmatpush3.bf16.msra.mxu1 %v5636_v4  ;;  %4172 = vmatprep.subr.bf16.mxu0 %v5189_v0 }
 0xc90   : > { %4186 = vmatprep.subr.bf16.mxu1 %v5189_v0 }
 0xc92   : > { %4173 = vmatpush3.bf16.msra.mxu0 %v5676_v34 }
 0xc93   : > { %4198 = vmatprep.subr.bf16.mxu0 %v5189_v0 }
 0xd58   : > { %v1470_v22 = vpop.f32.mrb[16].mxu0 }
 0xd59   : > { %v1477_v23 = vrot.slane %v1470_v22, 4  ;;  %v4164_v24 = vpop.f32.mrb[17].mxu0 }
 0xd5a   : > { %v1473_v25 = vpop.f32.mrb[18].mxu0 }
 0xd5b   : > { %v1479_v26 = vadd.f32 %v1477_v23, %v5655_v10  ;;  %v4165_v27 = vpop.f32.mrb[19].mxu0 }
 0xd5d   : > { %v3829_v28 = vmul.f32 -1.442695, %v1479_v26  ;;  %v1395_v29 = vpop.f32.mrb[16].mxu1 }
 0xd5e   : > { %v1396_v33 = vadd.f32 %v1395_v29, %v5704_v42  ;;  %v4156_v35 = vpop.f32.mrb[17].mxu1 }
 0xd5f   : > { %4633 = vpow2.f32 %v3829_v28  ;;  %v1398_v36 = vpop.f32.mrb[18].mxu1 }
 0xd60   : > { %v3826_v37 = vmul.f32 -1.442695, %v1396_v33  ;;  %v4157_v38 = vpop.f32.mrb[19].mxu1 }
 0xd62   : > { %4635 = vpow2.f32 %v3826_v37 }
 0xd69   : > { %v4634_v39 = vpop.eup %4633 }
 0xd6a   : > { %v1483_v40 = vadd.f32 1.0, %v4634_v39 }
 0xd6c   : > { %v4636_v41 = vpop.eup %4635  ;;  %4637 = vrcp.f32 %v1483_v40 }
 0xd6d   : > { %v1404_v43 = vadd.f32 1.0, %v4636_v41 }
 0xd6f   : > { %4639 = vrcp.f32 %v1404_v43 }
 0xd76   : > { %v4638_v44 = vpop.eup %4637 }
 0xd77   : > { %v1486_v45 = vmul.f32 2.0, %v4638_v44  ;;  %v1491_v55 = vmul.f32 %v4638_v44, %v1489_v54 }
 0xd79   : > { %v4640_v46 = vpop.eup %4639  ;;  %v3830_v47 = vadd.f32 -1.0, %v1486_v45 }
 0xd7a   : > { %v1407_v48 = vmul.f32 2.0, %v4640_v46  ;;  %v1409_v58 = vmul.f32 %v4640_v46, %v5792_v1 }
 0xd7b   : > { %1493 = vrot.lane.b32.xlu1 %v3830_v47, %s5192_s30 }
 0xd7c   : > { %v3827_v49 = vadd.f32 -1.0, %v1407_v48 }
 0xd7e   : > { %1411 = vrot.lane.b32.xlu0 %v3827_v49, %s5192_s30 }
 0xded   : > { %v1494_v50 = vpop.permute.xlu1 %1493 }
 0xdee   : > { %v1496_v51 = vmul.f32 %v4638_v44, %v1494_v50 }
 0xdf0   : > { %v1412_v52 = vpop.permute.xlu0 %1411  ;;  %1498 = vrot.lane.b32.xlu1 %v1496_v51, %s6527_s15 }
 0xdf1   : > { %v1414_v53 = vmul.f32 %v4640_v46, %v1412_v52 }
 0xdf3   : > { %1416 = vrot.lane.b32.xlu0 %v1414_v53, %s6527_s15 }
 0xe62   : > { %v1499_v56 = vpop.permute.xlu1 %1498 }
 0xe63   : > { %v5826_v57 = vadd.f32 %v1499_v56, %v1491_v55 }
 0xe65   : > { %4641 = vtanh.f32 %v5826_v57  ;;  %v1417_v59 = vpop.permute.xlu0 %1416 }
 0xe66   : > { %v5830_v60 = vadd.f32 %v1417_v59, %v1409_v58 }
 0xe68   : > { %4643 = vtanh.f32 %v5830_v60 }
 0xe6f   : > { %v4642_v62 = vpop.eup %4641 }
 0xe70   : > { %1504 = vrot.lane.b32.xlu1 %v4642_v62, %s5192_s30 }
 0xe72   : > { %v4644_v63 = vpop.eup %4643 }
 0xe73   : > { %1422 = vrot.lane.b32.xlu0 %v4644_v63, %s5192_s30 }
 0xee2   : > { %v1505_v61 = vpop.permute.xlu1 %1504 }
 0xee3   : > { %v1507_v3 = vmul.f32 %v4638_v44, %v1505_v61 }
 0xee5   : > { %v1589_v5 = vpack.c.bf16 %v1507_v3, %v1507_v3  ;;  %v1423_v6 = vpop.permute.xlu0 %1422  ;;  %1509 = vrot.lane.b32.xlu0 %v1507_v3, %s6527_s15 }
 0xee6   : > { %v1425_v1 = vmul.f32 %v4640_v46, %v1423_v6  ;;  %v1650_v46 = vrot.slane %v5826_v57, 7 }
 0xee7   : > { %v1591_v7 = vrot.slane %v1589_v5, 2 }
 0xee8   : > { %v1513_v8 = vrot.slane %v1425_v1, 4 }
 0xee9   : > { %1592 = vrot.lane.b32.xlu0 %v1591_v7, %s6527_s15 }
 0xeea   : > { %1514 = vrot.lane.b32.xlu1 %v1513_v8, %s5192_s30 }
 0xf57   : > { %v1510_v11 = vpop.permute.xlu0 %1509 }
 0xf5b   : > { %v1593_v12 = vpop.permute.xlu0 %1592 }
 0xf5c   : > { %v1515_v9 = vpop.permute.xlu1 %1514  ;;  %4183 = vmatmul.mubr.msk.bf16.vlgmr.msra.gmra.mrb[20].mxu1 %vm716_vm1, %v1593_v12  ;;  %v4792_v12 = vld [vmem:[#allocation8 + $0x8] sm:$0xff]  }
 0xf5d   : > { %v1517_v13 = vsel %vm716_vm1, %v1510_v11, %v1515_v9  ;;  %4187 = vmatpush3.bf16.msra.mxu1 %v5663_v30  ;;  %4194 = vmatprep.mubr.msk.bf16.mxu1 %vm5190_vm0, %v5189_v0  ;;  %v4791_v11 = vld [vmem:[#allocation8] sm:$0xff]  }
 0xf5e   : > { %v1518_v15 = vpack.c.bf16 %v1517_v13, %v1517_v13  ;;  %4188 = vmatprep.subr.bf16.mxu1 %v5189_v0 }
 0xf60   : > { %v1520_v16 = vrot.slane %v1518_v15, 2 }
 0xf61   : > { %4189 = vmatpush3.bf16.msra.mxu1 %v5666_v31 }
 0xf62   : > { %4175 = vmatmul.mubr.msk.bf16.vlgmr.msra.gmra.mrb[20].mxu0 %vm871_vm2, %v1520_v16  ;;  %4190 = vmatprep.subr.bf16.mxu1 %v5189_v0 }
 0xf63   : > { %4199 = vmatpush3.bf16.msra.mxu0 %v5632_v2  ;;  %4202 = vmatprep.mubr.msk.bf16.mxu0 %vm5190_vm0, %v5189_v0 }
 0xf64   : > { %4200 = vmatprep.subr.bf16.mxu0 %v5189_v0 }
 0xf65   : > { %4191 = vmatpush3.bf16.msra.mxu1 %v5670_v32 }
 0xf66   : > { %4192 = vmatprep.subr.bf16.mxu1 %v5189_v0 }
 0xf67   : > { %4201 = vmatpush3.bf16.msra.mxu0 %v5636_v4 }
 0xf68   : > { %4206 = vmatprep.subr.bf16.mxu0 %v5189_v0 }
 0xf69   : > { %4193 = vmatpush3.bf16.msra.mxu1 %v5676_v34 }
 0xf6a   : > { %4218 = vmatprep.subr.bf16.mxu1 %v5189_v0 }
0x102f   : > { %v1631_v14 = vpop.f32.mrb[20].mxu1 }
0x1030   : > { %v1638_v17 = vrot.slane %v1631_v14, 3  ;;  %v4184_v2 = vpop.f32.mrb[21].mxu1 }
0x1031   : > { %v1634_v18 = vpop.f32.mrb[22].mxu1 }
0x1032   : > { %v1640_v19 = vadd.f32 %v1638_v17, %v5655_v10  ;;  %v4185_v20 = vpop.f32.mrb[23].mxu1 }
0x1034   : > { %v3835_v21 = vmul.f32 -1.442695, %v1640_v19 }
0x1035   : > { %v1558_v22 = vpop.f32.mrb[20].mxu0 }
0x1036   : > { %4645 = vpow2.f32 %v3835_v21  ;;  %v1559_v23 = vadd.f32 %v1558_v22, %v5704_v42  ;;  %v4176_v24 = vpop.f32.mrb[21].mxu0 }
0x1037   : > { %v1561_v4 = vpop.f32.mrb[22].mxu0 }
0x1038   : > { %v3832_v25 = vmul.f32 -1.442695, %v1559_v23  ;;  %v4177_v26 = vpop.f32.mrb[23].mxu0 }
0x103a   : > { %4647 = vpow2.f32 %v3832_v25 }
0x1040   : > { %v4646_v27 = vpop.eup %4645 }
0x1041   : > { %v1644_v28 = vadd.f32 1.0, %v4646_v27 }
0x1043   : > { %4649 = vrcp.f32 %v1644_v28 }
0x1044   : > { %v4648_v29 = vpop.eup %4647 }
0x1045   : > { %v1567_v33 = vadd.f32 1.0, %v4648_v29 }
0x1047   : > { %4651 = vrcp.f32 %v1567_v33 }
0x104d   : > { %v4650_v35 = vpop.eup %4649 }
0x104e   : > { %v1647_v36 = vmul.f32 2.0, %v4650_v35  ;;  %v1652_v47 = vmul.f32 %v4650_v35, %v1650_v46 }
0x1050   : > { %v3836_v37 = vadd.f32 -1.0, %v1647_v36 }
0x1051   : > { %v4652_v38 = vpop.eup %4651 }
0x1052   : > { %1654 = vrot.lane.b32.xlu0 %v3836_v37, %s5192_s30  ;;  %v1570_v39 = vmul.f32 2.0, %v4652_v38  ;;  %v1572_v50 = vmul.f32 %v4652_v38, %v5830_v60 }
0x1054   : > { %v3833_v40 = vadd.f32 -1.0, %v1570_v39 }
0x1056   : > { %1574 = vrot.lane.b32.xlu1 %v3833_v40, %s5192_s30 }
0x10c4   : > { %v1655_v41 = vpop.permute.xlu0 %1654 }
0x10c5   : > { %v1657_v43 = vmul.f32 %v4650_v35, %v1655_v41 }
0x10c7   : > { %1659 = vrot.lane.b32.xlu0 %v1657_v43, %s6527_s15 }
0x10c8   : > { %v1575_v44 = vpop.permute.xlu1 %1574 }
0x10c9   : > { %v1577_v45 = vmul.f32 %v4652_v38, %v1575_v44 }
0x10cb   : > { %1579 = vrot.lane.b32.xlu1 %v1577_v45, %s6527_s15 }
0x1139   : > { %v1660_v48 = vpop.permute.xlu0 %1659 }
0x113a   : > { %v5864_v49 = vadd.f32 %v1660_v48, %v1652_v47 }
0x113c   : > { %4653 = vtanh.f32 %v5864_v49  ;;  %v1815_v41 = vrot.slane %v5864_v49, 7 }
0x113d   : > { %v1580_v51 = vpop.permute.xlu1 %1579 }
0x113e   : > { %v5868_v52 = vadd.f32 %v1580_v51, %v1572_v50 }
0x1140   : > { %4655 = vtanh.f32 %v5868_v52 }
0x1146   : > { %v4654_v53 = vpop.eup %4653 }
0x1147   : > { %1665 = vrot.lane.b32.xlu0 %v4654_v53, %s5192_s30 }
0x114a   : > { %v4656_v54 = vpop.eup %4655 }
0x114b   : > { %1585 = vrot.lane.b32.xlu1 %v4656_v54, %s5192_s30 }
0x11b9   : > { %v1666_v55 = vpop.permute.xlu0 %1665 }
0x11ba   : > { %v1668_v56 = vmul.f32 %v4650_v35, %v1666_v55 }
0x11bc   : > { %v1752_v57 = vpack.c.bf16 %v1668_v56, %v1668_v56  ;;  %1670 = vrot.lane.b32.xlu1 %v1668_v56, %s6527_s15 }
0x11bd   : > { %v1586_v58 = vpop.permute.xlu1 %1585 }
0x11be   : > { %v1754_v59 = vshrl.u32 %v1752_v57, 16  ;;  %v1588_v62 = vmul.f32 %v4652_v38, %v1586_v58 }
0x11c0   : > { %v1674_v60 = vrot.slane %v1588_v62, 3  ;;  %v1756_v63 = vrot.slane %v1754_v59, 2 }
0x11c2   : > { %1675 = vrot.lane.b32.xlu0 %v1674_v60, %s5192_s30  ;;  %1757 = vrot.lane.b32.xlu1 %v1756_v63, %s6527_s15 }
0x122e   : > { %v1671_v61 = vpop.permute.xlu1 %1670 }
0x1234   : > { %v1676_v3 = vpop.permute.xlu0 %1675  ;;  %v1758_v5 = vpop.permute.xlu1 %1757 }
0x1235   : > { %v1678_v6 = vsel %vm716_vm1, %v1671_v61, %v1676_v3  ;;  %4203 = vmatmul.mubr.msk.bf16.vlgmr.msra.gmra.mrb[24].mxu0 %vm716_vm1, %v1758_v5 }
0x1236   : > { %v1679_v1 = vpack.c.bf16 %v1678_v6, %v1678_v6  ;;  %4207 = vmatpush3.bf16.msra.mxu0 %v5663_v30  ;;  %4214 = vmatprep.mubr.msk.bf16.mxu0 %vm5190_vm0, %v5189_v0 }
0x1237   : > { %4208 = vmatprep.subr.bf16.mxu0 %v5189_v0 }
0x1238   : > { %v1681_v7 = vshrl.u32 %v1679_v1, 16 }
0x123a   : > { %v1683_v8 = vrot.slane %v1681_v7, 2  ;;  %4209 = vmatpush3.bf16.msra.mxu0 %v5666_v31 }
0x123b   : > { %4210 = vmatprep.subr.bf16.mxu0 %v5189_v0 }
0x123c   : > { %4195 = vmatmul.mubr.msk.bf16.vlgmr.msra.gmra.mrb[24].mxu1 %vm871_vm2, %v1683_v8 }
0x123d   : > { %4219 = vmatpush3.bf16.msra.mxu1 %v4791_v11  ;;  %4222 = vmatprep.mubr.msk.bf16.mxu1 %vm5190_vm0, %v5189_v0 }
0x123e   : > { %4220 = vmatprep.subr.bf16.mxu1 %v5189_v0  ;;  %4211 = vmatpush3.bf16.msra.mxu0 %v5670_v32 }
0x123f   : > { %4212 = vmatprep.subr.bf16.mxu0 %v5189_v0 }
0x1241   : > { %4221 = vmatpush3.bf16.msra.mxu1 %v4792_v12 }
0x1242   : > { %4213 = vmatpush3.bf16.msra.mxu0 %v5676_v34  ;;  %4226 = vmatprep.subr.bf16.mxu1 %v5189_v0 }
0x1243   : > { %4238 = vmatprep.subr.bf16.mxu0 %v5189_v0 }
0x1308   : > { %v1796_v9 = vpop.f32.mrb[24].mxu0 }
0x1309   : > { %v1803_v13 = vrot.slane %v1796_v9, 2  ;;  %v4204_v15 = vpop.f32.mrb[25].mxu0 }
0x130a   : > { %v1799_v16 = vpop.f32.mrb[26].mxu0 }
0x130b   : > { %v1805_v14 = vadd.f32 %v1803_v13, %v5655_v10  ;;  %v4205_v17 = vpop.f32.mrb[27].mxu0 }
0x130d   : > { %v3841_v2 = vmul.f32 -1.442695, %v1805_v14 }
0x130f   : > { %4657 = vpow2.f32 %v3841_v2  ;;  %v1721_v18 = vpop.f32.mrb[24].mxu1 }
0x1310   : > { %v1722_v19 = vadd.f32 %v1721_v18, %v5704_v42  ;;  %v4196_v20 = vpop.f32.mrb[25].mxu1 }
0x1311   : > { %v1724_v21 = vpop.f32.mrb[26].mxu1 }
0x1312   : > { %v3838_v22 = vmul.f32 -1.442695, %v1722_v19  ;;  %v4197_v23 = vpop.f32.mrb[27].mxu1 }
0x1314   : > { %4659 = vpow2.f32 %v3838_v22 }
0x1319   : > { %v4658_v24 = vpop.eup %4657 }
0x131a   : > { %v1809_v4 = vadd.f32 1.0, %v4658_v24 }
0x131c   : > { %4661 = vrcp.f32 %v1809_v4 }
0x131e   : > { %v4660_v25 = vpop.eup %4659 }
0x131f   : > { %v1730_v26 = vadd.f32 1.0, %v4660_v25 }
0x1321   : > { %4663 = vrcp.f32 %v1730_v26 }
0x1326   : > { %v4662_v27 = vpop.eup %4661 }
0x1327   : > { %v1812_v28 = vmul.f32 2.0, %v4662_v27  ;;  %v1817_v43 = vmul.f32 %v4662_v27, %v1815_v41 }
0x1329   : > { %v3842_v29 = vadd.f32 -1.0, %v1812_v28 }
0x132b   : > { %v4664_v33 = vpop.eup %4663  ;;  %1819 = vrot.lane.b32.xlu1 %v3842_v29, %s5192_s30 }
0x132c   : > { %v1733_v35 = vmul.f32 2.0, %v4664_v33  ;;  %v1735_v46 = vmul.f32 %v4664_v33, %v5868_v52 }
0x132e   : > { %v3839_v36 = vadd.f32 -1.0, %v1733_v35 }
0x1330   : > { %1737 = vrot.lane.b32.xlu0 %v3839_v36, %s5192_s30 }
0x139d   : > { %v1820_v37 = vpop.permute.xlu1 %1819 }
0x139e   : > { %v1822_v38 = vmul.f32 %v4662_v27, %v1820_v37 }
0x13a0   : > { %1824 = vrot.lane.b32.xlu1 %v1822_v38, %s6527_s15 }
0x13a2   : > { %v1738_v39 = vpop.permute.xlu0 %1737 }
0x13a3   : > { %v1740_v40 = vmul.f32 %v4664_v33, %v1738_v39 }
0x13a5   : > { %1742 = vrot.lane.b32.xlu0 %v1740_v40, %s6527_s15 }
0x1412   : > { %v1825_v44 = vpop.permute.xlu1 %1824 }
0x1413   : > { %v5900_v45 = vadd.f32 %v1825_v44, %v1817_v43 }
0x1415   : > { %4665 = vtanh.f32 %v5900_v45  ;;  %v1976_v24 = vrot.slane %v5900_v45, 7 }
0x1417   : > { %v1743_v47 = vpop.permute.xlu0 %1742 }
0x1418   : > { %v5904_v48 = vadd.f32 %v1743_v47, %v1735_v46 }
0x141a   : > { %4667 = vtanh.f32 %v5904_v48 }
0x141f   : > { %v4666_v50 = vpop.eup %4665 }
0x1420   : > { %1830 = vrot.lane.b32.xlu1 %v4666_v50, %s5192_s30  ;;  %v4793_v50 = vld [vmem:[%s6574_s6] sm:$0x1] }
0x1424   : > { %v4668_v51 = vpop.eup %4667 }
0x1425   : > { %1748 = vrot.lane.b32.xlu0 %v4668_v51, %s5192_s30 }
0x1492   : > { %v1831_v49 = vpop.permute.xlu1 %1830 }
0x1493   : > { %v1833_v53 = vmul.f32 %v4662_v27, %v1831_v49 }
0x1495   : > { %v1915_v54 = vpack.c.bf16 %v1833_v53, %v1833_v53  ;;  %1835 = vrot.lane.b32.xlu0 %v1833_v53, %s6527_s15 }
0x1497   : > { %v1917_v55 = vrot.slane %v1915_v54, 3  ;;  %v1749_v56 = vpop.permute.xlu0 %1748 }
0x1498   : > { %v1751_v57 = vmul.f32 %v4664_v33, %v1749_v56 }
0x1499   : > { %1918 = vrot.lane.b32.xlu0 %v1917_v55, %s6527_s15 }
0x149a   : > { %v1839_v52 = vrot.slane %v1751_v57, 2 }
0x149c   : > { %1840 = vrot.lane.b32.xlu1 %v1839_v52, %s5192_s30 }
0x1507   : > { %v1836_v58 = vpop.permute.xlu0 %1835 }
0x150b   : > { %v1919_v59 = vpop.permute.xlu0 %1918 }
0x150c   : > { %4223 = vmatmul.mubr.msk.bf16.vlgmr.msra.gmra.mrb[28].mxu1 %vm716_vm1, %v1919_v59 }
0x150d   : > { %4227 = vmatpush3.bf16.msra.mxu1 %v5663_v30  ;;  %4234 = vmatprep.mubr.msk.bf16.mxu1 %vm5190_vm0, %v5189_v0 }
0x150e   : > { %v1841_v62 = vpop.permute.xlu1 %1840  ;;  %4228 = vmatprep.subr.bf16.mxu1 %v5189_v0 }
0x150f   : > { %v1843_v60 = vsel %vm716_vm1, %v1836_v58, %v1841_v62 }
0x1510   : > { %v1844_v63 = vpack.c.bf16 %v1843_v60, %v1843_v60 }
0x1511   : > { %4229 = vmatpush3.bf16.msra.mxu1 %v5666_v31 }
0x1512   : > { %v1846_v61 = vrot.slane %v1844_v63, 3  ;;  %4230 = vmatprep.subr.bf16.mxu1 %v5189_v0 }
0x1514   : > { %4215 = vmatmul.mubr.msk.bf16.vlgmr.msra.gmra.mrb[28].mxu0 %vm871_vm2, %v1846_v61 }
0x1515   : > { %4231 = vmatpush3.bf16.msra.mxu1 %v5670_v32  ;;  %4242 = vmatprep.mubr.msk.bf16.mxu0 %vm5190_vm0, %v5189_v0 }
0x1516   : > { %4232 = vmatprep.subr.bf16.mxu1 %v5189_v0 }
0x1519   : > { %4233 = vmatpush3.bf16.msra.mxu1 %v5676_v34 }
0x151a   : > { %4258 = vmatprep.subr.bf16.mxu1 %v5189_v0 }
0x15df   : > { %v1957_v30 = vpop.f32.mrb[28].mxu1 }
0x15e0   : > { %v1964_v3 = vrot.slane %v1957_v30, 1  ;;  %v4224_v5 = vpop.f32.mrb[29].mxu1 }
0x15e1   : > { %v1960_v31 = vpop.f32.mrb[30].mxu1  ;;  %v4582_v5 = vld [vmem:[#allocation11 + $0x8] sm:$0xff]  }
0x15e2   : > { %v1966_v6 = vadd.f32 %v1964_v3, %v5655_v10  ;;  %v4225_v1 = vpop.f32.mrb[31].mxu1  ;;  %v4581_v3 = vld [vmem:[#allocation11] sm:$0xff]  }
0x15e3   : > { %4239 = vmatpush3.bf16.msra.mxu0 %v4581_v3 }
0x15e4   : > { %v3847_v7 = vmul.f32 -1.442695, %v1966_v6  ;;  %4240 = vmatprep.subr.bf16.mxu0 %v5189_v0 }
0x15e6   : > { %4669 = vpow2.f32 %v3847_v7 }
0x15e7   : > { %v1884_v8 = vpop.f32.mrb[28].mxu0  ;;  %4241 = vmatpush3.bf16.msra.mxu0 %v4582_v5 }
0x15e8   : > { %v1885_v32 = vadd.f32 %v1884_v8, %v5704_v42  ;;  %v4216_v11 = vpop.f32.mrb[29].mxu0  ;;  %4246 = vmatprep.subr.bf16.mxu0 %v5189_v0 }
0x15e9   : > { %v1887_v12 = vpop.f32.mrb[30].mxu0 }
0x15ea   : > { %v3844_v9 = vmul.f32 -1.442695, %v1885_v32  ;;  %v4217_v13 = vpop.f32.mrb[31].mxu0 }
0x15ec   : > { %4671 = vpow2.f32 %v3844_v9  ;;  %v3852_v9 = vld [vmem:[#allocation13] ss:$0 sm:$0xff] }
0x15f0   : > { %v4670_v34 = vpop.eup %4669 }
0x15f1   : > { %v1970_v15 = vadd.f32 1.0, %v4670_v34 }
0x15f3   : > { %4673 = vrcp.f32 %v1970_v15 }
0x15f6   : > { %v4672_v16 = vpop.eup %4671 }
0x15f7   : > { %v1893_v14 = vadd.f32 1.0, %v4672_v16 }
0x15f9   : > { %4675 = vrcp.f32 %v1893_v14 }
0x15fd   : > { %v4674_v17 = vpop.eup %4673 }
0x15fe   : > { %v1973_v2 = vmul.f32 2.0, %v4674_v17  ;;  %v1978_v4 = vmul.f32 %v4674_v17, %v1976_v24 }
0x1600   : > { %v3848_v10 = vadd.f32 -1.0, %v1973_v2 }
0x1602   : > { %1980 = vrot.lane.b32.xlu0 %v3848_v10, %s5192_s30 }
0x1603   : > { %v4676_v18 = vpop.eup %4675 }
0x1604   : > { %v1896_v19 = vmul.f32 2.0, %v4676_v18  ;;  %v1898_v27 = vmul.f32 %v4676_v18, %v5904_v48 }
0x1606   : > { %v3845_v20 = vadd.f32 -1.0, %v1896_v19 }
0x1608   : > { %1900 = vrot.lane.b32.xlu1 %v3845_v20, %s5192_s30 }
0x1674   : > { %v1981_v42 = vpop.permute.xlu0 %1980 }
0x1675   : > { %v1983_v21 = vmul.f32 %v4674_v17, %v1981_v42 }
0x1677   : > { %1985 = vrot.lane.b32.xlu0 %v1983_v21, %s6527_s15 }
0x167a   : > { %v1901_v22 = vpop.permute.xlu1 %1900 }
0x167b   : > { %v1903_v23 = vmul.f32 %v4676_v18, %v1901_v22 }
0x167d   : > { %1905 = vrot.lane.b32.xlu1 %v1903_v23, %s6527_s15 }
0x16e9   : > { %v1986_v25 = vpop.permute.xlu0 %1985 }
0x16ea   : > { %v5934_v26 = vadd.f32 %v1986_v25, %v1978_v4 }
0x16ec   : > { %4677 = vtanh.f32 %v5934_v26  ;;  %v2297_v3 = vrot.slane %v5934_v26, 7 }
0x16ef   : > { %v1906_v28 = vpop.permute.xlu1 %1905 }
0x16f0   : > { %v1908_v29 = vadd.f32 %v1906_v28, %v1898_v27 }
0x16f2   : > { %4679 = vtanh.f32 %v1908_v29 }
0x16f6   : > { %v4678_v33 = vpop.eup %4677 }
0x16f7   : > { %1991 = vrot.lane.b32.xlu0 %v4678_v33, %s5192_s30  ;;  %v5977_v33 = vld [vmem:[%s6575_s9 + $0x8] sm:$0xff]  }
0x16fc   : > { %v4680_v35 = vpop.eup %4679 }
0x16fd   : > { %1911 = vrot.lane.b32.xlu1 %v4680_v35, %s5192_s30 }
0x1769   : > { %v1992_v36 = vpop.permute.xlu0 %1991 }
0x176a   : > { %v1994_v37 = vmul.f32 %v4674_v17, %v1992_v36 }
0x176c   : > { %1996 = vrot.lane.b32.xlu1 %v1994_v37, %s6527_s15  ;;  %v2078_v7 = vrot.slane %v1994_v37, 7 }
0x176f   : > { %v1912_v38 = vpop.permute.xlu1 %1911 }
0x1770   : > { %v1914_v39 = vmul.f32 %v4676_v18, %v1912_v38  ;;  %v5987_v38 = vld [vmem:[%s6575_s9 + $0x10] sm:$0xff]  }
0x1772   : > { %v2000_v40 = vrot.slane %v1914_v39, 1 }
0x1774   : > { %2001 = vrot.lane.b32.xlu0 %v2000_v40, %s5192_s30 }
0x17de   : > { %v1997_v41 = vpop.permute.xlu1 %1996 }
0x17e6   : > { %v2002_v43 = vpop.permute.xlu0 %2001 }
0x17e7   : > { %v2004_v44 = vsel %vm716_vm1, %v1997_v41, %v2002_v43  ;;  %v5998_v41 = vld [vmem:[%s6575_s9 + $0x18] sm:$0xff]   ;;  %v2182_v43 = vld [vmem:[%s589_s17] sm:$0x3]  ;;  %s6578_s17 = sld [smem:[#allocation39_spill]] }
0x17e8   : > { %v2005_v45 = vpack.c.bf16 %v2004_v44, %v2004_v44 }
0x17ea   : > { %v2007_v46 = vshrl.u32 %v2005_v45, 16 }
0x17ec   : > { %v2009_v47 = vrot.slane %v2007_v46, 3 }
0x17ee   : > { %4235 = vmatmul.mubr.msk.bf16.vlgmr.msra.gmra.mrb[32].mxu1 %vm871_vm2, %v2009_v47 }
0x17ef   : > { %4266 = vmatprep.mubr.msk.bf16.mxu1 %vm5190_vm0, %v5189_v0 }
0x18c1   : > { %v2047_v48 = vpop.f32.mrb[32].mxu1 }
0x18c2   : > { %v2048_v51 = vadd.f32 %v4793_v50, %v2047_v48  ;;  %v4236_v49 = vpop.f32.mrb[33].mxu1 }
0x18c3   : > { %v2050_v53 = vpop.f32.mrb[34].mxu1 }
0x18c4   : > { %v3850_v54 = vmul.f32 -1.442695, %v2048_v51  ;;  %v4237_v55 = vpop.f32.mrb[35].mxu1  ;;  %v2204_v51 = vld [vmem:[%s6576_s16] sm:$0x1] }
0x18c6   : > { %4681 = vpow2.f32 %v3850_v54 }
0x18d0   : > { %v4682_v56 = vpop.eup %4681 }
0x18d1   : > { %v2056_v57 = vadd.f32 1.0, %v4682_v56 }
0x18d3   : > { %4683 = vrcp.f32 %v2056_v57 }
0x18dd   : > { %v4684_v52 = vpop.eup %4683 }
0x18de   : > { %v2059_v58 = vmul.f32 2.0, %v4684_v52  ;;  %v2061_v63 = vmul.f32 %v4684_v52, %v1908_v29  ;;  %v5971_v29 = vld [vmem:[%s6575_s9] sm:$0xff]  }
0x18e0   : > { %v3851_v59 = vadd.f32 -1.0, %v2059_v58 }
0x18e2   : > { %2063 = vrot.lane.b32.xlu1 %v3851_v59, %s5192_s30 }
0x1954   : > { %v2064_v62 = vpop.permute.xlu1 %2063 }
0x1955   : > { %v2066_v60 = vmul.f32 %v4684_v52, %v2064_v62 }
0x1957   : > { %2068 = vrot.lane.b32.xlu0 %v2066_v60, %s6527_s15 }
0x19c9   : > { %v2069_v61 = vpop.permute.xlu0 %2068 }
0x19ca   : > { %v5951_v30 = vadd.f32 %v2069_v61, %v2061_v63 }
0x19cc   : > { %4685 = vtanh.f32 %v5951_v30 }
0x19d6   : > { %v4686_v31 = vpop.eup %4685 }
0x19d7   : > { %2074 = vrot.lane.b32.xlu1 %v4686_v31, %s5192_s30 }
0x1a49   : > { %v2075_v6 = vpop.permute.xlu1 %2074 }
0x1a4a   : > { %v2077_v1 = vmul.f32 %v4684_v52, %v2075_v6 }
0x1a4c   : > { %v2081_v8 = vrot.slane %v2077_v1, 7  ;;  %v6026_v1 = vld [vmem:[#allocation14] sm:$0xff]  }
0x1a4d   : > { %4259 = vmatpush3.bf16.msra.mxu1 %v6026_v1 }
0x1a4e   : > { %v2084_v32 = vsel %vm2083_vm3, %v2078_v7, %v2081_v8  ;;  %v6029_v7 = vld [vmem:[#allocation14 + $0x8] sm:$0xff]   ;;  %4260 = vmatprep.subr.bf16.mxu1 %v5189_v0  ;;  %v6033_v8 = vld [vmem:[#allocation14 + $0x10] sm:$0xff]  }
0x1a4f   : > { %v2085_v11 = vpack.c.bf16 %v2084_v32, %v2084_v32  ;;  %v6039_v32 = vld [vmem:[#allocation14 + $0x18] sm:$0xff]  }
0x1a51   : > { %2098 = vrot.lane.b32.xlu0 %v2085_v11, %s6527_s15  ;;  %4261 = vmatpush3.bf16.msra.mxu1 %v6029_v7 }
0x1a52   : > { %4262 = vmatprep.subr.bf16.mxu1 %v5189_v0 }
0x1a55   : > { %4263 = vmatpush3.bf16.msra.mxu1 %v6033_v8 }
0x1a56   : > { %4264 = vmatprep.subr.bf16.mxu1 %v5189_v0 }
0x1a59   : > { %4265 = vmatpush3.bf16.msra.mxu1 %v6039_v32 }
0x1a5a   : > { %4282 = vmatprep.subr.bf16.mxu1 %v5189_v0 }
0x1ac3   : > { %v2099_v12 = vpop.permute.xlu0 %2098 }
0x1ac4   : > { %4243 = vmatmul.mubr.msk.bf16.vlgmr.msra.gmra.mrb[32].mxu0 %vm716_vm1, %v2099_v12 }
0x1ac5   : > { %4254 = vmatprep.mubr.msk.bf16.mxu0 %vm5190_vm0, %v5189_v0  ;;  %4247 = vmatpush3.bf16.msra.mxu0 %v5971_v29 }
0x1ac6   : > { %4248 = vmatprep.subr.bf16.mxu0 %v5189_v0 }
0x1ac9   : > { %4249 = vmatpush3.bf16.msra.mxu0 %v5977_v33 }
0x1aca   : > { %4250 = vmatprep.subr.bf16.mxu0 %v5189_v0 }
0x1acd   : > { %4251 = vmatpush3.bf16.msra.mxu0 %v5987_v38 }
0x1ace   : > { %4252 = vmatprep.subr.bf16.mxu0 %v5189_v0 }
0x1ad1   : > { %4253 = vmatpush3.bf16.msra.mxu0 %v5998_v41 }
0x1ad2   : > { %4270 = vmatprep.subr.bf16.mxu0 %v5189_v0 }
0x1b97   : > { %v2149_v13 = vpop.f32.mrb[32].mxu0 }
0x1b98   : > { %v2150_v34 = vadd.f32 %v3852_v9, %v2149_v13  ;;  %v4244_v15 = vpop.f32.mrb[33].mxu0 }
0x1b99   : > { %v2152_v16 = vpop.f32.mrb[34].mxu0 }
0x1b9a   : > { %v2158_v14 = vand.u32 2147483647, %v2150_v34  ;;  %v4245_v17 = vpop.f32.mrb[35].mxu0  ;;  %2174 = vst.msk [vmem:[%s6528_s0] sm:$0x3] %vm2173_vm4, %v2150_v34  ;;  %v2155_v4 = vmax.f32 %v2150_v34, 0.0  ;;  %vm2156_vm6 = vcmp.ne.f32.partialorder %v2150_v34, %v2150_v34 }
0x1b9b   : > { %s5195_s0 = smov [#allocation17]  }
0x1b9c   : > { %v2159_v2 = vsub.f32 0.0, %v2158_v14  ;;  %s5035_s1 = sshll.u32 %s5195_s0, 4  ;;  %s5036_s1 = int_to_ptr.vmem [resolvable:$false] %s5035_s1 }
0x1b9d   : > { %p5038_p3 = scmp.lt.s32.totalorder %s3547_s11, %s5036_s1 }
0x1b9e   : > { %v2160_v10 = vmul.f32 1.442695, %v2159_v2  ;;  %v6059_v2 = vld [vmem:[%s6577_s3] sm:$0x1] }
0x1ba0   : > { %4687 = vpow2.f32 %v2160_v10 }
0x1baa   : > { %v4688_v18 = vpop.eup %4687 }
0x1bab   : > { %v2162_v19 = vadd.f32 1.0, %v4688_v18  ;;  %v2165_v20 = vmul.f32 -0.5, %v4688_v18  ;;  %v2168_v21 = vand.u32 2147483647, %v4688_v18 }
0x1bad   : > { %4689 = vlog2.f32 %v2162_v19  ;;  %v2166_v42 = vadd.f32 1.0, %v2165_v20  ;;  %vm2169_vm5 = vcmp.lt.f32.partialorder %v2168_v21, 0.0004427343 }
0x1baf   : > { %v2167_v24 = vmul.f32 %v4688_v18, %v2166_v42 }
0x1bb7   : > { %v4690_v22 = vpop.eup %4689 }
0x1bb8   : > { %v2164_v23 = vmul.f32 0.6931472, %v4690_v22 }
0x1bba   : > { %v2170_v25 = vsel %vm2169_vm5, %v2167_v24, %v2164_v23 }
0x1bbb   : > { %v2171_v27 = vadd.f32 %v2170_v25, %v2155_v4 }
0x1bbd   : > { %v5965_v28 = vsel %vm2156_vm6, %v2150_v34, %v2171_v27 }
0x1bbe   : > { %4691 = vrsqrt.f32 %v5965_v28  ;;  %vm2185_vm7 = vcmp.eq.f32.partialorder %v5965_v28, inf  ;;  %v2188_v37 = vand.u32 2147483648, %v5965_v28  ;;  %vm2187_vm8 = vcmp.eq.f32.partialorder %v5965_v28, 0.0 }
0x1bc8   : > { %v4692_v35 = vpop.eup %4691 }
0x1bc9   : > { %v2184_v36 = vmul.f32 %v4692_v35, %v5965_v28 }
0x1bcb   : > { %v2186_v39 = vsel %vm2185_vm7, %v5965_v28, %v2184_v36 }
0x1bcc   : > { %v2189_v40 = vsel %vm2187_vm8, %v2188_v37, %v2186_v39 }
0x1bcd   : > { %2191 = vrot.lane.b32.xlu1 %v2189_v40, %s5194_s20 }
0x1c3f   : > { %v2192_v44 = vpop.permute.xlu1 %2191 }
0x1c40   : > { %v2194_v45 = vmul.f32 %v2192_v44, %v2182_v43 }
0x1c42   : > { %v2195_v46 = vadd.f32 %v2194_v45, %v2150_v34 }
0x1c44   : > { %2216 = vrot.lane.b32.xlu0 %v2195_v46, %s6527_s15  ;;  %v2320_v12 = vrot.slane %v2195_v46, 1 }
0x1cb6   : > { %v2217_v47 = vpop.permute.xlu0 %2216 }
0x1cb7   : > { %v2219_v48 = vsel %vm716_vm1, 0.0, %v2217_v47 }
0x1cb8   : > { %v2220_v50 = vpack.c.bf16 %v2219_v48, %v2219_v48  ;;  %v6092_v48 = vld [vmem:[%s6578_s17] sm:$0x1] }
0x1cba   : > { %4255 = vmatmul.mubr.msk.bf16.vlgmr.msra.gmra.mrb[36].mxu0 %vm871_vm2, %v2220_v50 }
0x1cbb   : > { %4271 = vmatpush3.bf16.msra.mxu0 %v5971_v29  ;;  %4278 = vmatprep.mubr.msk.bf16.mxu0 %vm5190_vm0, %v5189_v0 }
0x1cbc   : > { %4272 = vmatprep.subr.bf16.mxu0 %v5189_v0 }
0x1cbf   : > { %4273 = vmatpush3.bf16.msra.mxu0 %v5977_v33 }
0x1cc0   : > { %4274 = vmatprep.subr.bf16.mxu0 %v5189_v0 }
0x1cc3   : > { %4275 = vmatpush3.bf16.msra.mxu0 %v5987_v38 }
0x1cc4   : > { %4276 = vmatprep.subr.bf16.mxu0 %v5189_v0 }
0x1cc7   : > { %4277 = vmatpush3.bf16.msra.mxu0 %v5998_v41 }
0x1cc8   : > { %4294 = vmatprep.subr.bf16.mxu0 %v5189_v0 }
0x1d8d   : > { %v2282_v49 = vpop.f32.mrb[36].mxu0 }
0x1d8e   : > { %v2283_v53 = vadd.f32 %v2282_v49, %v2204_v51  ;;  %v4256_v54 = vpop.f32.mrb[37].mxu0 }
0x1d8f   : > { %v2285_v55 = vpop.f32.mrb[38].mxu0 }
0x1d90   : > { %v3861_v56 = vmul.f32 -1.442695, %v2283_v53  ;;  %v4257_v57 = vpop.f32.mrb[39].mxu0 }
0x1d92   : > { %4693 = vpow2.f32 %v3861_v56 }
0x1d9c   : > { %v4694_v52 = vpop.eup %4693 }
0x1d9d   : > { %v2291_v58 = vadd.f32 1.0, %v4694_v52 }
0x1d9f   : > { %4695 = vrcp.f32 %v2291_v58 }
0x1da9   : > { %v4696_v59 = vpop.eup %4695 }
0x1daa   : > { %v2294_v62 = vmul.f32 2.0, %v4696_v59  ;;  %v2299_v5 = vmul.f32 %v4696_v59, %v2297_v3 }
0x1dac   : > { %v3862_v60 = vadd.f32 -1.0, %v2294_v62 }
0x1dae   : > { %2301 = vrot.lane.b32.xlu1 %v3862_v60, %s5192_s30 }
0x1e20   : > { %v2302_v63 = vpop.permute.xlu1 %2301 }
0x1e21   : > { %v2304_v61 = vmul.f32 %v4696_v59, %v2302_v63 }
0x1e23   : > { %2306 = vrot.lane.b32.xlu0 %v2304_v61, %s6527_s15 }
0x1e95   : > { %v2307_v31 = vpop.permute.xlu0 %2306 }
0x1e96   : > { %v6023_v6 = vadd.f32 %v2307_v31, %v2299_v5 }
0x1e98   : > { %4697 = vtanh.f32 %v6023_v6 }
0x1ea2   : > { %v4698_v26 = vpop.eup %4697 }
0x1ea3   : > { %2312 = vrot.lane.b32.xlu1 %v4698_v26, %s5192_s30 }
0x1f15   : > { %v2313_v11 = vpop.permute.xlu1 %2312 }
0x1f16   : > { %v2315_v9 = vmul.f32 %v4696_v59, %v2313_v11 }
0x1f18   : > { %v4568_v13 = vpack.i.bf16 %v2320_v12, %v2315_v9 }
0x1f1a   : > { %4569 = vrot.lane.b32.xlu0 %v4568_v13, %s6527_s15 }
0x1f8c   : > { %v4570_v34 = vpop.permute.xlu0 %4569 }
0x1f8d   : > { %v4572_v15 = vunpack.i.h.bf16 %v4570_v34  ;;  %v4571_v16 = vunpack.i.l.bf16 %v4570_v34 }
0x1f8f   : > { %v2324_v14 = vsel %vm716_vm1, %v4571_v16, %v4572_v15 }
0x1f90   : > { %v2325_v17 = vpack.c.bf16 %v2324_v14, %v2324_v14 }
0x1f92   : > { %4267 = vmatmul.mubr.msk.bf16.vlgmr.msra.gmra.mrb[36].mxu1 %vm871_vm2, %v2325_v17 }
0x1f93   : > { %4283 = vmatpush3.bf16.msra.mxu1 %v6026_v1  ;;  %4290 = vmatprep.mubr.msk.bf16.mxu1 %vm5190_vm0, %v5189_v0 }
0x1f94   : > { %4284 = vmatprep.subr.bf16.mxu1 %v5189_v0 }
0x1f97   : > { %4285 = vmatpush3.bf16.msra.mxu1 %v6029_v7 }
0x1f98   : > { %4286 = vmatprep.subr.bf16.mxu1 %v5189_v0 }
0x1f9b   : > { %4287 = vmatpush3.bf16.msra.mxu1 %v6033_v8 }
0x1f9c   : > { %4288 = vmatprep.subr.bf16.mxu1 %v5189_v0 }
0x1f9f   : > { %4289 = vmatpush3.bf16.msra.mxu1 %v6039_v32 }
0x1fa0   : > { %4306 = vmatprep.subr.bf16.mxu1 %v5189_v0 }
0x2065   : > { %v2387_v10 = vpop.f32.mrb[36].mxu1 }
0x2066   : > { %v2388_v18 = vadd.f32 %v2387_v10, %v6059_v2  ;;  %v4268_v19 = vpop.f32.mrb[37].mxu1 }
0x2067   : > { %v2390_v20 = vpop.f32.mrb[38].mxu1 }
0x2068   : > { %v3868_v42 = vmul.f32 -1.442695, %v2388_v18  ;;  %v4269_v21 = vpop.f32.mrb[39].mxu1 }
0x206a   : > { %4699 = vpow2.f32 %v3868_v42 }
0x2074   : > { %v4700_v22 = vpop.eup %4699 }
0x2075   : > { %v2396_v23 = vadd.f32 1.0, %v4700_v22 }
0x2077   : > { %4701 = vrcp.f32 %v2396_v23 }
0x2081   : > { %v4702_v24 = vpop.eup %4701 }
0x2082   : > { %v2399_v4 = vmul.f32 2.0, %v4702_v24  ;;  %v2401_v36 = vmul.f32 %v4702_v24, %v5951_v30 }
0x2084   : > { %v3869_v25 = vadd.f32 -1.0, %v2399_v4 }
0x2086   : > { %2403 = vrot.lane.b32.xlu1 %v3869_v25, %s5192_s30 }
0x20f8   : > { %v2404_v27 = vpop.permute.xlu1 %2403 }
0x20f9   : > { %v2406_v35 = vmul.f32 %v4702_v24, %v2404_v27 }
0x20fb   : > { %2408 = vrot.lane.b32.xlu0 %v2406_v35, %s6527_s15 }
0x216d   : > { %v2409_v37 = vpop.permute.xlu0 %2408 }
0x216e   : > { %v6065_v39 = vadd.f32 %v2409_v37, %v2401_v36 }
0x2170   : > { %4703 = vtanh.f32 %v6065_v39 }
0x217a   : > { %v4704_v40 = vpop.eup %4703 }
0x217b   : > { %2414 = vrot.lane.b32.xlu1 %v4704_v40, %s5192_s30 }
0x217f   : > { %2424 = vrot.lane.b32.xlu1 %v2315_v9, %s5192_s30 }
0x21ed   : > { %v2415_v43 = vpop.permute.xlu1 %2414 }
0x21ee   : > { %v2417_v44 = vmul.f32 %v4702_v24, %v2415_v43 }
0x21f0   : > { %2419 = vrot.lane.b32.xlu0 %v2417_v44, %s6527_s15 }
0x21f1   : > { %v2425_v45 = vpop.permute.xlu1 %2424 }
0x2262   : > { %v2420_v46 = vpop.permute.xlu0 %2419 }
0x2263   : > { %2423 = vst.msk [vmem:[%s6073_s18 + $0x7] sm:$0x1] %vm2422_vm9, %v2420_v46  ;;  %v2427_v30 = vsel %vm716_vm1, %v2420_v46, %v2425_v45 }
0x2264   : > { %v2428_v47 = vpack.c.bf16 %v2427_v30, %v2427_v30 }
0x2266   : > { %4279 = vmatmul.mubr.msk.bf16.vlgmr.msra.gmra.mrb[40].mxu0 %vm871_vm2, %v2428_v47 }
0x2267   : > { %4295 = vmatpush3.bf16.msra.mxu0 %v5971_v29  ;;  %4302 = vmatprep.mubr.msk.bf16.mxu0 %vm5190_vm0, %v5189_v0 }
0x2268   : > { %4296 = vmatprep.subr.bf16.mxu0 %v5189_v0 }
0x226b   : > { %4297 = vmatpush3.bf16.msra.mxu0 %v5977_v33 }
0x226c   : > { %4298 = vmatprep.subr.bf16.mxu0 %v5189_v0 }
0x226f   : > { %4299 = vmatpush3.bf16.msra.mxu0 %v5987_v38 }
0x2270   : > { %4300 = vmatprep.subr.bf16.mxu0 %v5189_v0 }
0x2273   : > { %4301 = vmatpush3.bf16.msra.mxu0 %v5998_v41 }
0x2274   : > { %4318 = vmatprep.subr.bf16.mxu0 %v5189_v0 }
0x2339   : > { %v2466_v50 = vpop.f32.mrb[40].mxu0 }
0x233a   : > { %v2467_v51 = vadd.f32 %v2466_v50, %v6092_v48  ;;  %v4280_v49 = vpop.f32.mrb[41].mxu0 }
0x233b   : > { %v2469_v53 = vpop.f32.mrb[42].mxu0 }
0x233c   : > { %v3871_v54 = vmul.f32 -1.442695, %v2467_v51  ;;  %v4281_v55 = vpop.f32.mrb[43].mxu0 }
0x233e   : > { %4705 = vpow2.f32 %v3871_v54 }
0x2348   : > { %v4706_v56 = vpop.eup %4705 }
0x2349   : > { %v2475_v57 = vadd.f32 1.0, %v4706_v56 }
0x234b   : > { %4707 = vrcp.f32 %v2475_v57 }
0x2355   : > { %v4708_v52 = vpop.eup %4707 }
0x2356   : > { %v2478_v58 = vmul.f32 2.0, %v4708_v52  ;;  %v2480_v63 = vmul.f32 %v4708_v52, %v6023_v6 }
0x2358   : > { %v3872_v59 = vadd.f32 -1.0, %v2478_v58 }
0x235a   : > { %2482 = vrot.lane.b32.xlu0 %v3872_v59, %s5192_s30 }
0x23cc   : > { %v2483_v62 = vpop.permute.xlu0 %2482 }
0x23cd   : > { %v2485_v60 = vmul.f32 %v4708_v52, %v2483_v62 }
0x23cf   : > { %2487 = vrot.lane.b32.xlu1 %v2485_v60, %s6527_s15 }
0x2441   : > { %v2488_v61 = vpop.permute.xlu1 %2487 }
0x2442   : > { %v6098_v3 = vadd.f32 %v2488_v61, %v2480_v63 }
0x2444   : > { %4709 = vtanh.f32 %v6098_v3 }
0x244e   : > { %v4710_v5 = vpop.eup %4709 }
0x244f   : > { %2493 = vrot.lane.b32.xlu0 %v4710_v5, %s5192_s30 }
0x2453   : > { %2501 = vrot.lane.b32.xlu0 %v2417_v44, %s5192_s30 }
0x24c1   : > { %v2494_v31 = vpop.permute.xlu0 %2493 }
0x24c2   : > { %v2496_v26 = vmul.f32 %v4708_v52, %v2494_v31 }
0x24c4   : > { %2498 = vrot.lane.b32.xlu1 %v2496_v26, %s6527_s15 }
0x24c5   : > { %v2502_v11 = vpop.permute.xlu0 %2501 }
0x2536   : > { %v2499_v12 = vpop.permute.xlu1 %2498 }
0x2537   : > { %v2504_v9 = vsel %vm716_vm1, %v2499_v12, %v2502_v11 }
0x2538   : > { %v2505_v13 = vpack.c.bf16 %v2504_v9, %v2504_v9 }
0x253a   : > { %4291 = vmatmul.mubr.msk.bf16.vlgmr.msra.gmra.mrb[40].mxu1 %vm871_vm2, %v2505_v13 }
0x253b   : > { %4307 = vmatpush3.bf16.msra.mxu1 %v6026_v1  ;;  %4314 = vmatprep.mubr.msk.bf16.mxu1 %vm5190_vm0, %v5189_v0 }
0x253c   : > { %4308 = vmatprep.subr.bf16.mxu1 %v5189_v0 }
0x253f   : > { %4309 = vmatpush3.bf16.msra.mxu1 %v6029_v7 }
0x2540   : > { %4310 = vmatprep.subr.bf16.mxu1 %v5189_v0 }
0x2543   : > { %4311 = vmatpush3.bf16.msra.mxu1 %v6033_v8 }
0x2544   : > { %4312 = vmatprep.subr.bf16.mxu1 %v5189_v0 }
0x2547   : > { %4313 = vmatpush3.bf16.msra.mxu1 %v6039_v32 }
0x2548   : > { %4330 = vmatprep.subr.bf16.mxu1 %v5189_v0 }
0x260d   : > { %v2543_v6 = vpop.f32.mrb[40].mxu1 }
0x260e   : > { %v2544_v34 = vadd.f32 %v2543_v6, %v6059_v2  ;;  %v4292_v15 = vpop.f32.mrb[41].mxu1 }
0x260f   : > { %v2546_v16 = vpop.f32.mrb[42].mxu1 }
0x2610   : > { %v3874_v14 = vmul.f32 -1.442695, %v2544_v34  ;;  %v4293_v17 = vpop.f32.mrb[43].mxu1 }
0x2612   : > { %4711 = vpow2.f32 %v3874_v14 }
0x261c   : > { %v4712_v10 = vpop.eup %4711 }
0x261d   : > { %v2552_v18 = vadd.f32 1.0, %v4712_v10 }
0x261f   : > { %4713 = vrcp.f32 %v2552_v18 }
0x2629   : > { %v4714_v19 = vpop.eup %4713 }
0x262a   : > { %v2555_v20 = vmul.f32 2.0, %v4714_v19  ;;  %v2557_v23 = vmul.f32 %v4714_v19, %v6065_v39 }
0x262c   : > { %v3875_v42 = vadd.f32 -1.0, %v2555_v20 }
0x262e   : > { %2559 = vrot.lane.b32.xlu1 %v3875_v42, %s5192_s30 }
0x26a0   : > { %v2560_v21 = vpop.permute.xlu1 %2559 }
0x26a1   : > { %v2562_v22 = vmul.f32 %v4714_v19, %v2560_v21 }
0x26a3   : > { %2564 = vrot.lane.b32.xlu0 %v2562_v22, %s6527_s15 }
0x2715   : > { %v2565_v24 = vpop.permute.xlu0 %2564 }
0x2716   : > { %v6120_v4 = vadd.f32 %v2565_v24, %v2557_v23 }
0x2718   : > { %4715 = vtanh.f32 %v6120_v4 }
0x2722   : > { %v4716_v25 = vpop.eup %4715 }
0x2723   : > { %2570 = vrot.lane.b32.xlu1 %v4716_v25, %s5192_s30 }
0x2727   : > { %2579 = vrot.lane.b32.xlu1 %v2496_v26, %s5192_s30 }
0x2795   : > { %v2571_v27 = vpop.permute.xlu1 %2570 }
0x2796   : > { %v2573_v35 = vmul.f32 %v4714_v19, %v2571_v27 }
0x2798   : > { %2575 = vrot.lane.b32.xlu0 %v2573_v35, %s6527_s15 }
0x2799   : > { %v2580_v36 = vpop.permute.xlu1 %2579 }
0x280a   : > { %v2576_v37 = vpop.permute.xlu0 %2575 }
0x280b   : > { %2578 = vst.msk [vmem:[%s6073_s18 + $0x6] sm:$0x1] %vm2422_vm9, %v2576_v37  ;;  %v2582_v39 = vsel %vm716_vm1, %v2576_v37, %v2580_v36 }
0x280c   : > { %v2583_v40 = vpack.c.bf16 %v2582_v39, %v2582_v39 }
0x280e   : > { %4303 = vmatmul.mubr.msk.bf16.vlgmr.msra.gmra.mrb[44].mxu0 %vm871_vm2, %v2583_v40 }
0x280f   : > { %4319 = vmatpush3.bf16.msra.mxu0 %v5971_v29  ;;  %4326 = vmatprep.mubr.msk.bf16.mxu0 %vm5190_vm0, %v5189_v0 }
0x2810   : > { %4320 = vmatprep.subr.bf16.mxu0 %v5189_v0 }
0x2813   : > { %4321 = vmatpush3.bf16.msra.mxu0 %v5977_v33 }
0x2814   : > { %4322 = vmatprep.subr.bf16.mxu0 %v5189_v0 }
0x2817   : > { %4323 = vmatpush3.bf16.msra.mxu0 %v5987_v38 }
0x2818   : > { %4324 = vmatprep.subr.bf16.mxu0 %v5189_v0 }
0x281b   : > { %4325 = vmatpush3.bf16.msra.mxu0 %v5998_v41 }
0x281c   : > { %4342 = vmatprep.subr.bf16.mxu0 %v5189_v0 }
0x28e1   : > { %v2621_v43 = vpop.f32.mrb[44].mxu0 }
0x28e2   : > { %v2622_v44 = vadd.f32 %v2621_v43, %v6092_v48  ;;  %v4304_v45 = vpop.f32.mrb[45].mxu0 }
0x28e3   : > { %v2624_v46 = vpop.f32.mrb[46].mxu0 }
0x28e4   : > { %v3877_v30 = vmul.f32 -1.442695, %v2622_v44  ;;  %v4305_v47 = vpop.f32.mrb[47].mxu0 }
0x28e6   : > { %4717 = vpow2.f32 %v3877_v30 }
0x28f0   : > { %v4718_v50 = vpop.eup %4717 }
0x28f1   : > { %v2630_v51 = vadd.f32 1.0, %v4718_v50 }
0x28f3   : > { %4719 = vrcp.f32 %v2630_v51 }
0x28fd   : > { %v4720_v49 = vpop.eup %4719 }
0x28fe   : > { %v2633_v53 = vmul.f32 2.0, %v4720_v49  ;;  %v2635_v57 = vmul.f32 %v4720_v49, %v6098_v3 }
0x2900   : > { %v3878_v54 = vadd.f32 -1.0, %v2633_v53 }
0x2902   : > { %2637 = vrot.lane.b32.xlu0 %v3878_v54, %s5192_s30 }
0x2974   : > { %v2638_v55 = vpop.permute.xlu0 %2637 }
0x2975   : > { %v2640_v56 = vmul.f32 %v4720_v49, %v2638_v55 }
0x2977   : > { %2642 = vrot.lane.b32.xlu1 %v2640_v56, %s6527_s15 }
0x29e9   : > { %v2643_v52 = vpop.permute.xlu1 %2642 }
0x29ea   : > { %v6144_v58 = vadd.f32 %v2643_v52, %v2635_v57 }
0x29ec   : > { %4721 = vtanh.f32 %v6144_v58 }
0x29f6   : > { %v4722_v59 = vpop.eup %4721 }
0x29f7   : > { %2648 = vrot.lane.b32.xlu0 %v4722_v59, %s5192_s30 }
0x29fb   : > { %2656 = vrot.lane.b32.xlu0 %v2573_v35, %s5192_s30 }
0x2a69   : > { %v2649_v62 = vpop.permute.xlu0 %2648 }
0x2a6a   : > { %v2651_v60 = vmul.f32 %v4720_v49, %v2649_v62 }
0x2a6c   : > { %2653 = vrot.lane.b32.xlu1 %v2651_v60, %s6527_s15 }
0x2a6d   : > { %v2657_v63 = vpop.permute.xlu0 %2656 }
0x2ade   : > { %v2654_v61 = vpop.permute.xlu1 %2653 }
0x2adf   : > { %v2659_v5 = vsel %vm716_vm1, %v2654_v61, %v2657_v63 }
0x2ae0   : > { %v2660_v31 = vpack.c.bf16 %v2659_v5, %v2659_v5 }
0x2ae2   : > { %4315 = vmatmul.mubr.msk.bf16.vlgmr.msra.gmra.mrb[44].mxu1 %vm871_vm2, %v2660_v31 }
0x2ae3   : > { %4331 = vmatpush3.bf16.msra.mxu1 %v6026_v1  ;;  %4338 = vmatprep.mubr.msk.bf16.mxu1 %vm5190_vm0, %v5189_v0 }
0x2ae4   : > { %4332 = vmatprep.subr.bf16.mxu1 %v5189_v0 }
0x2ae7   : > { %4333 = vmatpush3.bf16.msra.mxu1 %v6029_v7 }
0x2ae8   : > { %4334 = vmatprep.subr.bf16.mxu1 %v5189_v0 }
0x2aeb   : > { %4335 = vmatpush3.bf16.msra.mxu1 %v6033_v8 }
0x2aec   : > { %4336 = vmatprep.subr.bf16.mxu1 %v5189_v0 }
0x2aef   : > { %4337 = vmatpush3.bf16.msra.mxu1 %v6039_v32 }
0x2af0   : > { %4354 = vmatprep.subr.bf16.mxu1 %v5189_v0 }
0x2bb5   : > { %v2698_v3 = vpop.f32.mrb[44].mxu1 }
0x2bb6   : > { %v2699_v26 = vadd.f32 %v2698_v3, %v6059_v2  ;;  %v4316_v11 = vpop.f32.mrb[45].mxu1 }
0x2bb7   : > { %v2701_v12 = vpop.f32.mrb[46].mxu1 }
0x2bb8   : > { %v3880_v9 = vmul.f32 -1.442695, %v2699_v26  ;;  %v4317_v13 = vpop.f32.mrb[47].mxu1 }
0x2bba   : > { %4723 = vpow2.f32 %v3880_v9 }
0x2bc4   : > { %v4724_v6 = vpop.eup %4723 }
0x2bc5   : > { %v2707_v34 = vadd.f32 1.0, %v4724_v6 }
0x2bc7   : > { %4725 = vrcp.f32 %v2707_v34 }
0x2bd1   : > { %v4726_v15 = vpop.eup %4725 }
0x2bd2   : > { %v2710_v16 = vmul.f32 2.0, %v4726_v15  ;;  %v2712_v18 = vmul.f32 %v4726_v15, %v6120_v4 }
0x2bd4   : > { %v3881_v14 = vadd.f32 -1.0, %v2710_v16 }
0x2bd6   : > { %2714 = vrot.lane.b32.xlu1 %v3881_v14, %s5192_s30 }
0x2c48   : > { %v2715_v17 = vpop.permute.xlu1 %2714 }
0x2c49   : > { %v2717_v10 = vmul.f32 %v4726_v15, %v2715_v17 }
0x2c4b   : > { %2719 = vrot.lane.b32.xlu0 %v2717_v10, %s6527_s15 }
0x2cbd   : > { %v2720_v19 = vpop.permute.xlu0 %2719 }
0x2cbe   : > { %v6166_v20 = vadd.f32 %v2720_v19, %v2712_v18 }
0x2cc0   : > { %4727 = vtanh.f32 %v6166_v20 }
0x2cca   : > { %v4728_v42 = vpop.eup %4727 }
0x2ccb   : > { %2725 = vrot.lane.b32.xlu1 %v4728_v42, %s5192_s30 }
0x2ccf   : > { %2734 = vrot.lane.b32.xlu1 %v2651_v60, %s5192_s30 }
0x2d3d   : > { %v2726_v21 = vpop.permute.xlu1 %2725 }
0x2d3e   : > { %v2728_v22 = vmul.f32 %v4726_v15, %v2726_v21 }
0x2d40   : > { %2730 = vrot.lane.b32.xlu0 %v2728_v22, %s6527_s15 }
0x2d41   : > { %v2735_v23 = vpop.permute.xlu1 %2734 }
0x2db2   : > { %v2731_v24 = vpop.permute.xlu0 %2730 }
0x2db3   : > { %2733 = vst.msk [vmem:[%s6073_s18 + $0x5] sm:$0x1] %vm2422_vm9, %v2731_v24  ;;  %v2737_v4 = vsel %vm716_vm1, %v2731_v24, %v2735_v23 }
0x2db4   : > { %v2738_v25 = vpack.c.bf16 %v2737_v4, %v2737_v4 }
0x2db6   : > { %4327 = vmatmul.mubr.msk.bf16.vlgmr.msra.gmra.mrb[48].mxu0 %vm871_vm2, %v2738_v25 }
0x2db7   : > { %4343 = vmatpush3.bf16.msra.mxu0 %v5971_v29  ;;  %4350 = vmatprep.mubr.msk.bf16.mxu0 %vm5190_vm0, %v5189_v0 }
0x2db8   : > { %4344 = vmatprep.subr.bf16.mxu0 %v5189_v0 }
0x2dbb   : > { %4345 = vmatpush3.bf16.msra.mxu0 %v5977_v33 }
0x2dbc   : > { %4346 = vmatprep.subr.bf16.mxu0 %v5189_v0 }
0x2dbf   : > { %4347 = vmatpush3.bf16.msra.mxu0 %v5987_v38 }
0x2dc0   : > { %4348 = vmatprep.subr.bf16.mxu0 %v5189_v0 }
0x2dc3   : > { %4349 = vmatpush3.bf16.msra.mxu0 %v5998_v41 }
0x2dc4   : > { %4366 = vmatprep.subr.bf16.mxu0 %v5189_v0 }
0x2e89   : > { %v2776_v27 = vpop.f32.mrb[48].mxu0 }
0x2e8a   : > { %v2777_v35 = vadd.f32 %v2776_v27, %v6092_v48  ;;  %v4328_v36 = vpop.f32.mrb[49].mxu0 }
0x2e8b   : > { %v2779_v37 = vpop.f32.mrb[50].mxu0 }
0x2e8c   : > { %v3883_v39 = vmul.f32 -1.442695, %v2777_v35  ;;  %v4329_v40 = vpop.f32.mrb[51].mxu0 }
0x2e8e   : > { %4729 = vpow2.f32 %v3883_v39 }
0x2e98   : > { %v4730_v43 = vpop.eup %4729 }
0x2e99   : > { %v2785_v44 = vadd.f32 1.0, %v4730_v43 }
0x2e9b   : > { %4731 = vrcp.f32 %v2785_v44 }
0x2ea5   : > { %v4732_v45 = vpop.eup %4731 }
0x2ea6   : > { %v2788_v46 = vmul.f32 2.0, %v4732_v45  ;;  %v2790_v51 = vmul.f32 %v4732_v45, %v6144_v58 }
0x2ea8   : > { %v3884_v30 = vadd.f32 -1.0, %v2788_v46 }
0x2eaa   : > { %2792 = vrot.lane.b32.xlu0 %v3884_v30, %s5192_s30 }
0x2f1c   : > { %v2793_v47 = vpop.permute.xlu0 %2792 }
0x2f1d   : > { %v2795_v50 = vmul.f32 %v4732_v45, %v2793_v47 }
0x2f1f   : > { %2797 = vrot.lane.b32.xlu1 %v2795_v50, %s6527_s15 }
0x2f91   : > { %v2798_v49 = vpop.permute.xlu1 %2797 }
0x2f92   : > { %v6190_v53 = vadd.f32 %v2798_v49, %v2790_v51 }
0x2f94   : > { %4733 = vtanh.f32 %v6190_v53 }
0x2f9e   : > { %v4734_v54 = vpop.eup %4733 }
0x2f9f   : > { %2803 = vrot.lane.b32.xlu0 %v4734_v54, %s5192_s30 }
0x2fa3   : > { %2811 = vrot.lane.b32.xlu0 %v2728_v22, %s5192_s30 }
0x3011   : > { %v2804_v55 = vpop.permute.xlu0 %2803 }
0x3012   : > { %v2806_v56 = vmul.f32 %v4732_v45, %v2804_v55 }
0x3014   : > { %2808 = vrot.lane.b32.xlu1 %v2806_v56, %s6527_s15 }
0x3015   : > { %v2812_v57 = vpop.permute.xlu0 %2811 }
0x3086   : > { %v2809_v52 = vpop.permute.xlu1 %2808 }
0x3087   : > { %v2814_v59 = vsel %vm716_vm1, %v2809_v52, %v2812_v57 }
0x3088   : > { %v2815_v62 = vpack.c.bf16 %v2814_v59, %v2814_v59 }
0x308a   : > { %4339 = vmatmul.mubr.msk.bf16.vlgmr.msra.gmra.mrb[48].mxu1 %vm871_vm2, %v2815_v62 }
0x308b   : > { %4355 = vmatpush3.bf16.msra.mxu1 %v6026_v1  ;;  %4362 = vmatprep.mubr.msk.bf16.mxu1 %vm5190_vm0, %v5189_v0 }
0x308c   : > { %4356 = vmatprep.subr.bf16.mxu1 %v5189_v0 }
0x308f   : > { %4357 = vmatpush3.bf16.msra.mxu1 %v6029_v7 }
0x3090   : > { %4358 = vmatprep.subr.bf16.mxu1 %v5189_v0 }
0x3093   : > { %4359 = vmatpush3.bf16.msra.mxu1 %v6033_v8 }
0x3094   : > { %4360 = vmatprep.subr.bf16.mxu1 %v5189_v0 }
0x3097   : > { %4361 = vmatpush3.bf16.msra.mxu1 %v6039_v32 }
0x3098   : > { %4378 = vmatprep.subr.bf16.mxu1 %v5189_v0 }
0x315d   : > { %v2853_v58 = vpop.f32.mrb[48].mxu1 }
0x315e   : > { %v2854_v60 = vadd.f32 %v2853_v58, %v6059_v2  ;;  %v4340_v63 = vpop.f32.mrb[49].mxu1 }
0x315f   : > { %v2856_v61 = vpop.f32.mrb[50].mxu1 }
0x3160   : > { %v3886_v5 = vmul.f32 -1.442695, %v2854_v60  ;;  %v4341_v31 = vpop.f32.mrb[51].mxu1 }
0x3162   : > { %4735 = vpow2.f32 %v3886_v5 }
0x316c   : > { %v4736_v3 = vpop.eup %4735 }
0x316d   : > { %v2862_v26 = vadd.f32 1.0, %v4736_v3 }
0x316f   : > { %4737 = vrcp.f32 %v2862_v26 }
0x3179   : > { %v4738_v11 = vpop.eup %4737 }
0x317a   : > { %v2865_v12 = vmul.f32 2.0, %v4738_v11  ;;  %v2867_v34 = vmul.f32 %v4738_v11, %v6166_v20 }
0x317c   : > { %v3887_v9 = vadd.f32 -1.0, %v2865_v12 }
0x317e   : > { %2869 = vrot.lane.b32.xlu1 %v3887_v9, %s5192_s30 }
0x31f0   : > { %v2870_v13 = vpop.permute.xlu1 %2869 }
0x31f1   : > { %v2872_v6 = vmul.f32 %v4738_v11, %v2870_v13 }
0x31f3   : > { %2874 = vrot.lane.b32.xlu0 %v2872_v6, %s6527_s15 }
0x3265   : > { %v2875_v15 = vpop.permute.xlu0 %2874 }
0x3266   : > { %v6212_v16 = vadd.f32 %v2875_v15, %v2867_v34 }
0x3268   : > { %4739 = vtanh.f32 %v6212_v16 }
0x3272   : > { %v4740_v14 = vpop.eup %4739 }
0x3273   : > { %2880 = vrot.lane.b32.xlu1 %v4740_v14, %s5192_s30 }
0x3277   : > { %2889 = vrot.lane.b32.xlu1 %v2806_v56, %s5192_s30 }
0x32e5   : > { %v2881_v17 = vpop.permute.xlu1 %2880 }
0x32e6   : > { %v2883_v10 = vmul.f32 %v4738_v11, %v2881_v17 }
0x32e8   : > { %2885 = vrot.lane.b32.xlu0 %v2883_v10, %s6527_s15 }
0x32e9   : > { %v2890_v18 = vpop.permute.xlu1 %2889 }
0x335a   : > { %v2886_v19 = vpop.permute.xlu0 %2885 }
0x335b   : > { %2888 = vst.msk [vmem:[%s6073_s18 + $0x4] sm:$0x1] %vm2422_vm9, %v2886_v19  ;;  %v2892_v20 = vsel %vm716_vm1, %v2886_v19, %v2890_v18 }
0x335c   : > { %v2893_v42 = vpack.c.bf16 %v2892_v20, %v2892_v20 }
0x335e   : > { %4351 = vmatmul.mubr.msk.bf16.vlgmr.msra.gmra.mrb[52].mxu0 %vm871_vm2, %v2893_v42 }
0x335f   : > { %4367 = vmatpush3.bf16.msra.mxu0 %v5971_v29  ;;  %4374 = vmatprep.mubr.msk.bf16.mxu0 %vm5190_vm0, %v5189_v0 }
0x3360   : > { %4368 = vmatprep.subr.bf16.mxu0 %v5189_v0 }
0x3363   : > { %4369 = vmatpush3.bf16.msra.mxu0 %v5977_v33 }
0x3364   : > { %4370 = vmatprep.subr.bf16.mxu0 %v5189_v0 }
0x3367   : > { %4371 = vmatpush3.bf16.msra.mxu0 %v5987_v38 }
0x3368   : > { %4372 = vmatprep.subr.bf16.mxu0 %v5189_v0 }
0x336b   : > { %4373 = vmatpush3.bf16.msra.mxu0 %v5998_v41 }
0x336c   : > { %4390 = vmatprep.subr.bf16.mxu0 %v5189_v0 }
0x3431   : > { %v2931_v21 = vpop.f32.mrb[52].mxu0 }
0x3432   : > { %v2932_v22 = vadd.f32 %v2931_v21, %v6092_v48  ;;  %v4352_v23 = vpop.f32.mrb[53].mxu0 }
0x3433   : > { %v2934_v24 = vpop.f32.mrb[54].mxu0 }
0x3434   : > { %v3889_v4 = vmul.f32 -1.442695, %v2932_v22  ;;  %v4353_v25 = vpop.f32.mrb[55].mxu0 }
0x3436   : > { %4741 = vpow2.f32 %v3889_v4 }
0x3440   : > { %v4742_v27 = vpop.eup %4741 }
0x3441   : > { %v2940_v35 = vadd.f32 1.0, %v4742_v27 }
0x3443   : > { %4743 = vrcp.f32 %v2940_v35 }
0x344d   : > { %v4744_v36 = vpop.eup %4743 }
0x344e   : > { %v2943_v37 = vmul.f32 2.0, %v4744_v36  ;;  %v2945_v44 = vmul.f32 %v4744_v36, %v6190_v53 }
0x3450   : > { %v3890_v39 = vadd.f32 -1.0, %v2943_v37 }
0x3452   : > { %2947 = vrot.lane.b32.xlu0 %v3890_v39, %s5192_s30 }
0x34c4   : > { %v2948_v40 = vpop.permute.xlu0 %2947 }
0x34c5   : > { %v2950_v43 = vmul.f32 %v4744_v36, %v2948_v40 }
0x34c7   : > { %2952 = vrot.lane.b32.xlu1 %v2950_v43, %s6527_s15 }
0x3539   : > { %v2953_v45 = vpop.permute.xlu1 %2952 }
0x353a   : > { %v6236_v46 = vadd.f32 %v2953_v45, %v2945_v44 }
0x353c   : > { %4745 = vtanh.f32 %v6236_v46 }
0x3546   : > { %v4746_v30 = vpop.eup %4745 }
0x3547   : > { %2958 = vrot.lane.b32.xlu0 %v4746_v30, %s5192_s30 }
0x354b   : > { %2966 = vrot.lane.b32.xlu0 %v2883_v10, %s5192_s30 }
0x35b9   : > { %v2959_v47 = vpop.permute.xlu0 %2958 }
0x35ba   : > { %v2961_v50 = vmul.f32 %v4744_v36, %v2959_v47 }
0x35bc   : > { %2963 = vrot.lane.b32.xlu1 %v2961_v50, %s6527_s15 }
0x35bd   : > { %v2967_v51 = vpop.permute.xlu0 %2966 }
0x362e   : > { %v2964_v49 = vpop.permute.xlu1 %2963 }
0x362f   : > { %v2969_v54 = vsel %vm716_vm1, %v2964_v49, %v2967_v51 }
0x3630   : > { %v2970_v55 = vpack.c.bf16 %v2969_v54, %v2969_v54 }
0x3632   : > { %4363 = vmatmul.mubr.msk.bf16.vlgmr.msra.gmra.mrb[52].mxu1 %vm871_vm2, %v2970_v55 }
0x3633   : > { %4379 = vmatpush3.bf16.msra.mxu1 %v6026_v1  ;;  %4386 = vmatprep.mubr.msk.bf16.mxu1 %vm5190_vm0, %v5189_v0 }
0x3634   : > { %4380 = vmatprep.subr.bf16.mxu1 %v5189_v0 }
0x3637   : > { %4381 = vmatpush3.bf16.msra.mxu1 %v6029_v7 }
0x3638   : > { %4382 = vmatprep.subr.bf16.mxu1 %v5189_v0 }
0x363b   : > { %4383 = vmatpush3.bf16.msra.mxu1 %v6033_v8 }
0x363c   : > { %4384 = vmatprep.subr.bf16.mxu1 %v5189_v0 }
0x363f   : > { %4385 = vmatpush3.bf16.msra.mxu1 %v6039_v32 }
0x3640   : > { %4402 = vmatprep.subr.bf16.mxu1 %v5189_v0 }
0x3705   : > { %v3008_v53 = vpop.f32.mrb[52].mxu1 }
0x3706   : > { %v3009_v56 = vadd.f32 %v3008_v53, %v6059_v2  ;;  %v4364_v57 = vpop.f32.mrb[53].mxu1 }
0x3707   : > { %v3011_v52 = vpop.f32.mrb[54].mxu1 }
0x3708   : > { %v3892_v59 = vmul.f32 -1.442695, %v3009_v56  ;;  %v4365_v62 = vpop.f32.mrb[55].mxu1 }
0x370a   : > { %4747 = vpow2.f32 %v3892_v59 }
0x3714   : > { %v4748_v58 = vpop.eup %4747 }
0x3715   : > { %v3017_v60 = vadd.f32 1.0, %v4748_v58 }
0x3717   : > { %4749 = vrcp.f32 %v3017_v60 }
0x3721   : > { %v4750_v63 = vpop.eup %4749 }
0x3722   : > { %v3020_v61 = vmul.f32 2.0, %v4750_v63  ;;  %v3022_v26 = vmul.f32 %v4750_v63, %v6212_v16 }
0x3724   : > { %v3893_v5 = vadd.f32 -1.0, %v3020_v61  ;;  %v4794_v61 = vld [vmem:[%s6575_s9] sm:$0xff]  }
0x3726   : > { %3024 = vrot.lane.b32.xlu1 %v3893_v5, %s5192_s30  ;;  %v4795_v5 = vld [vmem:[%s6575_s9 + $0x8] sm:$0xff]  }
0x3798   : > { %v3025_v31 = vpop.permute.xlu1 %3024 }
0x3799   : > { %v3027_v3 = vmul.f32 %v4750_v63, %v3025_v31  ;;  %v4796_v31 = vld [vmem:[%s6575_s9 + $0x10] sm:$0xff]  }
0x379b   : > { %3029 = vrot.lane.b32.xlu0 %v3027_v3, %s6527_s15  ;;  %v4797_v3 = vld [vmem:[%s6575_s9 + $0x18] sm:$0xff]  }
0x380d   : > { %v3030_v11 = vpop.permute.xlu0 %3029 }
0x380e   : > { %v6258_v12 = vadd.f32 %v3030_v11, %v3022_v26 }
0x3810   : > { %4751 = vtanh.f32 %v6258_v12 }
0x381a   : > { %v4752_v9 = vpop.eup %4751 }
0x381b   : > { %3035 = vrot.lane.b32.xlu1 %v4752_v9, %s5192_s30 }
0x381f   : > { %3044 = vrot.lane.b32.xlu1 %v2961_v50, %s5192_s30 }
0x388d   : > { %v3036_v13 = vpop.permute.xlu1 %3035 }
0x388e   : > { %v3038_v6 = vmul.f32 %v4750_v63, %v3036_v13 }
0x3890   : > { %3040 = vrot.lane.b32.xlu0 %v3038_v6, %s6527_s15 }
0x3891   : > { %v3045_v34 = vpop.permute.xlu1 %3044 }
0x3902   : > { %v3041_v15 = vpop.permute.xlu0 %3040 }
0x3903   : > { %3043 = vst.msk [vmem:[%s6073_s18 + $0x3] sm:$0x1] %vm2422_vm9, %v3041_v15  ;;  %v3047_v16 = vsel %vm716_vm1, %v3041_v15, %v3045_v34 }
0x3904   : > { %v3048_v14 = vpack.c.bf16 %v3047_v16, %v3047_v16 }
0x3906   : > { %4375 = vmatmul.mubr.msk.bf16.vlgmr.msra.gmra.mrb[56].mxu0 %vm871_vm2, %v3048_v14 }
0x3907   : > { %4391 = vmatpush3.bf16.msra.mxu0 %v5971_v29  ;;  %4398 = vmatprep.mubr.msk.bf16.mxu0 %vm5190_vm0, %v5189_v0 }
0x3908   : > { %4392 = vmatprep.subr.bf16.mxu0 %v5189_v0 }
0x390b   : > { %4393 = vmatpush3.bf16.msra.mxu0 %v5977_v33 }
0x390c   : > { %4394 = vmatprep.subr.bf16.mxu0 %v5189_v0 }
0x390f   : > { %4395 = vmatpush3.bf16.msra.mxu0 %v5987_v38 }
0x3910   : > { %4396 = vmatprep.subr.bf16.mxu0 %v5189_v0 }
0x3913   : > { %4397 = vmatpush3.bf16.msra.mxu0 %v5998_v41 }
0x3914   : > { %4414 = vmatprep.subr.bf16.mxu0 %v5189_v0 }
0x39d9   : > { %v3086_v17 = vpop.f32.mrb[56].mxu0 }
0x39da   : > { %v3087_v29 = vadd.f32 %v3086_v17, %v6092_v48  ;;  %v4376_v10 = vpop.f32.mrb[57].mxu0 }
0x39db   : > { %v3089_v18 = vpop.f32.mrb[58].mxu0 }
0x39dc   : > { %v3895_v19 = vmul.f32 -1.442695, %v3087_v29  ;;  %v4377_v20 = vpop.f32.mrb[59].mxu0 }
0x39de   : > { %4753 = vpow2.f32 %v3895_v19 }
0x39e8   : > { %v4754_v42 = vpop.eup %4753 }
0x39e9   : > { %v3095_v33 = vadd.f32 1.0, %v4754_v42 }
0x39eb   : > { %4755 = vrcp.f32 %v3095_v33 }
0x39f5   : > { %v4756_v21 = vpop.eup %4755 }
0x39f6   : > { %v3098_v22 = vmul.f32 2.0, %v4756_v21  ;;  %v3100_v24 = vmul.f32 %v4756_v21, %v6236_v46 }
0x39f8   : > { %v3896_v38 = vadd.f32 -1.0, %v3098_v22 }
0x39fa   : > { %3102 = vrot.lane.b32.xlu0 %v3896_v38, %s5192_s30 }
0x3a6c   : > { %v3103_v23 = vpop.permute.xlu0 %3102 }
0x3a6d   : > { %v3105_v41 = vmul.f32 %v4756_v21, %v3103_v23 }
0x3a6f   : > { %3107 = vrot.lane.b32.xlu1 %v3105_v41, %s6527_s15 }
0x3ae1   : > { %v3108_v4 = vpop.permute.xlu1 %3107 }
0x3ae2   : > { %v6282_v25 = vadd.f32 %v3108_v4, %v3100_v24  ;;  %v4798_v24 = vld [vmem:[#allocation14] sm:$0xff]   ;;  %v4799_v4 = vld [vmem:[#allocation14 + $0x8] sm:$0xff]  }
0x3ae4   : > { %4757 = vtanh.f32 %v6282_v25 }
0x3aee   : > { %v4758_v27 = vpop.eup %4757 }
0x3aef   : > { %3113 = vrot.lane.b32.xlu0 %v4758_v27, %s5192_s30  ;;  %v4801_v27 = vld [vmem:[#allocation14 + $0x18] sm:$0xff]  }
0x3af3   : > { %3121 = vrot.lane.b32.xlu0 %v3038_v6, %s5192_s30 }
0x3b61   : > { %v3114_v35 = vpop.permute.xlu0 %3113 }
0x3b62   : > { %v3116_v36 = vmul.f32 %v4756_v21, %v3114_v35 }
0x3b64   : > { %3118 = vrot.lane.b32.xlu1 %v3116_v36, %s6527_s15 }
0x3b65   : > { %v3122_v37 = vpop.permute.xlu0 %3121 }
0x3bd6   : > { %v3119_v39 = vpop.permute.xlu1 %3118 }
0x3bd7   : > { %v3124_v40 = vsel %vm716_vm1, %v3119_v39, %v3122_v37 }
0x3bd8   : > { %v3125_v43 = vpack.c.bf16 %v3124_v40, %v3124_v40 }
0x3bda   : > { %4387 = vmatmul.mubr.msk.bf16.vlgmr.msra.gmra.mrb[56].mxu1 %vm871_vm2, %v3125_v43 }
0x3bdb   : > { %4403 = vmatpush3.bf16.msra.mxu1 %v6026_v1  ;;  %4410 = vmatprep.mubr.msk.bf16.mxu1 %vm5190_vm0, %v5189_v0 }
0x3bdc   : > { %4404 = vmatprep.subr.bf16.mxu1 %v5189_v0 }
0x3bdf   : > { %4405 = vmatpush3.bf16.msra.mxu1 %v6029_v7 }
0x3be0   : > { %4406 = vmatprep.subr.bf16.mxu1 %v5189_v0 }
0x3be3   : > { %4407 = vmatpush3.bf16.msra.mxu1 %v6033_v8 }
0x3be4   : > { %4408 = vmatprep.subr.bf16.mxu1 %v5189_v0 }
0x3be7   : > { %4409 = vmatpush3.bf16.msra.mxu1 %v6039_v32 }
0x3be8   : > { %4426 = vmatprep.subr.bf16.mxu1 %v5189_v0 }
0x3cad   : > { %v3163_v44 = vpop.f32.mrb[56].mxu1 }
0x3cae   : > { %v3164_v1 = vadd.f32 %v3163_v44, %v6059_v2  ;;  %v4388_v45 = vpop.f32.mrb[57].mxu1 }
0x3caf   : > { %v3166_v46 = vpop.f32.mrb[58].mxu1 }
0x3cb0   : > { %v3898_v30 = vmul.f32 -1.442695, %v3164_v1  ;;  %v4389_v47 = vpop.f32.mrb[59].mxu1 }
0x3cb2   : > { %4759 = vpow2.f32 %v3898_v30 }
0x3cbc   : > { %v4760_v50 = vpop.eup %4759 }
0x3cbd   : > { %v3172_v7 = vadd.f32 1.0, %v4760_v50 }
0x3cbf   : > { %4761 = vrcp.f32 %v3172_v7 }
0x3cc9   : > { %v4762_v51 = vpop.eup %4761 }
0x3cca   : > { %v3175_v49 = vmul.f32 2.0, %v4762_v51  ;;  %v3177_v55 = vmul.f32 %v4762_v51, %v6258_v12 }
0x3ccc   : > { %v3899_v8 = vadd.f32 -1.0, %v3175_v49 }
0x3cce   : > { %3179 = vrot.lane.b32.xlu1 %v3899_v8, %s5192_s30 }
0x3d40   : > { %v3180_v32 = vpop.permute.xlu1 %3179 }
0x3d41   : > { %v3182_v54 = vmul.f32 %v4762_v51, %v3180_v32 }
0x3d43   : > { %3184 = vrot.lane.b32.xlu0 %v3182_v54, %s6527_s15 }
0x3db5   : > { %v3185_v53 = vpop.permute.xlu0 %3184 }
0x3db6   : > { %v6304_v56 = vadd.f32 %v3185_v53, %v3177_v55 }
0x3db8   : > { %4763 = vtanh.f32 %v6304_v56 }
0x3dc2   : > { %v4764_v57 = vpop.eup %4763 }
0x3dc3   : > { %3190 = vrot.lane.b32.xlu1 %v4764_v57, %s5192_s30 }
0x3dc7   : > { %3199 = vrot.lane.b32.xlu1 %v3116_v36, %s5192_s30 }
0x3e35   : > { %v3191_v52 = vpop.permute.xlu1 %3190 }
0x3e36   : > { %v3193_v59 = vmul.f32 %v4762_v51, %v3191_v52 }
0x3e38   : > { %3195 = vrot.lane.b32.xlu0 %v3193_v59, %s6527_s15 }
0x3e39   : > { %v3200_v62 = vpop.permute.xlu1 %3199 }
0x3eaa   : > { %v3196_v58 = vpop.permute.xlu0 %3195 }
0x3eab   : > { %3198 = vst.msk [vmem:[%s6073_s18 + $0x2] sm:$0x1] %vm2422_vm9, %v3196_v58  ;;  %v3202_v60 = vsel %vm716_vm1, %v3196_v58, %v3200_v62 }
0x3eac   : > { %v3203_v63 = vpack.c.bf16 %v3202_v60, %v3202_v60 }
0x3eae   : > { %4399 = vmatmul.mubr.msk.bf16.vlgmr.msra.gmra.mrb[60].mxu0 %vm871_vm2, %v3203_v63 }
0x3eaf   : > { %4415 = vmatpush3.bf16.msra.mxu0 %v4794_v61  ;;  %4422 = vmatprep.mubr.msk.bf16.mxu0 %vm5190_vm0, %v5189_v0 }
0x3eb0   : > { %4416 = vmatprep.subr.bf16.mxu0 %v5189_v0 }
0x3eb3   : > { %4417 = vmatpush3.bf16.msra.mxu0 %v4795_v5 }
0x3eb4   : > { %4418 = vmatprep.subr.bf16.mxu0 %v5189_v0 }
0x3eb7   : > { %4419 = vmatpush3.bf16.msra.mxu0 %v4796_v31 }
0x3eb8   : > { %4420 = vmatprep.subr.bf16.mxu0 %v5189_v0 }
0x3ebb   : > { %4421 = vmatpush3.bf16.msra.mxu0 %v4797_v3 }
0x3f81   : > { %v3241_v26 = vpop.f32.mrb[60].mxu0 }
0x3f82   : > { %v3242_v11 = vadd.f32 %v3241_v26, %v6092_v48  ;;  %v4400_v12 = vpop.f32.mrb[61].mxu0 }
0x3f83   : > { %v3244_v9 = vpop.f32.mrb[62].mxu0 }
0x3f84   : > { %v3901_v13 = vmul.f32 -1.442695, %v3242_v11  ;;  %v4401_v6 = vpop.f32.mrb[63].mxu0 }
0x3f86   : > { %4765 = vpow2.f32 %v3901_v13 }
0x3f90   : > { %v4766_v34 = vpop.eup %4765 }
0x3f91   : > { %v3250_v15 = vadd.f32 1.0, %v4766_v34 }
0x3f93   : > { %4767 = vrcp.f32 %v3250_v15 }
0x3f9d   : > { %v4768_v16 = vpop.eup %4767 }
0x3f9e   : > { %v3253_v14 = vmul.f32 2.0, %v4768_v16  ;;  %v3255_v18 = vmul.f32 %v4768_v16, %v6282_v25  ;;  %v4800_v25 = vld [vmem:[#allocation14 + $0x10] sm:$0xff]  }
0x3fa0   : > { %v3902_v17 = vadd.f32 -1.0, %v3253_v14 }
0x3fa2   : > { %3257 = vrot.lane.b32.xlu0 %v3902_v17, %s5192_s30 }
0x4014   : > { %v3258_v29 = vpop.permute.xlu0 %3257 }
0x4015   : > { %v3260_v10 = vmul.f32 %v4768_v16, %v3258_v29  ;;  %v4802_v29 = vld [vmem:[%s6577_s3] sm:$0x1] }
0x4017   : > { %3262 = vrot.lane.b32.xlu1 %v3260_v10, %s6527_s15 }
0x4089   : > { %v3263_v19 = vpop.permute.xlu1 %3262 }
0x408a   : > { %v6335_v20 = vadd.f32 %v3263_v19, %v3255_v18 }
0x408c   : > { %4769 = vtanh.f32 %v6335_v20 }
0x4096   : > { %v4770_v42 = vpop.eup %4769 }
0x4097   : > { %3268 = vrot.lane.b32.xlu0 %v4770_v42, %s5192_s30 }
0x409b   : > { %3276 = vrot.lane.b32.xlu0 %v3193_v59, %s5192_s30 }
0x4109   : > { %v3269_v33 = vpop.permute.xlu0 %3268 }
0x410a   : > { %v3271_v21 = vmul.f32 %v4768_v16, %v3269_v33 }
0x410c   : > { %3273 = vrot.lane.b32.xlu1 %v3271_v21, %s6527_s15 }
0x410d   : > { %v3277_v22 = vpop.permute.xlu0 %3276 }
0x417e   : > { %v3274_v38 = vpop.permute.xlu1 %3273 }
0x417f   : > { %v3279_v23 = vsel %vm716_vm1, %v3274_v38, %v3277_v22 }
0x4180   : > { %v3280_v41 = vpack.c.bf16 %v3279_v23, %v3279_v23 }
0x4182   : > { %4411 = vmatmul.mubr.msk.bf16.vlgmr.msra.gmra.mrb[60].mxu1 %vm871_vm2, %v3280_v41 }
0x4183   : > { %4427 = vmatpush3.bf16.msra.mxu1 %v4798_v24  ;;  %4434 = vmatprep.mubr.msk.bf16.mxu1 %vm5190_vm0, %v5189_v0 }
0x4184   : > { %4428 = vmatprep.subr.bf16.mxu1 %v5189_v0 }
0x4187   : > { %4429 = vmatpush3.bf16.msra.mxu1 %v4799_v4 }
0x4188   : > { %4430 = vmatprep.subr.bf16.mxu1 %v5189_v0 }
0x418b   : > { %4431 = vmatpush3.bf16.msra.mxu1 %v4800_v25 }
0x418c   : > { %4432 = vmatprep.subr.bf16.mxu1 %v5189_v0 }
0x418f   : > { %4433 = vmatpush3.bf16.msra.mxu1 %v4801_v27 }
0x4255   : > { %v3318_v35 = vpop.f32.mrb[60].mxu1 }
0x4256   : > { %v3319_v36 = vadd.f32 %v3318_v35, %v6059_v2  ;;  %v4412_v37 = vpop.f32.mrb[61].mxu1 }
0x4257   : > { %v3321_v39 = vpop.f32.mrb[62].mxu1 }
0x4258   : > { %v3904_v40 = vmul.f32 -1.442695, %v3319_v36  ;;  %v4413_v43 = vpop.f32.mrb[63].mxu1 }
0x425a   : > { %4771 = vpow2.f32 %v3904_v40 }
0x4264   : > { %v4772_v44 = vpop.eup %4771 }
0x4265   : > { %v3327_v1 = vadd.f32 1.0, %v4772_v44 }
0x4267   : > { %4773 = vrcp.f32 %v3327_v1 }
0x4271   : > { %v4774_v45 = vpop.eup %4773 }
0x4272   : > { %v3330_v46 = vmul.f32 2.0, %v4774_v45  ;;  %v3332_v2 = vmul.f32 %v4774_v45, %v6304_v56 }
0x4274   : > { %v3905_v30 = vadd.f32 -1.0, %v3330_v46 }
0x4276   : > { %3334 = vrot.lane.b32.xlu1 %v3905_v30, %s5192_s30 }
0x42e8   : > { %v3335_v0 = vpop.permute.xlu1 %3334 }
0x42e9   : > { %v3337_v47 = vmul.f32 %v4774_v45, %v3335_v0 }
0x42eb   : > { %3339 = vrot.lane.b32.xlu0 %v3337_v47, %s6527_s15 }
0x435d   : > { %v3340_v50 = vpop.permute.xlu0 %3339 }
0x435e   : > { %v6352_v7 = vadd.f32 %v3340_v50, %v3332_v2 }
0x4360   : > { %4775 = vtanh.f32 %v6352_v7 }
0x436a   : > { %v4776_v51 = vpop.eup %4775 }
0x436b   : > { %3345 = vrot.lane.b32.xlu1 %v4776_v51, %s5192_s30 }
0x436f   : > { %3354 = vrot.lane.b32.xlu1 %v3271_v21, %s5192_s30 }
0x43dd   : > { %v3346_v49 = vpop.permute.xlu1 %3345 }
0x43de   : > { %v3348_v8 = vmul.f32 %v4774_v45, %v3346_v49 }
0x43e0   : > { %3350 = vrot.lane.b32.xlu0 %v3348_v8, %s6527_s15 }
0x43e1   : > { %v3355_v32 = vpop.permute.xlu1 %3354 }
0x4452   : > { %v3351_v54 = vpop.permute.xlu0 %3350 }
0x4453   : > { %3353 = vst.msk [vmem:[%s6073_s18 + $0x1] sm:$0x1] %vm2422_vm9, %v3351_v54  ;;  %v3357_v55 = vsel %vm716_vm1, %v3351_v54, %v3355_v32 }
0x4454   : > { %v3358_v53 = vpack.c.bf16 %v3357_v55, %v3357_v55 }
0x4456   : > { %4423 = vmatmul.mubr.msk.bf16.vlgmr.msra.gmra.mrb[64].mxu0 %vm871_vm2, %v3358_v53 }
0x4529   : > { %v3396_v56 = vpop.f32.mrb[64].mxu0 }
0x452a   : > { %v3397_v57 = vadd.f32 %v3396_v56, %v6092_v48  ;;  %v4424_v52 = vpop.f32.mrb[65].mxu0 }
0x452b   : > { %v3399_v59 = vpop.f32.mrb[66].mxu0 }
0x452c   : > { %v3907_v62 = vmul.f32 -1.442695, %v3397_v57  ;;  %v4425_v58 = vpop.f32.mrb[67].mxu0 }
0x452e   : > { %4777 = vpow2.f32 %v3907_v62 }
0x4538   : > { %v4778_v60 = vpop.eup %4777 }
0x4539   : > { %v3405_v63 = vadd.f32 1.0, %v4778_v60 }
0x453b   : > { %4779 = vrcp.f32 %v3405_v63 }
0x4545   : > { %v4780_v61 = vpop.eup %4779 }
0x4546   : > { %v3408_v5 = vmul.f32 2.0, %v4780_v61  ;;  %v3410_v11 = vmul.f32 %v4780_v61, %v6335_v20 }
0x4548   : > { %v3908_v31 = vadd.f32 -1.0, %v3408_v5 }
0x454a   : > { %3412 = vrot.lane.b32.xlu0 %v3908_v31, %s5192_s30 }
0x45bc   : > { %v3413_v3 = vpop.permute.xlu0 %3412 }
0x45bd   : > { %v3415_v26 = vmul.f32 %v4780_v61, %v3413_v3 }
0x45bf   : > { %3417 = vrot.lane.b32.xlu1 %v3415_v26, %s6527_s15 }
0x4631   : > { %v3418_v48 = vpop.permute.xlu1 %3417 }
0x4632   : > { %v3420_v12 = vadd.f32 %v3418_v48, %v3410_v11 }
0x4634   : > { %4781 = vtanh.f32 %v3420_v12 }
0x463e   : > { %v4782_v9 = vpop.eup %4781 }
0x463f   : > { %3423 = vrot.lane.b32.xlu0 %v4782_v9, %s5192_s30 }
0x4643   : > { %3431 = vrot.lane.b32.xlu0 %v3348_v8, %s5192_s30 }
0x46b1   : > { %v3424_v13 = vpop.permute.xlu0 %3423 }
0x46b2   : > { %v3426_v6 = vmul.f32 %v4780_v61, %v3424_v13 }
0x46b4   : > { %3428 = vrot.lane.b32.xlu1 %v3426_v6, %s6527_s15 }
0x46b5   : > { %v3432_v34 = vpop.permute.xlu0 %3431 }
0x4726   : > { %v3429_v15 = vpop.permute.xlu1 %3428 }
0x4727   : > { %v3434_v16 = vsel %vm716_vm1, %v3429_v15, %v3432_v34 }
0x4728   : > { %v3435_v14 = vpack.c.bf16 %v3434_v16, %v3434_v16 }
0x472a   : > { %4435 = vmatmul.mubr.msk.bf16.vlgmr.msra.gmra.mrb[64].mxu1 %vm871_vm2, %v3435_v14 }
0x47fd   : > { %v3473_v17 = vpop.f32.mrb[64].mxu1 }
0x47fe   : > { %v3474_v10 = vadd.f32 %v4802_v29, %v3473_v17  ;;  %v4436_v18 = vpop.f32.mrb[65].mxu1 }
0x47ff   : > { %v3476_v19 = vpop.f32.mrb[66].mxu1 }
0x4800   : > { %v3910_v20 = vmul.f32 -1.442695, %v3474_v10  ;;  %v4437_v42 = vpop.f32.mrb[67].mxu1 }
0x4802   : > { %4783 = vpow2.f32 %v3910_v20 }
0x480c   : > { %v4784_v33 = vpop.eup %4783 }
0x480d   : > { %v3482_v21 = vadd.f32 1.0, %v4784_v33 }
0x480f   : > { %4785 = vrcp.f32 %v3482_v21 }
0x4810   : > { %4787 = vlog2.f32 %v5965_v28 }
0x4819   : > { %v6374_v22 = vpop.eup %4785 }
0x481a   : > { %v3485_v38 = vmul.f32 2.0, %v6374_v22  ;;  %v4788_v4 = vpop.eup %4787  ;;  %v3487_v27 = vmul.f32 %v6374_v22, %v6352_v7 }
0x481b   : > { %v2176_v25 = vmul.f32 0.6931472, %v4788_v4 }
0x481c   : > { %v3911_v23 = vadd.f32 -1.0, %v3485_v38 }
0x481e   : > { %3489 = vrot.lane.b32.xlu1 %v3911_v23, %s5192_s30 }
0x4890   : > { %v3490_v41 = vpop.permute.xlu1 %3489 }
0x4891   : > { %v3492_v24 = vmul.f32 %v6374_v22, %v3490_v41 }
0x4893   : > { %3494 = vrot.lane.b32.xlu0 %v3492_v24, %s6527_s15  ;;  %s5031_s15 = scalar_lea.vmem %s3547_s11, 32 }
0x4894   : > { %p5032_p4 = scmp.ne.s32.totalorder %s3547_s11, %s5031_s15 }
0x4896   : > { %p5033_p5 = pnand %p5032_p4, %p6580_p10 }
0x4897   : > { %2178 = vrot.lane.b32.xlu0 %v2176_v25, %s5194_s20  ;;  %s6579_s20 = sld [smem:[#allocation42_spill]] }
0x4898   : > { %p5034_p7 = pneg %p5033_p5 }
0x489d   : > { %s6393_s16 = scalar_lea.hbm %s6579_s20, %s3915_s5 }
0x4905   : > { %v3495_v35 = vpop.permute.xlu0 %3494 }
0x4906   : > { %v3497_v36 = vadd.f32 %v3495_v35, %v3487_v27 }
0x4908   : > { %4789 = vtanh.f32 %v3497_v36 }
0x4909   : > { %v2179_v28 = vpop.permute.xlu0 %2178 }
0x490a   : > { %2181 = vst.msk [vmem:[%s669_s14] sm:$0x3] %vm2173_vm4, %v2179_v28 }
0x4912   : > { %v4790_v37 = vpop.eup %4789 }
0x4913   : > { %3500 = vrot.lane.b32.xlu1 %v4790_v37, %s5192_s30  ;;  %s5037_s30 = scalar_lea.vmem %s5036_s1, 64 }
0x4914   : > { %p5039_p6 = scmp.lt.s32.totalorder %s5037_s30, %s5031_s15 }
0x4916   : > { %p5040_p11 = por %p5039_p6, %p5038_p3 }
0x4918   : > { %p5041_p8 = pnand %p5040_p11, %p5034_p7 }
0x491a   : > { %5044 = shalt.err (!%p5041_p8)
}
0x491b   : > { %s5045_s7 = scalar_lea.hbm %s6393_s16, 32  ;;  %s5049_s0 = scalar_lea.hbm %s6579_s20, 64 }
0x491c   : > { %p5046_p9 = scmp.ne.s32.totalorder %s6393_s16, %s5045_s7  ;;  %p5050_p13 = scmp.lt.u32.totalorder %s6393_s16, %s6579_s20 }
0x491d   : > { %p5051_p0 = scmp.lt.u32.totalorder %s5049_s0, %s5045_s7  ;;  %p5053_p4 = scmp.lt.u32.totalorder %s5045_s7, %s6393_s16 }
0x491e   : > { %p5047_p12 = pnand %p5046_p9, %p6580_p10 }
0x491f   : > { %p5052_p2 = por %p5051_p0, %p5050_p13 }
0x4920   : > { %p5048_p1 = pneg %p5047_p12 }
0x4921   : > { %p5054_p5 = por %p5053_p4, %p5052_p2 }
0x4923   : > { %p5055_p7 = pnand %p5054_p5, %p5048_p1 }
0x4925   : > { %5058 = shalt.err (!%p5055_p7)
}
0x4926   : > { %4467 = dma.vmem_to_hbm [thread:$0]  (%p6580_p10), %s3547_s11, 32, %s6393_s16, %s6397_s26  }
0x4927   : > { %s6581_s14 = sld [smem:[#allocation41_spill]]  ;;  %s6582_s0 = scalar_lea.vmem [#allocation16], %s5601_s28 }
0x4928   : > { %s3533_s7 = sshll.u32 %s6582_s0, 4  ;;  %s3510_s2 = scalar_lea.sflag [#allocation4], %s5587_s8  ;;  %s3534_s7 = int_to_ptr.vmem [resolvable:$true] %s3533_s7 }
0x4929   : > { %s5059_s1 = scalar_lea.vmem %s3534_s7, 32  ;;  %s5196_s3 = smov [#allocation16]  }
0x492a   : > { %p5060_p3 = scmp.ne.s32.totalorder %s3534_s7, %s5059_s1  ;;  %s5063_s4 = sshll.u32 %s5196_s3, 4  ;;  %s5064_s4 = int_to_ptr.vmem [resolvable:$false] %s5063_s4 }
0x492b   : > { %s5065_s6 = scalar_lea.vmem %s5064_s4, 64  ;;  %p5066_p8 = scmp.lt.s32.totalorder %s3534_s7, %s5064_s4 }
0x492c   : > { %p5061_p6 = pnand %p5060_p3, %p6580_p10  ;;  %p5067_p9 = scmp.lt.s32.totalorder %s5065_s6, %s5059_s1 }
0x492d   : > { %s6422_s17 = scalar_lea.hbm %s6581_s14, %s3915_s5 }
0x492e   : > { %p5062_p11 = pneg %p5061_p6  ;;  %p5068_p12 = por %p5067_p9, %p5066_p8 }
0x4930   : > { %p5069_p1 = pnand %p5068_p12, %p5062_p11 }
0x4932   : > { %5072 = shalt.err (!%p5069_p1)
}
0x4933   : > { %s5073_s8 = scalar_lea.hbm %s6422_s17, 32  ;;  %s5077_s3 = scalar_lea.hbm %s6581_s14, 64 }
0x4934   : > { %p5074_p13 = scmp.ne.s32.totalorder %s6422_s17, %s5073_s8  ;;  %p5078_p4 = scmp.lt.u32.totalorder %s6422_s17, %s6581_s14 }
0x4935   : > { %p5079_p5 = scmp.lt.u32.totalorder %s5077_s3, %s5073_s8  ;;  %p5081_p3 = scmp.lt.u32.totalorder %s5073_s8, %s6422_s17 }
0x4936   : > { %p5075_p0 = pnand %p5074_p13, %p6580_p10 }
0x4937   : > { %p5080_p7 = por %p5079_p5, %p5078_p4 }
0x4938   : > { %p5076_p2 = pneg %p5075_p0 }
0x4939   : > { %p5082_p6 = por %p5081_p3, %p5080_p7 }
0x493b   : > { %p5083_p11 = pnand %p5082_p6, %p5076_p2 }
0x493d   : > { %5086 = shalt.err (!%p5083_p11)
}
0x493e   : > { %4466 = dma.vmem_to_hbm [thread:$0]  (%p6580_p10), %s3534_s7, 32, %s6422_s17, %s3510_s2  }
0x493f   : > { %s6583_s6 = smov 32   ;;  %s3917_s16 = sshll.u32 %s5304_s27, 7 }
0x4940   : > { %s3559_s15 = sshll.u32 %s6073_s18, 4  ;;  %s6584_s1 = sld [smem:[#allocation43_spill]]  ;;  %s6453_s15 = int_to_ptr.vmem [resolvable:$true] %s3559_s15 }
0x4941   : > { %s5087_s17 = scalar_lea.vmem %s6453_s15, 128  ;;  %s5197_s27 = smov [#allocation19]  }
0x4942   : > { %p5088_p8 = scmp.ne.s32.totalorder %s6453_s15, %s5087_s17  ;;  %s5091_s7 = sshll.u32 %s5197_s27, 4  ;;  %s5092_s7 = int_to_ptr.vmem [resolvable:$false] %s5091_s7 }
0x4943   : > { %s5093_s2 = scalar_lea.vmem %s5092_s7, 256  ;;  %p5094_p1 = scmp.lt.s32.totalorder %s6453_s15, %s5092_s7 }
0x4944   : > { %p5089_p9 = pnand %p5088_p8, %p6580_p10  ;;  %p5095_p13 = scmp.lt.s32.totalorder %s5093_s2, %s5087_s17 }
0x4946   : > { %s6451_s8 = scalar_lea.hbm %s6584_s1, %s3917_s16  ;;  %p5090_p12 = pneg %p5089_p9 }
0x4947   : > { %p5096_p0 = por %p5095_p13, %p5094_p1 }
0x4949   : > { %p5097_p2 = pnand %p5096_p0, %p5090_p12 }
0x4985   : > { %v3501_v39 = vpop.permute.xlu1 %3500 }
0x4986   : > { %v3503_v40 = vmul.f32 %v6374_v22, %v3501_v39 }
0x4988   : > { %3505 = vrot.lane.b32.xlu1 %v3503_v40, %s6583_s6 }
0x49fa   : > { %v3506_v43 = vpop.permute.xlu1 %3505 }
0x49fb   : > { %3508 = vst.msk [vmem:[%s6073_s18] sm:$0x1] %vm2422_vm9, %v3506_v43 }
0x49fc   : > { %5100 = shalt.err (!%p5097_p2)
}
0x49fd   : > { %s5101_s18 = scalar_lea.hbm %s6451_s8, 128  ;;  %s5105_s3 = scalar_lea.hbm %s6584_s1, 256 }
0x49fe   : > { %p5102_p4 = scmp.ne.s32.totalorder %s6451_s8, %s5101_s18  ;;  %p5106_p3 = scmp.lt.u32.totalorder %s6451_s8, %s6584_s1 }
0x49ff   : > { %p5107_p6 = scmp.lt.u32.totalorder %s5105_s3, %s5101_s18  ;;  %p5109_p8 = scmp.lt.u32.totalorder %s5101_s18, %s6451_s8 }
0x4a00   : > { %p5103_p5 = pnand %p5102_p4, %p6580_p10 }
0x4a01   : > { %p5108_p11 = por %p5107_p6, %p5106_p3 }
0x4a02   : > { %p5104_p7 = pneg %p5103_p5 }
0x4a03   : > { %p5110_p9 = por %p5109_p8, %p5108_p11 }
0x4a05   : > { %p5111_p12 = pnand %p5110_p9, %p5104_p7 }
0x4a07   : > { %5114 = shalt.err (!%p5111_p12)
}
0x4a08   : > { %4468 = dma.vmem_to_hbm [thread:$0]  (%p6580_p10), %s6453_s15, 128, %s6451_s8, %s6397_s26  }
0x4a09 PF: > { %s3571_s6 = sand.u32 1, %s5165_s21   ;;  %p6585_p1 = scmp.ne.s32.totalorder %s6558_s25, 0 }
0x4a0a   : > { %p6586_p13 = scmp.ge.s32.totalorder %s5177_s24, 2  ;;  %s3572_s16 = scalar_lea.sflag [#allocation4], %s3571_s6 }
0x4a0c   : > { %p4499_p0 = pnand %p6586_p13, %p6585_p1 }
0x4a0e   : > { %5156 = dma.done.wait (!%p4499_p0), %s3572_s16, 32  }
0x4a0f   : > { %5158 = vsyncadd (!%p4499_p0), %s3572_s16, 4294967264  ;;  %s6587_s30 = sadd.s32 4294967294, %s5177_s24  }
0x4a10   : > { %s3580_s0 = sand.u32 1, %s6587_s30  }
0x4a11   : > { %s3581_s17 = scalar_lea.sflag [#allocation18], %s3580_s0 }
0x4a12   : > { %5160 = dma.done.wait (!%p4499_p0), %s3581_s17, 160  }
0x4a13   : > { %5162 = vsyncadd (!%p4499_p0), %s3581_s17, 4294967136  ;;  %p39_p10 = scmp.ge.s32.totalorder %s5474_s29, 4   ;;  %s6588_s21 = smov %s5169_s22 }
0x4a14   : > { %s6589_s22 = smov %s5173_s23  ;;  %s6590_s23 = smov %s5485_s13 }
0x4a15   : > { %s6591_s24 = smov %s5474_s29  ;;  %41 = sbr.rel (!%p39_p10) target bundleno = 29 (0x1d), region = 190 }
0x4a1c   :  { %3595 = vsyncpa [#allocation3], 1 }
0x4a1d   :  { %3597 = vsyncpa [#allocation3 + $0x1], 1 }
0x4a1e   :  { %3598 = vsyncpa [#allocation6], 1 }
0x4a1f   :  { %3600 = vsyncpa [#allocation6 + $0x1], 1 }
0x4a20   :  { %3601 = vsyncpa [#allocation9], 1 }
0x4a21   :  { %3602 = vsyncpa [#allocation12], 1 }
0x4a22   :  { %3603 = vsyncpa [#allocation15], 1 }
0x4a23   :  { %3604 = vsyncpa [#allocation4], 1 }
0x4a24   :  { %3606 = vsyncpa [#allocation4 + $0x1], 1 }
0x4a25   :  { %3607 = vsyncpa [#allocation18], 1 }
0x4a26   :  { %3609 = vsyncpa [#allocation18 + $0x1], 1 }

</bundles_post_ra>
